<compile_context>
chip_gen: v7x
topology: tpu7x:2x2x1
jax: 0.10.0
libtpu: 0.0.40
codegen_flags: <defaults>
</compile_context>

<pallas_src>
import functools
import math

import numpy as np
import jax
import jax.numpy as jnp
from jax.experimental import pallas as pl
from jax.experimental.pallas import tpu as pltpu

TRANS_STEPS = 4
HID = 32          # hidden width of each PixelCNN head
MAX_TILE_M = 512  # max pixel tile (on the 128-lane axis) per grid step


# ----------------------------------------------------------------------------
# Wavelet (lifting) transform.
# TODO(synk): learn_wavelet_trans.Wavelet source is unavailable; its learned
#             lifting CNNs are approximated by fixed CDF 5/3 lifting
#             coefficients (still exactly invertible, so LL reconstructs x).
# ----------------------------------------------------------------------------
def _lift1d_fwd(x):
    even = x[..., 0::2]
    odd = x[..., 1::2]
    even_r = jnp.concatenate([even[..., 1:], even[..., -1:]], axis=-1)
    d = odd - 0.5 * (even + even_r)
    d_l = jnp.concatenate([d[..., :1], d[..., :-1]], axis=-1)
    s = even + 0.25 * (d_l + d)
    return s, d


def _lift1d_inv(s, d):
    d_l = jnp.concatenate([d[..., :1], d[..., :-1]], axis=-1)
    even = s - 0.25 * (d_l + d)
    even_r = jnp.concatenate([even[..., 1:], even[..., -1:]], axis=-1)
    odd = d + 0.5 * (even + even_r)
    n = even.shape[-1]
    out = jnp.stack([even, odd], axis=-1)
    return out.reshape(*even.shape[:-1], 2 * n)


def wavelet_forward(x):
    # x: [B, 1, H, W] -> LL, HL, LH, HH each [B, 1, H//2, W//2]
    L, H = _lift1d_fwd(x)                                    # horizontal
    LLt, LHt = _lift1d_fwd(jnp.swapaxes(L, -1, -2))          # vertical on L
    HLt, HHt = _lift1d_fwd(jnp.swapaxes(H, -1, -2))          # vertical on H
    LL = jnp.swapaxes(LLt, -1, -2)
    LH = jnp.swapaxes(LHt, -1, -2)
    HL = jnp.swapaxes(HLt, -1, -2)
    HH = jnp.swapaxes(HHt, -1, -2)
    return LL, HL, LH, HH


def wavelet_inverse(LL, HL, LH, HH):
    L = jnp.swapaxes(
        _lift1d_inv(jnp.swapaxes(LL, -1, -2), jnp.swapaxes(LH, -1, -2)), -1, -2)
    H = jnp.swapaxes(
        _lift1d_inv(jnp.swapaxes(HL, -1, -2), jnp.swapaxes(HH, -1, -2)), -1, -2)
    return _lift1d_inv(L, H)


# ----------------------------------------------------------------------------
# PixelCNN / PixelCNN_Context entropy models (fused Pallas kernel).
# TODO(synk): PixelCNN.PixelCNN source is unavailable; each head is
#             approximated by a mask-A 3x3 conv -> ReLU -> 1x1 conv ->
#             (mu, log_scale) discretized-logistic bit estimator. Context
#             channels (already-decoded subbands) are unmasked.
# ----------------------------------------------------------------------------
def _coding_kernel(n_rows, patches_ref, x_ref, w1_ref, b1_ref, w2_ref, b2_ref,
                   out_ref):
    """Lane-dense fused entropy head(s).

    patches_ref: (K_pad, TILE_M) bf16   im2col taps, pixels on lanes
    x_ref      : (NH,    TILE_M) f32    coded-band pixel values per head
    w1_ref     : (NH*HID, K_pad) bf16   masked 3x3 conv weights (fused heads)
    b1_ref     : (NH*HID, 1)     f32
    w2_ref     : (2*NH, NH*HID)  f32    block-diagonal 1x1 conv -> (mu, log_s)
    b2_ref     : (2*NH, 1)       f32
    out_ref    : (1, TILE_M)     f32    lane-wide partial bit sums (accumulated)
    """
    i = pl.program_id(0)
    tile_m = out_ref.shape[1]

    @pl.when(i == 0)
    def _():
        out_ref[...] = jnp.zeros_like(out_ref)

    # masked 3x3 conv as im2col matmul (MXU N = TILE_M lanes), fused ReLU
    h = jnp.dot(w1_ref[...], patches_ref[...],
                preferred_element_type=jnp.float32)          # (NH*HID, TILE_M)
    h = jnp.maximum(h + b1_ref[...], 0.0)
    # 1x1 conv -> per-head (mu, log_scale); keep f32 elementwise (v5e-safe)
    p = jnp.dot(w2_ref[...], h,
                preferred_element_type=jnp.float32) + b2_ref[...]  # (2NH, T)

    # row-validity mask built in-kernel (pixels past n_rows are padding)
    idx = i * tile_m + jax.lax.broadcasted_iota(jnp.int32, (1, tile_m), 1)
    valid = (idx < n_rows).astype(jnp.float32)               # (1, TILE_M)

    xv = x_ref[...]
    nh = xv.shape[0]
    neg_logp = jnp.zeros((1, tile_m), jnp.float32)
    for hh in range(nh):                                     # unrolled (<=3)
        mu = p[2 * hh:2 * hh + 1, :]
        log_s = jnp.clip(p[2 * hh + 1:2 * hh + 2, :], -10.0, 10.0)
        inv_s = jnp.exp(-log_s)
        centered = xv[hh:hh + 1, :] - mu
        upper = jax.nn.sigmoid((centered + 0.5) * inv_s)
        lower = jax.nn.sigmoid((centered - 0.5) * inv_s)
        prob = jnp.maximum(upper - lower, 1e-9)
        neg_logp = neg_logp - jnp.log(prob)

    out_ref[...] = out_ref[...] + neg_logp * (valid * (1.0 / math.log(2.0)))


def _round_up(n, m):
    return ((n + m - 1) // m) * m


def _im2col_T(x_nchw):
    # [B, C, H, W] -> [C*9, B*H*W]  (channel-major tap order, pixels on lanes)
    B, C, H, W = x_nchw.shape
    xp = jnp.pad(x_nchw, ((0, 0), (0, 0), (1, 1), (1, 1)))
    rows = []
    for c in range(C):
        for ky in range(3):
            for kx in range(3):
                rows.append(xp[:, c, ky:ky + H, kx:kx + W].reshape(-1))
    return jnp.stack(rows, axis=0)


def coding_bits(bands, channels, hp):
    """bands: list of coded subbands [B,1,h,w] (one per fused head);
       channels: list of [B,1,h,w] channels forming the conv input stack;
       hp: fused head params. Returns scalar bit estimate over all heads."""
    inp = jnp.concatenate(channels, axis=1)                  # [B, C, h, w]
    patches = _im2col_T(inp).astype(jnp.float32)             # [C*9, M]
    xv = jnp.stack([b[:, 0].reshape(-1) for b in bands], 0)  # [NH, M]
    xv = xv.astype(jnp.float32)

    K1, M = patches.shape
    nh = len(bands)
    nhid = hp["w1"].shape[0]                                 # NH*HID

    K_pad = _round_up(K1, 16)                                # bf16-friendly K
    tile_m = min(MAX_TILE_M, _round_up(M, 128))
    m_pad = _round_up(M, tile_m)

    patches = jnp.pad(patches, ((0, K_pad - K1), (0, m_pad - M)))
    patches = patches.astype(jnp.bfloat16)                   # halve DMA bytes
    xv = jnp.pad(xv, ((0, 0), (0, m_pad - M)))
    w1 = jnp.pad(hp["w1"], ((0, 0), (0, K_pad - K1))).astype(jnp.bfloat16)

    kernel = functools.partial(_coding_kernel, M)            # static row count

    partial_bits = pl.pallas_call(
        kernel,
        out_shape=jax.ShapeDtypeStruct((1, tile_m), jnp.float32),
        grid_spec=pltpu.PrefetchScalarGridSpec(
            num_scalar_prefetch=0,
            grid=(m_pad // tile_m,),
            in_specs=[
                pl.BlockSpec((K_pad, tile_m), lambda i: (0, i)),
                pl.BlockSpec((nh, tile_m), lambda i: (0, i)),
                pl.BlockSpec((nhid, K_pad), lambda i: (0, 0)),
                pl.BlockSpec((nhid, 1), lambda i: (0, 0)),
                pl.BlockSpec((2 * nh, nhid), lambda i: (0, 0)),
                pl.BlockSpec((2 * nh, 1), lambda i: (0, 0)),
            ],
            out_specs=pl.BlockSpec((1, tile_m), lambda i: (0, 0)),
        ),
        compiler_params=pltpu.CompilerParams(
            dimension_semantics=("arbitrary",)),
    )(patches, xv, w1, hp["b1"], hp["w2"], hp["b2"])
    return jnp.sum(partial_bits)


def make_head_params(key, n_channels, heads):
    """heads: list of (band_channel_idx, context_channel_idxs). Returns fused
    params whose block structure is mathematically identical to running the
    heads separately (mask-A on the coded band, zeros on unused channels)."""
    nh = len(heads)
    K1 = n_channels * 9
    k1, k2 = jax.random.split(key)
    w1 = np.asarray(jax.random.normal(k1, (nh * HID, K1), jnp.float32)) * 0.1
    w2 = np.asarray(jax.random.normal(k2, (2 * nh, nh * HID), jnp.float32)) * 0.1

    # mask type A within a 3x3 window: keep only strictly-previous pixels
    maskA = np.zeros(9, np.float32)
    for t in range(9):
        ky, kx = divmod(t, 3)
        if ky < 1 or (ky == 1 and kx < 1):
            maskA[t] = 1.0

    m1 = np.zeros((nh * HID, K1), np.float32)
    m2 = np.zeros((2 * nh, nh * HID), np.float32)
    for h, (band_ch, ctx_chs) in enumerate(heads):
        rows = slice(h * HID, (h + 1) * HID)
        m1[rows, band_ch * 9:(band_ch + 1) * 9] = maskA[None, :]
        for c in ctx_chs:
            m1[rows, c * 9:(c + 1) * 9] = 1.0
        m2[2 * h:2 * h + 2, rows] = 1.0

    return {
        "w1": jnp.asarray(w1 * m1),
        "b1": jnp.zeros((nh * HID, 1), jnp.float32),
        "w2": jnp.asarray(w2 * m2),
        "b2": jnp.zeros((2 * nh, 1), jnp.float32),
    }


def init_params(key):
    keys = jax.random.split(key, 1 + TRANS_STEPS)
    # per-level channel stack is [LL, HL, LH, HH]
    level_heads = [
        (1, (0,)),        # HL coded with context LL
        (2, (0, 1)),      # LH coded with context (LL, HL)
        (3, (0, 1, 2)),   # HH coded with context (LL, HL, LH)
    ]
    return {
        "LL": make_head_params(keys[0], 1, [(0, ())]),
        "levels": [make_head_params(keys[1 + j], 4, level_heads)
                   for j in range(TRANS_STEPS)],
    }


# ----------------------------------------------------------------------------
# Model.forward
# ----------------------------------------------------------------------------
def model_forward(x, params):
    LL = x
    HL_list, LH_list, HH_list = [], [], []
    for _ in range(TRANS_STEPS):
        LL, HL, LH, HH = wavelet_forward(LL)
        HL_list.append(HL)
        LH_list.append(LH)
        HH_list.append(HH)

    bits = coding_bits([LL], [LL], params["LL"])
    for i in range(TRANS_STEPS):
        j = TRANS_STEPS - 1 - i
        # one fused pallas_call covers the HL / LH / HH heads of this level
        bits = bits + coding_bits(
            [HL_list[j], LH_list[j], HH_list[j]],
            [LL, HL_list[j], LH_list[j], HH_list[j]],
            params["levels"][j])
        LL = wavelet_inverse(LL, HL_list[j], LH_list[j], HH_list[j])
    return bits, LL


if __name__ == "__main__":
    key = jax.random.PRNGKey(0)
    kx, kp = jax.random.split(key)
    x = jax.random.normal(kx, (2, 1, 16, 16), jnp.float32)  # NCHW, 1 channel
    params = init_params(kp)

    fwd = jax.jit(model_forward)
    bits, rec = fwd(x, params)
    jax.block_until_ready((bits, rec))

    # sanity: lifting wavelet round-trip reconstructs x (lossless up to fp eps)
    _ = float(jnp.max(jnp.abs(rec - x)))
    print("KERNEL_OK")
</pallas_src>

<mosaic_0001>
module attributes {stable_mosaic.version = 11 : i64} {
  func.func @_coding_kernel(%arg0: i32, %arg1: memref<16x128xbf16, #tpu.memory_space<vmem>>, %arg2: memref<1x128xf32, #tpu.memory_space<vmem>>, %arg3: memref<32x16xbf16, #tpu.memory_space<vmem>>, %arg4: memref<32x1xf32, #tpu.memory_space<vmem>>, %arg5: memref<2x32xf32, #tpu.memory_space<vmem>>, %arg6: memref<2x1xf32, #tpu.memory_space<vmem>>, %arg7: memref<1x128xf32, #tpu.memory_space<vmem>>) attributes {dimension_semantics = [#tpu.dimension_semantics<arbitrary>], iteration_bounds = array<i64: 1>, scalar_prefetch = 0 : i64, scratch_operands = 0 : i64, tpu.core_type = #tpu.core_type<tc>, window_params = [{transform_indices = @transform_0, window_bounds = array<i64: 16, 128>}, {transform_indices = @transform_1, window_bounds = array<i64: 1, 128>}, {pipeline_mode = #tpu.pipeline_mode<synchronous>, transform_indices = @transform_2, window_bounds = array<i64: 32, 16>}, {pipeline_mode = #tpu.pipeline_mode<synchronous>, transform_indices = @transform_3, window_bounds = array<i64: 32, 1>}, {pipeline_mode = #tpu.pipeline_mode<synchronous>, transform_indices = @transform_4, window_bounds = array<i64: 2, 32>}, {pipeline_mode = #tpu.pipeline_mode<synchronous>, transform_indices = @transform_5, window_bounds = array<i64: 2, 1>}, {pipeline_mode = #tpu.pipeline_mode<synchronous>, transform_indices = @transform_6, window_bounds = array<i64: 1, 128>}]} {
    %c0_i32 = arith.constant 0 : i32
    %0 = arith.cmpi eq, %arg0, %c0_i32 : i32
    %1 = arith.extui %0 : i1 to i32
    %c0_i32_0 = arith.constant 0 : i32
    %2 = arith.cmpi ne, %1, %c0_i32_0 : i32
    scf.if %2 {
      %cst_28 = arith.constant 0.000000e+00 : f32
      %63 = vector.broadcast %cst_28 : f32 to vector<1x128xf32>
      %c0_29 = arith.constant 0 : index
      %c0_30 = arith.constant 0 : index
      %64 = vector.load %arg7[%c0_29, %c0_30] : memref<1x128xf32, #tpu.memory_space<vmem>>, vector<1x128xf32>
      tpu.vector_store %arg7[%c0_29, %c0_30], %63 {strides = array<i32>} : memref<1x128xf32, #tpu.memory_space<vmem>>, vector<1x128xf32>,
    } else {
    }
    %c0 = arith.constant 0 : index
    %c0_1 = arith.constant 0 : index
    %3 = vector.load %arg3[%c0, %c0_1] : memref<32x16xbf16, #tpu.memory_space<vmem>>, vector<32x16xbf16>
    %c0_2 = arith.constant 0 : index
    %c0_3 = arith.constant 0 : index
    %4 = vector.load %arg1[%c0_2, %c0_3] : memref<16x128xbf16, #tpu.memory_space<vmem>>, vector<16x128xbf16>
    %cst = arith.constant dense<0.000000e+00> : vector<32x128xf32>
    %5 = tpu.matmul %3, %4, %cst {dimension_numbers = #tpu.dot_dimension_numbers<[1], [0], [0], [1], [0, 0, 1, 1], [], []>} : vector<32x16xbf16>, vector<16x128xbf16>, vector<32x128xf32> -> vector<32x128xf32>
    %c0_4 = arith.constant 0 : index
    %c0_5 = arith.constant 0 : index
    %6 = vector.load %arg4[%c0_4, %c0_5] : memref<32x1xf32, #tpu.memory_space<vmem>>, vector<32x1xf32>
    %7 = vector.broadcast %6 : vector<32x1xf32> to vector<32x128xf32>
    %8 = arith.addf %5, %7 : vector<32x128xf32>
    %cst_6 = arith.constant 0.000000e+00 : f32
    %9 = vector.broadcast %cst_6 : f32 to vector<32x128xf32>
    %10 = arith.maximumf %8, %9 : vector<32x128xf32>
    %c0_7 = arith.constant 0 : index
    %c0_8 = arith.constant 0 : index
    %11 = vector.load %arg5[%c0_7, %c0_8] : memref<2x32xf32, #tpu.memory_space<vmem>>, vector<2x32xf32>
    %cst_9 = arith.constant dense<0.000000e+00> : vector<2x128xf32>
    %12 = tpu.matmul %11, %10, %cst_9 {dimension_numbers = #tpu.dot_dimension_numbers<[1], [0], [0], [1], [0, 0, 1, 1], [], []>} : vector<2x32xf32>, vector<32x128xf32>, vector<2x128xf32> -> vector<2x128xf32>
    %c0_10 = arith.constant 0 : index
    %c0_11 = arith.constant 0 : index
    %13 = vector.load %arg6[%c0_10, %c0_11] : memref<2x1xf32, #tpu.memory_space<vmem>>, vector<2x1xf32>
    %14 = vector.broadcast %13 : vector<2x1xf32> to vector<2x128xf32>
    %15 = arith.addf %12, %14 : vector<2x128xf32>
    %c128_i32 = arith.constant 128 : i32
    %16 = arith.muli %arg0, %c128_i32 : i32
    %17 = tpu.iota {dimensions = array<i32: 1>} : vector<1x128xi32>
    %18 = vector.broadcast %16 : i32 to vector<1x128xi32>
    %19 = arith.addi %18, %17 : vector<1x128xi32>
    %c2_i32 = arith.constant 2 : i32
    %20 = vector.broadcast %c2_i32 : i32 to vector<1x128xi32>
    %21 = arith.cmpi slt, %19, %20 : vector<1x128xi32>
    %22 = arith.extui %21 : vector<1x128xi1> to vector<1x128xi32>
    %23 = arith.sitofp %22 : vector<1x128xi32> to vector<1x128xf32>
    %c0_12 = arith.constant 0 : index
    %c0_13 = arith.constant 0 : index
    %24 = vector.load %arg2[%c0_12, %c0_13] : memref<1x128xf32, #tpu.memory_space<vmem>>, vector<1x128xf32>
    %cst_14 = arith.constant 0.000000e+00 : f32
    %25 = vector.broadcast %cst_14 : f32 to vector<1x128xf32>
    %26 = vector.extract_strided_slice %15 {offsets = [0, 0], sizes = [1, 128], strides = [1, 1]} : vector<2x128xf32> to vector<1x128xf32>
    %27 = vector.extract_strided_slice %15 {offsets = [1, 0], sizes = [1, 128], strides = [1, 1]} : vector<2x128xf32> to vector<1x128xf32>
    %cst_15 = arith.constant -1.000000e+01 : f32
    %cst_16 = arith.constant 1.000000e+01 : f32
    %28 = vector.broadcast %cst_15 : f32 to vector<1x128xf32>
    %29 = arith.maximumf %28, %27 : vector<1x128xf32>
    %30 = vector.broadcast %cst_16 : f32 to vector<1x128xf32>
    %31 = arith.minimumf %30, %29 : vector<1x128xf32>
    %cst_17 = arith.constant 0.000000e+00 : f32
    %32 = vector.broadcast %cst_17 : f32 to vector<1x128xf32>
    %33 = arith.subf %32, %31 : vector<1x128xf32>
    %34 = math.exp %33 : vector<1x128xf32>
    %35 = arith.subf %24, %26 : vector<1x128xf32>
    %cst_18 = arith.constant 5.000000e-01 : f32
    %36 = vector.broadcast %cst_18 : f32 to vector<1x128xf32>
    %37 = arith.addf %35, %36 : vector<1x128xf32>
    %38 = arith.mulf %37, %34 : vector<1x128xf32>
    %39 = arith.negf %38 : vector<1x128xf32>
    %40 = math.exp %39 : vector<1x128xf32>
    %cst_19 = arith.constant 1.000000e+00 : f32
    %41 = vector.broadcast %cst_19 : f32 to vector<1x128xf32>
    %42 = arith.addf %41, %40 : vector<1x128xf32>
    %43 = arith.divf %41, %42 : vector<1x128xf32>
    %cst_20 = arith.constant 5.000000e-01 : f32
    %44 = vector.broadcast %cst_20 : f32 to vector<1x128xf32>
    %45 = arith.subf %35, %44 : vector<1x128xf32>
    %46 = arith.mulf %45, %34 : vector<1x128xf32>
    %47 = arith.negf %46 : vector<1x128xf32>
    %48 = math.exp %47 : vector<1x128xf32>
    %cst_21 = arith.constant 1.000000e+00 : f32
    %49 = vector.broadcast %cst_21 : f32 to vector<1x128xf32>
    %50 = arith.addf %49, %48 : vector<1x128xf32>
    %51 = arith.divf %49, %50 : vector<1x128xf32>
    %52 = arith.subf %43, %51 : vector<1x128xf32>
    %cst_22 = arith.constant 9.99999971E-10 : f32
    %53 = vector.broadcast %cst_22 : f32 to vector<1x128xf32>
    %54 = arith.maximumf %52, %53 : vector<1x128xf32>
    %55 = math.log %54 : vector<1x128xf32>
    %56 = arith.subf %25, %55 : vector<1x128xf32>
    %c0_23 = arith.constant 0 : index
    %c0_24 = arith.constant 0 : index
    %57 = vector.load %arg7[%c0_23, %c0_24] : memref<1x128xf32, #tpu.memory_space<vmem>>, vector<1x128xf32>
    %cst_25 = arith.constant 1.44269502 : f32
    %58 = vector.broadcast %cst_25 : f32 to vector<1x128xf32>
    %59 = arith.mulf %23, %58 : vector<1x128xf32>
    %60 = arith.mulf %56, %59 : vector<1x128xf32>
    %61 = arith.addf %57, %60 : vector<1x128xf32>
    %c0_26 = arith.constant 0 : index
    %c0_27 = arith.constant 0 : index
    %62 = vector.load %arg7[%c0_26, %c0_27] : memref<1x128xf32, #tpu.memory_space<vmem>>, vector<1x128xf32>
    tpu.vector_store %arg7[%c0_26, %c0_27], %61 {strides = array<i32>} : memref<1x128xf32, #tpu.memory_space<vmem>>, vector<1x128xf32>,
    return
  }
  func.func @transform_0(%arg0: i32) -> (i32, i32) {
    %c0_i32 = arith.constant 0 : i32
    %c0_i32_0 = arith.constant 0 : i32
    return %c0_i32, %arg0 : i32, i32
  }
  func.func @transform_1(%arg0: i32) -> (i32, i32) {
    %c0_i32 = arith.constant 0 : i32
    %c0_i32_0 = arith.constant 0 : i32
    return %c0_i32, %arg0 : i32, i32
  }
  func.func @transform_2(%arg0: i32) -> (i32, i32) {
    %c0_i32 = arith.constant 0 : i32
    %c0_i32_0 = arith.constant 0 : i32
    %c0_i32_1 = arith.constant 0 : i32
    return %c0_i32, %c0_i32_0 : i32, i32
  }
  func.func @transform_3(%arg0: i32) -> (i32, i32) {
    %c0_i32 = arith.constant 0 : i32
    %c0_i32_0 = arith.constant 0 : i32
    %c0_i32_1 = arith.constant 0 : i32
    return %c0_i32, %c0_i32_0 : i32, i32
  }
  func.func @transform_4(%arg0: i32) -> (i32, i32) {
    %c0_i32 = arith.constant 0 : i32
    %c0_i32_0 = arith.constant 0 : i32
    %c0_i32_1 = arith.constant 0 : i32
    return %c0_i32, %c0_i32_0 : i32, i32
  }
  func.func @transform_5(%arg0: i32) -> (i32, i32) {
    %c0_i32 = arith.constant 0 : i32
    %c0_i32_0 = arith.constant 0 : i32
    %c0_i32_1 = arith.constant 0 : i32
    return %c0_i32, %c0_i32_0 : i32, i32
  }
  func.func @transform_6(%arg0: i32) -> (i32, i32) {
    %c0_i32 = arith.constant 0 : i32
    %c0_i32_0 = arith.constant 0 : i32
    %c0_i32_1 = arith.constant 0 : i32
    return %c0_i32, %c0_i32_0 : i32, i32
  }
}

module attributes {stable_mosaic.version = 11 : i64} {
  func.func @_coding_kernel(%arg0: i32, %arg1: memref<48x128xbf16, #tpu.memory_space<vmem>>, %arg2: memref<3x128xf32, #tpu.memory_space<vmem>>, %arg3: memref<96x48xbf16, #tpu.memory_space<vmem>>, %arg4: memref<96x1xf32, #tpu.memory_space<vmem>>, %arg5: memref<6x96xf32, #tpu.memory_space<vmem>>, %arg6: memref<6x1xf32, #tpu.memory_space<vmem>>, %arg7: memref<1x128xf32, #tpu.memory_space<vmem>>) attributes {dimension_semantics = [#tpu.dimension_semantics<arbitrary>], iteration_bounds = array<i64: 1>, scalar_prefetch = 0 : i64, scratch_operands = 0 : i64, tpu.core_type = #tpu.core_type<tc>, window_params = [{transform_indices = @transform_0, window_bounds = array<i64: 48, 128>}, {transform_indices = @transform_1, window_bounds = array<i64: 3, 128>}, {pipeline_mode = #tpu.pipeline_mode<synchronous>, transform_indices = @transform_2, window_bounds = array<i64: 96, 48>}, {pipeline_mode = #tpu.pipeline_mode<synchronous>, transform_indices = @transform_3, window_bounds = array<i64: 96, 1>}, {pipeline_mode = #tpu.pipeline_mode<synchronous>, transform_indices = @transform_4, window_bounds = array<i64: 6, 96>}, {pipeline_mode = #tpu.pipeline_mode<synchronous>, transform_indices = @transform_5, window_bounds = array<i64: 6, 1>}, {pipeline_mode = #tpu.pipeline_mode<synchronous>, transform_indices = @transform_6, window_bounds = array<i64: 1, 128>}]} {
    %c0_i32 = arith.constant 0 : i32
    %0 = arith.cmpi eq, %arg0, %c0_i32 : i32
    %1 = arith.extui %0 : i1 to i32
    %c0_i32_0 = arith.constant 0 : i32
    %2 = arith.cmpi ne, %1, %c0_i32_0 : i32
    scf.if %2 {
      %cst_44 = arith.constant 0.000000e+00 : f32
      %128 = vector.broadcast %cst_44 : f32 to vector<1x128xf32>
      %c0_45 = arith.constant 0 : index
      %c0_46 = arith.constant 0 : index
      %129 = vector.load %arg7[%c0_45, %c0_46] : memref<1x128xf32, #tpu.memory_space<vmem>>, vector<1x128xf32>
      tpu.vector_store %arg7[%c0_45, %c0_46], %128 {strides = array<i32>} : memref<1x128xf32, #tpu.memory_space<vmem>>, vector<1x128xf32>,
    } else {
    }
    %c0 = arith.constant 0 : index
    %c0_1 = arith.constant 0 : index
    %3 = vector.load %arg3[%c0, %c0_1] : memref<96x48xbf16, #tpu.memory_space<vmem>>, vector<96x48xbf16>
    %c0_2 = arith.constant 0 : index
    %c0_3 = arith.constant 0 : index
    %4 = vector.load %arg1[%c0_2, %c0_3] : memref<48x128xbf16, #tpu.memory_space<vmem>>, vector<48x128xbf16>
    %cst = arith.constant dense<0.000000e+00> : vector<96x128xf32>
    %5 = tpu.matmul %3, %4, %cst {dimension_numbers = #tpu.dot_dimension_numbers<[1], [0], [0], [1], [0, 0, 1, 1], [], []>} : vector<96x48xbf16>, vector<48x128xbf16>, vector<96x128xf32> -> vector<96x128xf32>
    %c0_4 = arith.constant 0 : index
    %c0_5 = arith.constant 0 : index
    %6 = vector.load %arg4[%c0_4, %c0_5] : memref<96x1xf32, #tpu.memory_space<vmem>>, vector<96x1xf32>
    %7 = vector.broadcast %6 : vector<96x1xf32> to vector<96x128xf32>
    %8 = arith.addf %5, %7 : vector<96x128xf32>
    %cst_6 = arith.constant 0.000000e+00 : f32
    %9 = vector.broadcast %cst_6 : f32 to vector<96x128xf32>
    %10 = arith.maximumf %8, %9 : vector<96x128xf32>
    %c0_7 = arith.constant 0 : index
    %c0_8 = arith.constant 0 : index
    %11 = vector.load %arg5[%c0_7, %c0_8] : memref<6x96xf32, #tpu.memory_space<vmem>>, vector<6x96xf32>
    %cst_9 = arith.constant dense<0.000000e+00> : vector<6x128xf32>
    %12 = tpu.matmul %11, %10, %cst_9 {dimension_numbers = #tpu.dot_dimension_numbers<[1], [0], [0], [1], [0, 0, 1, 1], [], []>} : vector<6x96xf32>, vector<96x128xf32>, vector<6x128xf32> -> vector<6x128xf32>
    %c0_10 = arith.constant 0 : index
    %c0_11 = arith.constant 0 : index
    %13 = vector.load %arg6[%c0_10, %c0_11] : memref<6x1xf32, #tpu.memory_space<vmem>>, vector<6x1xf32>
    %14 = vector.broadcast %13 : vector<6x1xf32> to vector<6x128xf32>
    %15 = arith.addf %12, %14 : vector<6x128xf32>
    %c128_i32 = arith.constant 128 : i32
    %16 = arith.muli %arg0, %c128_i32 : i32
    %17 = tpu.iota {dimensions = array<i32: 1>} : vector<1x128xi32>
    %18 = vector.broadcast %16 : i32 to vector<1x128xi32>
    %19 = arith.addi %18, %17 : vector<1x128xi32>
    %c2_i32 = arith.constant 2 : i32
    %20 = vector.broadcast %c2_i32 : i32 to vector<1x128xi32>
    %21 = arith.cmpi slt, %19, %20 : vector<1x128xi32>
    %22 = arith.extui %21 : vector<1x128xi1> to vector<1x128xi32>
    %23 = arith.sitofp %22 : vector<1x128xi32> to vector<1x128xf32>
    %c0_12 = arith.constant 0 : index
    %c0_13 = arith.constant 0 : index
    %24 = vector.load %arg2[%c0_12, %c0_13] : memref<3x128xf32, #tpu.memory_space<vmem>>, vector<3x128xf32>
    %cst_14 = arith.constant 0.000000e+00 : f32
    %25 = vector.broadcast %cst_14 : f32 to vector<1x128xf32>
    %26 = vector.extract_strided_slice %15 {offsets = [0, 0], sizes = [1, 128], strides = [1, 1]} : vector<6x128xf32> to vector<1x128xf32>
    %27 = vector.extract_strided_slice %15 {offsets = [1, 0], sizes = [1, 128], strides = [1, 1]} : vector<6x128xf32> to vector<1x128xf32>
    %cst_15 = arith.constant -1.000000e+01 : f32
    %cst_16 = arith.constant 1.000000e+01 : f32
    %28 = vector.broadcast %cst_15 : f32 to vector<1x128xf32>
    %29 = arith.maximumf %28, %27 : vector<1x128xf32>
    %30 = vector.broadcast %cst_16 : f32 to vector<1x128xf32>
    %31 = arith.minimumf %30, %29 : vector<1x128xf32>
    %cst_17 = arith.constant 0.000000e+00 : f32
    %32 = vector.broadcast %cst_17 : f32 to vector<1x128xf32>
    %33 = arith.subf %32, %31 : vector<1x128xf32>
    %34 = math.exp %33 : vector<1x128xf32>
    %35 = vector.extract_strided_slice %24 {offsets = [0, 0], sizes = [1, 128], strides = [1, 1]} : vector<3x128xf32> to vector<1x128xf32>
    %36 = arith.subf %35, %26 : vector<1x128xf32>
    %cst_18 = arith.constant 5.000000e-01 : f32
    %37 = vector.broadcast %cst_18 : f32 to vector<1x128xf32>
    %38 = arith.addf %36, %37 : vector<1x128xf32>
    %39 = arith.mulf %38, %34 : vector<1x128xf32>
    %40 = arith.negf %39 : vector<1x128xf32>
    %41 = math.exp %40 : vector<1x128xf32>
    %cst_19 = arith.constant 1.000000e+00 : f32
    %42 = vector.broadcast %cst_19 : f32 to vector<1x128xf32>
    %43 = arith.addf %42, %41 : vector<1x128xf32>
    %44 = arith.divf %42, %43 : vector<1x128xf32>
    %cst_20 = arith.constant 5.000000e-01 : f32
    %45 = vector.broadcast %cst_20 : f32 to vector<1x128xf32>
    %46 = arith.subf %36, %45 : vector<1x128xf32>
    %47 = arith.mulf %46, %34 : vector<1x128xf32>
    %48 = arith.negf %47 : vector<1x128xf32>
    %49 = math.exp %48 : vector<1x128xf32>
    %cst_21 = arith.constant 1.000000e+00 : f32
    %50 = vector.broadcast %cst_21 : f32 to vector<1x128xf32>
    %51 = arith.addf %50, %49 : vector<1x128xf32>
    %52 = arith.divf %50, %51 : vector<1x128xf32>
    %53 = arith.subf %44, %52 : vector<1x128xf32>
    %cst_22 = arith.constant 9.99999971E-10 : f32
    %54 = vector.broadcast %cst_22 : f32 to vector<1x128xf32>
    %55 = arith.maximumf %53, %54 : vector<1x128xf32>
    %56 = math.log %55 : vector<1x128xf32>
    %57 = arith.subf %25, %56 : vector<1x128xf32>
    %58 = vector.extract_strided_slice %15 {offsets = [2, 0], sizes = [1, 128], strides = [1, 1]} : vector<6x128xf32> to vector<1x128xf32>
    %59 = vector.extract_strided_slice %15 {offsets = [3, 0], sizes = [1, 128], strides = [1, 1]} : vector<6x128xf32> to vector<1x128xf32>
    %cst_23 = arith.constant -1.000000e+01 : f32
    %cst_24 = arith.constant 1.000000e+01 : f32
    %60 = vector.broadcast %cst_23 : f32 to vector<1x128xf32>
    %61 = arith.maximumf %60, %59 : vector<1x128xf32>
    %62 = vector.broadcast %cst_24 : f32 to vector<1x128xf32>
    %63 = arith.minimumf %62, %61 : vector<1x128xf32>
    %cst_25 = arith.constant 0.000000e+00 : f32
    %64 = vector.broadcast %cst_25 : f32 to vector<1x128xf32>
    %65 = arith.subf %64, %63 : vector<1x128xf32>
    %66 = math.exp %65 : vector<1x128xf32>
    %67 = vector.extract_strided_slice %24 {offsets = [1, 0], sizes = [1, 128], strides = [1, 1]} : vector<3x128xf32> to vector<1x128xf32>
    %68 = arith.subf %67, %58 : vector<1x128xf32>
    %cst_26 = arith.constant 5.000000e-01 : f32
    %69 = vector.broadcast %cst_26 : f32 to vector<1x128xf32>
    %70 = arith.addf %68, %69 : vector<1x128xf32>
    %71 = arith.mulf %70, %66 : vector<1x128xf32>
    %72 = arith.negf %71 : vector<1x128xf32>
    %73 = math.exp %72 : vector<1x128xf32>
    %cst_27 = arith.constant 1.000000e+00 : f32
    %74 = vector.broadcast %cst_27 : f32 to vector<1x128xf32>
    %75 = arith.addf %74, %73 : vector<1x128xf32>
    %76 = arith.divf %74, %75 : vector<1x128xf32>
    %cst_28 = arith.constant 5.000000e-01 : f32
    %77 = vector.broadcast %cst_28 : f32 to vector<1x128xf32>
    %78 = arith.subf %68, %77 : vector<1x128xf32>
    %79 = arith.mulf %78, %66 : vector<1x128xf32>
    %80 = arith.negf %79 : vector<1x128xf32>
    %81 = math.exp %80 : vector<1x128xf32>
    %cst_29 = arith.constant 1.000000e+00 : f32
    %82 = vector.broadcast %cst_29 : f32 to vector<1x128xf32>
    %83 = arith.addf %82, %81 : vector<1x128xf32>
    %84 = arith.divf %82, %83 : vector<1x128xf32>
    %85 = arith.subf %76, %84 : vector<1x128xf32>
    %cst_30 = arith.constant 9.99999971E-10 : f32
    %86 = vector.broadcast %cst_30 : f32 to vector<1x128xf32>
    %87 = arith.maximumf %85, %86 : vector<1x128xf32>
    %88 = math.log %87 : vector<1x128xf32>
    %89 = arith.subf %57, %88 : vector<1x128xf32>
    %90 = vector.extract_strided_slice %15 {offsets = [4, 0], sizes = [1, 128], strides = [1, 1]} : vector<6x128xf32> to vector<1x128xf32>
    %91 = vector.extract_strided_slice %15 {offsets = [5, 0], sizes = [1, 128], strides = [1, 1]} : vector<6x128xf32> to vector<1x128xf32>
    %cst_31 = arith.constant -1.000000e+01 : f32
    %cst_32 = arith.constant 1.000000e+01 : f32
    %92 = vector.broadcast %cst_31 : f32 to vector<1x128xf32>
    %93 = arith.maximumf %92, %91 : vector<1x128xf32>
    %94 = vector.broadcast %cst_32 : f32 to vector<1x128xf32>
    %95 = arith.minimumf %94, %93 : vector<1x128xf32>
    %cst_33 = arith.constant 0.000000e+00 : f32
    %96 = vector.broadcast %cst_33 : f32 to vector<1x128xf32>
    %97 = arith.subf %96, %95 : vector<1x128xf32>
    %98 = math.exp %97 : vector<1x128xf32>
    %99 = vector.extract_strided_slice %24 {offsets = [2, 0], sizes = [1, 128], strides = [1, 1]} : vector<3x128xf32> to vector<1x128xf32>
    %100 = arith.subf %99, %90 : vector<1x128xf32>
    %cst_34 = arith.constant 5.000000e-01 : f32
    %101 = vector.broadcast %cst_34 : f32 to vector<1x128xf32>
    %102 = arith.addf %100, %101 : vector<1x128xf32>
    %103 = arith.mulf %102, %98 : vector<1x128xf32>
    %104 = arith.negf %103 : vector<1x128xf32>
    %105 = math.exp %104 : vector<1x128xf32>
    %cst_35 = arith.constant 1.000000e+00 : f32
    %106 = vector.broadcast %cst_35 : f32 to vector<1x128xf32>
    %107 = arith.addf %106, %105 : vector<1x128xf32>
    %108 = arith.divf %106, %107 : vector<1x128xf32>
    %cst_36 = arith.constant 5.000000e-01 : f32
    %109 = vector.broadcast %cst_36 : f32 to vector<1x128xf32>
    %110 = arith.subf %100, %109 : vector<1x128xf32>
    %111 = arith.mulf %110, %98 : vector<1x128xf32>
    %112 = arith.negf %111 : vector<1x128xf32>
    %113 = math.exp %112 : vector<1x128xf32>
    %cst_37 = arith.constant 1.000000e+00 : f32
    %114 = vector.broadcast %cst_37 : f32 to vector<1x128xf32>
    %115 = arith.addf %114, %113 : vector<1x128xf32>
    %116 = arith.divf %114, %115 : vector<1x128xf32>
    %117 = arith.subf %108, %116 : vector<1x128xf32>
    %cst_38 = arith.constant 9.99999971E-10 : f32
    %118 = vector.broadcast %cst_38 : f32 to vector<1x128xf32>
    %119 = arith.maximumf %117, %118 : vector<1x128xf32>
    %120 = math.log %119 : vector<1x128xf32>
    %121 = arith.subf %89, %120 : vector<1x128xf32>
    %c0_39 = arith.constant 0 : index
    %c0_40 = arith.constant 0 : index
    %122 = vector.load %arg7[%c0_39, %c0_40] : memref<1x128xf32, #tpu.memory_space<vmem>>, vector<1x128xf32>
    %cst_41 = arith.constant 1.44269502 : f32
    %123 = vector.broadcast %cst_41 : f32 to vector<1x128xf32>
    %124 = arith.mulf %23, %123 : vector<1x128xf32>
    %125 = arith.mulf %121, %124 : vector<1x128xf32>
    %126 = arith.addf %122, %125 : vector<1x128xf32>
    %c0_42 = arith.constant 0 : index
    %c0_43 = arith.constant 0 : index
    %127 = vector.load %arg7[%c0_42, %c0_43] : memref<1x128xf32, #tpu.memory_space<vmem>>, vector<1x128xf32>
    tpu.vector_store %arg7[%c0_42, %c0_43], %126 {strides = array<i32>} : memref<1x128xf32, #tpu.memory_space<vmem>>, vector<1x128xf32>,
    return
  }
  func.func @transform_0(%arg0: i32) -> (i32, i32) {
    %c0_i32 = arith.constant 0 : i32
    %c0_i32_0 = arith.constant 0 : i32
    return %c0_i32, %arg0 : i32, i32
  }
  func.func @transform_1(%arg0: i32) -> (i32, i32) {
    %c0_i32 = arith.constant 0 : i32
    %c0_i32_0 = arith.constant 0 : i32
    return %c0_i32, %arg0 : i32, i32
  }
  func.func @transform_2(%arg0: i32) -> (i32, i32) {
    %c0_i32 = arith.constant 0 : i32
    %c0_i32_0 = arith.constant 0 : i32
    %c0_i32_1 = arith.constant 0 : i32
    return %c0_i32, %c0_i32_0 : i32, i32
  }
  func.func @transform_3(%arg0: i32) -> (i32, i32) {
    %c0_i32 = arith.constant 0 : i32
    %c0_i32_0 = arith.constant 0 : i32
    %c0_i32_1 = arith.constant 0 : i32
    return %c0_i32, %c0_i32_0 : i32, i32
  }
  func.func @transform_4(%arg0: i32) -> (i32, i32) {
    %c0_i32 = arith.constant 0 : i32
    %c0_i32_0 = arith.constant 0 : i32
    %c0_i32_1 = arith.constant 0 : i32
    return %c0_i32, %c0_i32_0 : i32, i32
  }
  func.func @transform_5(%arg0: i32) -> (i32, i32) {
    %c0_i32 = arith.constant 0 : i32
    %c0_i32_0 = arith.constant 0 : i32
    %c0_i32_1 = arith.constant 0 : i32
    return %c0_i32, %c0_i32_0 : i32, i32
  }
  func.func @transform_6(%arg0: i32) -> (i32, i32) {
    %c0_i32 = arith.constant 0 : i32
    %c0_i32_0 = arith.constant 0 : i32
    %c0_i32_1 = arith.constant 0 : i32
    return %c0_i32, %c0_i32_0 : i32, i32
  }
}

module attributes {stable_mosaic.version = 11 : i64} {
  func.func @_coding_kernel(%arg0: i32, %arg1: memref<48x128xbf16, #tpu.memory_space<vmem>>, %arg2: memref<3x128xf32, #tpu.memory_space<vmem>>, %arg3: memref<96x48xbf16, #tpu.memory_space<vmem>>, %arg4: memref<96x1xf32, #tpu.memory_space<vmem>>, %arg5: memref<6x96xf32, #tpu.memory_space<vmem>>, %arg6: memref<6x1xf32, #tpu.memory_space<vmem>>, %arg7: memref<1x128xf32, #tpu.memory_space<vmem>>) attributes {dimension_semantics = [#tpu.dimension_semantics<arbitrary>], iteration_bounds = array<i64: 1>, scalar_prefetch = 0 : i64, scratch_operands = 0 : i64, tpu.core_type = #tpu.core_type<tc>, window_params = [{transform_indices = @transform_0, window_bounds = array<i64: 48, 128>}, {transform_indices = @transform_1, window_bounds = array<i64: 3, 128>}, {pipeline_mode = #tpu.pipeline_mode<synchronous>, transform_indices = @transform_2, window_bounds = array<i64: 96, 48>}, {pipeline_mode = #tpu.pipeline_mode<synchronous>, transform_indices = @transform_3, window_bounds = array<i64: 96, 1>}, {pipeline_mode = #tpu.pipeline_mode<synchronous>, transform_indices = @transform_4, window_bounds = array<i64: 6, 96>}, {pipeline_mode = #tpu.pipeline_mode<synchronous>, transform_indices = @transform_5, window_bounds = array<i64: 6, 1>}, {pipeline_mode = #tpu.pipeline_mode<synchronous>, transform_indices = @transform_6, window_bounds = array<i64: 1, 128>}]} {
    %c0_i32 = arith.constant 0 : i32
    %0 = arith.cmpi eq, %arg0, %c0_i32 : i32
    %1 = arith.extui %0 : i1 to i32
    %c0_i32_0 = arith.constant 0 : i32
    %2 = arith.cmpi ne, %1, %c0_i32_0 : i32
    scf.if %2 {
      %cst_44 = arith.constant 0.000000e+00 : f32
      %128 = vector.broadcast %cst_44 : f32 to vector<1x128xf32>
      %c0_45 = arith.constant 0 : index
      %c0_46 = arith.constant 0 : index
      %129 = vector.load %arg7[%c0_45, %c0_46] : memref<1x128xf32, #tpu.memory_space<vmem>>, vector<1x128xf32>
      tpu.vector_store %arg7[%c0_45, %c0_46], %128 {strides = array<i32>} : memref<1x128xf32, #tpu.memory_space<vmem>>, vector<1x128xf32>,
    } else {
    }
    %c0 = arith.constant 0 : index
    %c0_1 = arith.constant 0 : index
    %3 = vector.load %arg3[%c0, %c0_1] : memref<96x48xbf16, #tpu.memory_space<vmem>>, vector<96x48xbf16>
    %c0_2 = arith.constant 0 : index
    %c0_3 = arith.constant 0 : index
    %4 = vector.load %arg1[%c0_2, %c0_3] : memref<48x128xbf16, #tpu.memory_space<vmem>>, vector<48x128xbf16>
    %cst = arith.constant dense<0.000000e+00> : vector<96x128xf32>
    %5 = tpu.matmul %3, %4, %cst {dimension_numbers = #tpu.dot_dimension_numbers<[1], [0], [0], [1], [0, 0, 1, 1], [], []>} : vector<96x48xbf16>, vector<48x128xbf16>, vector<96x128xf32> -> vector<96x128xf32>
    %c0_4 = arith.constant 0 : index
    %c0_5 = arith.constant 0 : index
    %6 = vector.load %arg4[%c0_4, %c0_5] : memref<96x1xf32, #tpu.memory_space<vmem>>, vector<96x1xf32>
    %7 = vector.broadcast %6 : vector<96x1xf32> to vector<96x128xf32>
    %8 = arith.addf %5, %7 : vector<96x128xf32>
    %cst_6 = arith.constant 0.000000e+00 : f32
    %9 = vector.broadcast %cst_6 : f32 to vector<96x128xf32>
    %10 = arith.maximumf %8, %9 : vector<96x128xf32>
    %c0_7 = arith.constant 0 : index
    %c0_8 = arith.constant 0 : index
    %11 = vector.load %arg5[%c0_7, %c0_8] : memref<6x96xf32, #tpu.memory_space<vmem>>, vector<6x96xf32>
    %cst_9 = arith.constant dense<0.000000e+00> : vector<6x128xf32>
    %12 = tpu.matmul %11, %10, %cst_9 {dimension_numbers = #tpu.dot_dimension_numbers<[1], [0], [0], [1], [0, 0, 1, 1], [], []>} : vector<6x96xf32>, vector<96x128xf32>, vector<6x128xf32> -> vector<6x128xf32>
    %c0_10 = arith.constant 0 : index
    %c0_11 = arith.constant 0 : index
    %13 = vector.load %arg6[%c0_10, %c0_11] : memref<6x1xf32, #tpu.memory_space<vmem>>, vector<6x1xf32>
    %14 = vector.broadcast %13 : vector<6x1xf32> to vector<6x128xf32>
    %15 = arith.addf %12, %14 : vector<6x128xf32>
    %c128_i32 = arith.constant 128 : i32
    %16 = arith.muli %arg0, %c128_i32 : i32
    %17 = tpu.iota {dimensions = array<i32: 1>} : vector<1x128xi32>
    %18 = vector.broadcast %16 : i32 to vector<1x128xi32>
    %19 = arith.addi %18, %17 : vector<1x128xi32>
    %c8_i32 = arith.constant 8 : i32
    %20 = vector.broadcast %c8_i32 : i32 to vector<1x128xi32>
    %21 = arith.cmpi slt, %19, %20 : vector<1x128xi32>
    %22 = arith.extui %21 : vector<1x128xi1> to vector<1x128xi32>
    %23 = arith.sitofp %22 : vector<1x128xi32> to vector<1x128xf32>
    %c0_12 = arith.constant 0 : index
    %c0_13 = arith.constant 0 : index
    %24 = vector.load %arg2[%c0_12, %c0_13] : memref<3x128xf32, #tpu.memory_space<vmem>>, vector<3x128xf32>
    %cst_14 = arith.constant 0.000000e+00 : f32
    %25 = vector.broadcast %cst_14 : f32 to vector<1x128xf32>
    %26 = vector.extract_strided_slice %15 {offsets = [0, 0], sizes = [1, 128], strides = [1, 1]} : vector<6x128xf32> to vector<1x128xf32>
    %27 = vector.extract_strided_slice %15 {offsets = [1, 0], sizes = [1, 128], strides = [1, 1]} : vector<6x128xf32> to vector<1x128xf32>
    %cst_15 = arith.constant -1.000000e+01 : f32
    %cst_16 = arith.constant 1.000000e+01 : f32
    %28 = vector.broadcast %cst_15 : f32 to vector<1x128xf32>
    %29 = arith.maximumf %28, %27 : vector<1x128xf32>
    %30 = vector.broadcast %cst_16 : f32 to vector<1x128xf32>
    %31 = arith.minimumf %30, %29 : vector<1x128xf32>
    %cst_17 = arith.constant 0.000000e+00 : f32
    %32 = vector.broadcast %cst_17 : f32 to vector<1x128xf32>
    %33 = arith.subf %32, %31 : vector<1x128xf32>
    %34 = math.exp %33 : vector<1x128xf32>
    %35 = vector.extract_strided_slice %24 {offsets = [0, 0], sizes = [1, 128], strides = [1, 1]} : vector<3x128xf32> to vector<1x128xf32>
    %36 = arith.subf %35, %26 : vector<1x128xf32>
    %cst_18 = arith.constant 5.000000e-01 : f32
    %37 = vector.broadcast %cst_18 : f32 to vector<1x128xf32>
    %38 = arith.addf %36, %37 : vector<1x128xf32>
    %39 = arith.mulf %38, %34 : vector<1x128xf32>
    %40 = arith.negf %39 : vector<1x128xf32>
    %41 = math.exp %40 : vector<1x128xf32>
    %cst_19 = arith.constant 1.000000e+00 : f32
    %42 = vector.broadcast %cst_19 : f32 to vector<1x128xf32>
    %43 = arith.addf %42, %41 : vector<1x128xf32>
    %44 = arith.divf %42, %43 : vector<1x128xf32>
    %cst_20 = arith.constant 5.000000e-01 : f32
    %45 = vector.broadcast %cst_20 : f32 to vector<1x128xf32>
    %46 = arith.subf %36, %45 : vector<1x128xf32>
    %47 = arith.mulf %46, %34 : vector<1x128xf32>
    %48 = arith.negf %47 : vector<1x128xf32>
    %49 = math.exp %48 : vector<1x128xf32>
    %cst_21 = arith.constant 1.000000e+00 : f32
    %50 = vector.broadcast %cst_21 : f32 to vector<1x128xf32>
    %51 = arith.addf %50, %49 : vector<1x128xf32>
    %52 = arith.divf %50, %51 : vector<1x128xf32>
    %53 = arith.subf %44, %52 : vector<1x128xf32>
    %cst_22 = arith.constant 9.99999971E-10 : f32
    %54 = vector.broadcast %cst_22 : f32 to vector<1x128xf32>
    %55 = arith.maximumf %53, %54 : vector<1x128xf32>
    %56 = math.log %55 : vector<1x128xf32>
    %57 = arith.subf %25, %56 : vector<1x128xf32>
    %58 = vector.extract_strided_slice %15 {offsets = [2, 0], sizes = [1, 128], strides = [1, 1]} : vector<6x128xf32> to vector<1x128xf32>
    %59 = vector.extract_strided_slice %15 {offsets = [3, 0], sizes = [1, 128], strides = [1, 1]} : vector<6x128xf32> to vector<1x128xf32>
    %cst_23 = arith.constant -1.000000e+01 : f32
    %cst_24 = arith.constant 1.000000e+01 : f32
    %60 = vector.broadcast %cst_23 : f32 to vector<1x128xf32>
    %61 = arith.maximumf %60, %59 : vector<1x128xf32>
    %62 = vector.broadcast %cst_24 : f32 to vector<1x128xf32>
    %63 = arith.minimumf %62, %61 : vector<1x128xf32>
    %cst_25 = arith.constant 0.000000e+00 : f32
    %64 = vector.broadcast %cst_25 : f32 to vector<1x128xf32>
    %65 = arith.subf %64, %63 : vector<1x128xf32>
    %66 = math.exp %65 : vector<1x128xf32>
    %67 = vector.extract_strided_slice %24 {offsets = [1, 0], sizes = [1, 128], strides = [1, 1]} : vector<3x128xf32> to vector<1x128xf32>
    %68 = arith.subf %67, %58 : vector<1x128xf32>
    %cst_26 = arith.constant 5.000000e-01 : f32
    %69 = vector.broadcast %cst_26 : f32 to vector<1x128xf32>
    %70 = arith.addf %68, %69 : vector<1x128xf32>
    %71 = arith.mulf %70, %66 : vector<1x128xf32>
    %72 = arith.negf %71 : vector<1x128xf32>
    %73 = math.exp %72 : vector<1x128xf32>
    %cst_27 = arith.constant 1.000000e+00 : f32
    %74 = vector.broadcast %cst_27 : f32 to vector<1x128xf32>
    %75 = arith.addf %74, %73 : vector<1x128xf32>
    %76 = arith.divf %74, %75 : vector<1x128xf32>
    %cst_28 = arith.constant 5.000000e-01 : f32
    %77 = vector.broadcast %cst_28 : f32 to vector<1x128xf32>
    %78 = arith.subf %68, %77 : vector<1x128xf32>
    %79 = arith.mulf %78, %66 : vector<1x128xf32>
    %80 = arith.negf %79 : vector<1x128xf32>
    %81 = math.exp %80 : vector<1x128xf32>
    %cst_29 = arith.constant 1.000000e+00 : f32
    %82 = vector.broadcast %cst_29 : f32 to vector<1x128xf32>
    %83 = arith.addf %82, %81 : vector<1x128xf32>
    %84 = arith.divf %82, %83 : vector<1x128xf32>
    %85 = arith.subf %76, %84 : vector<1x128xf32>
    %cst_30 = arith.constant 9.99999971E-10 : f32
    %86 = vector.broadcast %cst_30 : f32 to vector<1x128xf32>
    %87 = arith.maximumf %85, %86 : vector<1x128xf32>
    %88 = math.log %87 : vector<1x128xf32>
    %89 = arith.subf %57, %88 : vector<1x128xf32>
    %90 = vector.extract_strided_slice %15 {offsets = [4, 0], sizes = [1, 128], strides = [1, 1]} : vector<6x128xf32> to vector<1x128xf32>
    %91 = vector.extract_strided_slice %15 {offsets = [5, 0], sizes = [1, 128], strides = [1, 1]} : vector<6x128xf32> to vector<1x128xf32>
    %cst_31 = arith.constant -1.000000e+01 : f32
    %cst_32 = arith.constant 1.000000e+01 : f32
    %92 = vector.broadcast %cst_31 : f32 to vector<1x128xf32>
    %93 = arith.maximumf %92, %91 : vector<1x128xf32>
    %94 = vector.broadcast %cst_32 : f32 to vector<1x128xf32>
    %95 = arith.minimumf %94, %93 : vector<1x128xf32>
    %cst_33 = arith.constant 0.000000e+00 : f32
    %96 = vector.broadcast %cst_33 : f32 to vector<1x128xf32>
    %97 = arith.subf %96, %95 : vector<1x128xf32>
    %98 = math.exp %97 : vector<1x128xf32>
    %99 = vector.extract_strided_slice %24 {offsets = [2, 0], sizes = [1, 128], strides = [1, 1]} : vector<3x128xf32> to vector<1x128xf32>
    %100 = arith.subf %99, %90 : vector<1x128xf32>
    %cst_34 = arith.constant 5.000000e-01 : f32
    %101 = vector.broadcast %cst_34 : f32 to vector<1x128xf32>
    %102 = arith.addf %100, %101 : vector<1x128xf32>
    %103 = arith.mulf %102, %98 : vector<1x128xf32>
    %104 = arith.negf %103 : vector<1x128xf32>
    %105 = math.exp %104 : vector<1x128xf32>
    %cst_35 = arith.constant 1.000000e+00 : f32
    %106 = vector.broadcast %cst_35 : f32 to vector<1x128xf32>
    %107 = arith.addf %106, %105 : vector<1x128xf32>
    %108 = arith.divf %106, %107 : vector<1x128xf32>
    %cst_36 = arith.constant 5.000000e-01 : f32
    %109 = vector.broadcast %cst_36 : f32 to vector<1x128xf32>
    %110 = arith.subf %100, %109 : vector<1x128xf32>
    %111 = arith.mulf %110, %98 : vector<1x128xf32>
    %112 = arith.negf %111 : vector<1x128xf32>
    %113 = math.exp %112 : vector<1x128xf32>
    %cst_37 = arith.constant 1.000000e+00 : f32
    %114 = vector.broadcast %cst_37 : f32 to vector<1x128xf32>
    %115 = arith.addf %114, %113 : vector<1x128xf32>
    %116 = arith.divf %114, %115 : vector<1x128xf32>
    %117 = arith.subf %108, %116 : vector<1x128xf32>
    %cst_38 = arith.constant 9.99999971E-10 : f32
    %118 = vector.broadcast %cst_38 : f32 to vector<1x128xf32>
    %119 = arith.maximumf %117, %118 : vector<1x128xf32>
    %120 = math.log %119 : vector<1x128xf32>
    %121 = arith.subf %89, %120 : vector<1x128xf32>
    %c0_39 = arith.constant 0 : index
    %c0_40 = arith.constant 0 : index
    %122 = vector.load %arg7[%c0_39, %c0_40] : memref<1x128xf32, #tpu.memory_space<vmem>>, vector<1x128xf32>
    %cst_41 = arith.constant 1.44269502 : f32
    %123 = vector.broadcast %cst_41 : f32 to vector<1x128xf32>
    %124 = arith.mulf %23, %123 : vector<1x128xf32>
    %125 = arith.mulf %121, %124 : vector<1x128xf32>
    %126 = arith.addf %122, %125 : vector<1x128xf32>
    %c0_42 = arith.constant 0 : index
    %c0_43 = arith.constant 0 : index
    %127 = vector.load %arg7[%c0_42, %c0_43] : memref<1x128xf32, #tpu.memory_space<vmem>>, vector<1x128xf32>
    tpu.vector_store %arg7[%c0_42, %c0_43], %126 {strides = array<i32>} : memref<1x128xf32, #tpu.memory_space<vmem>>, vector<1x128xf32>,
    return
  }
  func.func @transform_0(%arg0: i32) -> (i32, i32) {
    %c0_i32 = arith.constant 0 : i32
    %c0_i32_0 = arith.constant 0 : i32
    return %c0_i32, %arg0 : i32, i32
  }
  func.func @transform_1(%arg0: i32) -> (i32, i32) {
    %c0_i32 = arith.constant 0 : i32
    %c0_i32_0 = arith.constant 0 : i32
    return %c0_i32, %arg0 : i32, i32
  }
  func.func @transform_2(%arg0: i32) -> (i32, i32) {
    %c0_i32 = arith.constant 0 : i32
    %c0_i32_0 = arith.constant 0 : i32
    %c0_i32_1 = arith.constant 0 : i32
    return %c0_i32, %c0_i32_0 : i32, i32
  }
  func.func @transform_3(%arg0: i32) -> (i32, i32) {
    %c0_i32 = arith.constant 0 : i32
    %c0_i32_0 = arith.constant 0 : i32
    %c0_i32_1 = arith.constant 0 : i32
    return %c0_i32, %c0_i32_0 : i32, i32
  }
  func.func @transform_4(%arg0: i32) -> (i32, i32) {
    %c0_i32 = arith.constant 0 : i32
    %c0_i32_0 = arith.constant 0 : i32
    %c0_i32_1 = arith.constant 0 : i32
    return %c0_i32, %c0_i32_0 : i32, i32
  }
  func.func @transform_5(%arg0: i32) -> (i32, i32) {
    %c0_i32 = arith.constant 0 : i32
    %c0_i32_0 = arith.constant 0 : i32
    %c0_i32_1 = arith.constant 0 : i32
    return %c0_i32, %c0_i32_0 : i32, i32
  }
  func.func @transform_6(%arg0: i32) -> (i32, i32) {
    %c0_i32 = arith.constant 0 : i32
    %c0_i32_0 = arith.constant 0 : i32
    %c0_i32_1 = arith.constant 0 : i32
    return %c0_i32, %c0_i32_0 : i32, i32
  }
}

module attributes {stable_mosaic.version = 11 : i64} {
  func.func @_coding_kernel(%arg0: i32, %arg1: memref<48x128xbf16, #tpu.memory_space<vmem>>, %arg2: memref<3x128xf32, #tpu.memory_space<vmem>>, %arg3: memref<96x48xbf16, #tpu.memory_space<vmem>>, %arg4: memref<96x1xf32, #tpu.memory_space<vmem>>, %arg5: memref<6x96xf32, #tpu.memory_space<vmem>>, %arg6: memref<6x1xf32, #tpu.memory_space<vmem>>, %arg7: memref<1x128xf32, #tpu.memory_space<vmem>>) attributes {dimension_semantics = [#tpu.dimension_semantics<arbitrary>], iteration_bounds = array<i64: 1>, scalar_prefetch = 0 : i64, scratch_operands = 0 : i64, tpu.core_type = #tpu.core_type<tc>, window_params = [{transform_indices = @transform_0, window_bounds = array<i64: 48, 128>}, {transform_indices = @transform_1, window_bounds = array<i64: 3, 128>}, {pipeline_mode = #tpu.pipeline_mode<synchronous>, transform_indices = @transform_2, window_bounds = array<i64: 96, 48>}, {pipeline_mode = #tpu.pipeline_mode<synchronous>, transform_indices = @transform_3, window_bounds = array<i64: 96, 1>}, {pipeline_mode = #tpu.pipeline_mode<synchronous>, transform_indices = @transform_4, window_bounds = array<i64: 6, 96>}, {pipeline_mode = #tpu.pipeline_mode<synchronous>, transform_indices = @transform_5, window_bounds = array<i64: 6, 1>}, {pipeline_mode = #tpu.pipeline_mode<synchronous>, transform_indices = @transform_6, window_bounds = array<i64: 1, 128>}]} {
    %c0_i32 = arith.constant 0 : i32
    %0 = arith.cmpi eq, %arg0, %c0_i32 : i32
    %1 = arith.extui %0 : i1 to i32
    %c0_i32_0 = arith.constant 0 : i32
    %2 = arith.cmpi ne, %1, %c0_i32_0 : i32
    scf.if %2 {
      %cst_44 = arith.constant 0.000000e+00 : f32
      %128 = vector.broadcast %cst_44 : f32 to vector<1x128xf32>
      %c0_45 = arith.constant 0 : index
      %c0_46 = arith.constant 0 : index
      %129 = vector.load %arg7[%c0_45, %c0_46] : memref<1x128xf32, #tpu.memory_space<vmem>>, vector<1x128xf32>
      tpu.vector_store %arg7[%c0_45, %c0_46], %128 {strides = array<i32>} : memref<1x128xf32, #tpu.memory_space<vmem>>, vector<1x128xf32>,
    } else {
    }
    %c0 = arith.constant 0 : index
    %c0_1 = arith.constant 0 : index
    %3 = vector.load %arg3[%c0, %c0_1] : memref<96x48xbf16, #tpu.memory_space<vmem>>, vector<96x48xbf16>
    %c0_2 = arith.constant 0 : index
    %c0_3 = arith.constant 0 : index
    %4 = vector.load %arg1[%c0_2, %c0_3] : memref<48x128xbf16, #tpu.memory_space<vmem>>, vector<48x128xbf16>
    %cst = arith.constant dense<0.000000e+00> : vector<96x128xf32>
    %5 = tpu.matmul %3, %4, %cst {dimension_numbers = #tpu.dot_dimension_numbers<[1], [0], [0], [1], [0, 0, 1, 1], [], []>} : vector<96x48xbf16>, vector<48x128xbf16>, vector<96x128xf32> -> vector<96x128xf32>
    %c0_4 = arith.constant 0 : index
    %c0_5 = arith.constant 0 : index
    %6 = vector.load %arg4[%c0_4, %c0_5] : memref<96x1xf32, #tpu.memory_space<vmem>>, vector<96x1xf32>
    %7 = vector.broadcast %6 : vector<96x1xf32> to vector<96x128xf32>
    %8 = arith.addf %5, %7 : vector<96x128xf32>
    %cst_6 = arith.constant 0.000000e+00 : f32
    %9 = vector.broadcast %cst_6 : f32 to vector<96x128xf32>
    %10 = arith.maximumf %8, %9 : vector<96x128xf32>
    %c0_7 = arith.constant 0 : index
    %c0_8 = arith.constant 0 : index
    %11 = vector.load %arg5[%c0_7, %c0_8] : memref<6x96xf32, #tpu.memory_space<vmem>>, vector<6x96xf32>
    %cst_9 = arith.constant dense<0.000000e+00> : vector<6x128xf32>
    %12 = tpu.matmul %11, %10, %cst_9 {dimension_numbers = #tpu.dot_dimension_numbers<[1], [0], [0], [1], [0, 0, 1, 1], [], []>} : vector<6x96xf32>, vector<96x128xf32>, vector<6x128xf32> -> vector<6x128xf32>
    %c0_10 = arith.constant 0 : index
    %c0_11 = arith.constant 0 : index
    %13 = vector.load %arg6[%c0_10, %c0_11] : memref<6x1xf32, #tpu.memory_space<vmem>>, vector<6x1xf32>
    %14 = vector.broadcast %13 : vector<6x1xf32> to vector<6x128xf32>
    %15 = arith.addf %12, %14 : vector<6x128xf32>
    %c128_i32 = arith.constant 128 : i32
    %16 = arith.muli %arg0, %c128_i32 : i32
    %17 = tpu.iota {dimensions = array<i32: 1>} : vector<1x128xi32>
    %18 = vector.broadcast %16 : i32 to vector<1x128xi32>
    %19 = arith.addi %18, %17 : vector<1x128xi32>
    %c32_i32 = arith.constant 32 : i32
    %20 = vector.broadcast %c32_i32 : i32 to vector<1x128xi32>
    %21 = arith.cmpi slt, %19, %20 : vector<1x128xi32>
    %22 = arith.extui %21 : vector<1x128xi1> to vector<1x128xi32>
    %23 = arith.sitofp %22 : vector<1x128xi32> to vector<1x128xf32>
    %c0_12 = arith.constant 0 : index
    %c0_13 = arith.constant 0 : index
    %24 = vector.load %arg2[%c0_12, %c0_13] : memref<3x128xf32, #tpu.memory_space<vmem>>, vector<3x128xf32>
    %cst_14 = arith.constant 0.000000e+00 : f32
    %25 = vector.broadcast %cst_14 : f32 to vector<1x128xf32>
    %26 = vector.extract_strided_slice %15 {offsets = [0, 0], sizes = [1, 128], strides = [1, 1]} : vector<6x128xf32> to vector<1x128xf32>
    %27 = vector.extract_strided_slice %15 {offsets = [1, 0], sizes = [1, 128], strides = [1, 1]} : vector<6x128xf32> to vector<1x128xf32>
    %cst_15 = arith.constant -1.000000e+01 : f32
    %cst_16 = arith.constant 1.000000e+01 : f32
    %28 = vector.broadcast %cst_15 : f32 to vector<1x128xf32>
    %29 = arith.maximumf %28, %27 : vector<1x128xf32>
    %30 = vector.broadcast %cst_16 : f32 to vector<1x128xf32>
    %31 = arith.minimumf %30, %29 : vector<1x128xf32>
    %cst_17 = arith.constant 0.000000e+00 : f32
    %32 = vector.broadcast %cst_17 : f32 to vector<1x128xf32>
    %33 = arith.subf %32, %31 : vector<1x128xf32>
    %34 = math.exp %33 : vector<1x128xf32>
    %35 = vector.extract_strided_slice %24 {offsets = [0, 0], sizes = [1, 128], strides = [1, 1]} : vector<3x128xf32> to vector<1x128xf32>
    %36 = arith.subf %35, %26 : vector<1x128xf32>
    %cst_18 = arith.constant 5.000000e-01 : f32
    %37 = vector.broadcast %cst_18 : f32 to vector<1x128xf32>
    %38 = arith.addf %36, %37 : vector<1x128xf32>
    %39 = arith.mulf %38, %34 : vector<1x128xf32>
    %40 = arith.negf %39 : vector<1x128xf32>
    %41 = math.exp %40 : vector<1x128xf32>
    %cst_19 = arith.constant 1.000000e+00 : f32
    %42 = vector.broadcast %cst_19 : f32 to vector<1x128xf32>
    %43 = arith.addf %42, %41 : vector<1x128xf32>
    %44 = arith.divf %42, %43 : vector<1x128xf32>
    %cst_20 = arith.constant 5.000000e-01 : f32
    %45 = vector.broadcast %cst_20 : f32 to vector<1x128xf32>
    %46 = arith.subf %36, %45 : vector<1x128xf32>
    %47 = arith.mulf %46, %34 : vector<1x128xf32>
    %48 = arith.negf %47 : vector<1x128xf32>
    %49 = math.exp %48 : vector<1x128xf32>
    %cst_21 = arith.constant 1.000000e+00 : f32
    %50 = vector.broadcast %cst_21 : f32 to vector<1x128xf32>
    %51 = arith.addf %50, %49 : vector<1x128xf32>
    %52 = arith.divf %50, %51 : vector<1x128xf32>
    %53 = arith.subf %44, %52 : vector<1x128xf32>
    %cst_22 = arith.constant 9.99999971E-10 : f32
    %54 = vector.broadcast %cst_22 : f32 to vector<1x128xf32>
    %55 = arith.maximumf %53, %54 : vector<1x128xf32>
    %56 = math.log %55 : vector<1x128xf32>
    %57 = arith.subf %25, %56 : vector<1x128xf32>
    %58 = vector.extract_strided_slice %15 {offsets = [2, 0], sizes = [1, 128], strides = [1, 1]} : vector<6x128xf32> to vector<1x128xf32>
    %59 = vector.extract_strided_slice %15 {offsets = [3, 0], sizes = [1, 128], strides = [1, 1]} : vector<6x128xf32> to vector<1x128xf32>
    %cst_23 = arith.constant -1.000000e+01 : f32
    %cst_24 = arith.constant 1.000000e+01 : f32
    %60 = vector.broadcast %cst_23 : f32 to vector<1x128xf32>
    %61 = arith.maximumf %60, %59 : vector<1x128xf32>
    %62 = vector.broadcast %cst_24 : f32 to vector<1x128xf32>
    %63 = arith.minimumf %62, %61 : vector<1x128xf32>
    %cst_25 = arith.constant 0.000000e+00 : f32
    %64 = vector.broadcast %cst_25 : f32 to vector<1x128xf32>
    %65 = arith.subf %64, %63 : vector<1x128xf32>
    %66 = math.exp %65 : vector<1x128xf32>
    %67 = vector.extract_strided_slice %24 {offsets = [1, 0], sizes = [1, 128], strides = [1, 1]} : vector<3x128xf32> to vector<1x128xf32>
    %68 = arith.subf %67, %58 : vector<1x128xf32>
    %cst_26 = arith.constant 5.000000e-01 : f32
    %69 = vector.broadcast %cst_26 : f32 to vector<1x128xf32>
    %70 = arith.addf %68, %69 : vector<1x128xf32>
    %71 = arith.mulf %70, %66 : vector<1x128xf32>
    %72 = arith.negf %71 : vector<1x128xf32>
    %73 = math.exp %72 : vector<1x128xf32>
    %cst_27 = arith.constant 1.000000e+00 : f32
    %74 = vector.broadcast %cst_27 : f32 to vector<1x128xf32>
    %75 = arith.addf %74, %73 : vector<1x128xf32>
    %76 = arith.divf %74, %75 : vector<1x128xf32>
    %cst_28 = arith.constant 5.000000e-01 : f32
    %77 = vector.broadcast %cst_28 : f32 to vector<1x128xf32>
    %78 = arith.subf %68, %77 : vector<1x128xf32>
    %79 = arith.mulf %78, %66 : vector<1x128xf32>
    %80 = arith.negf %79 : vector<1x128xf32>
    %81 = math.exp %80 : vector<1x128xf32>
    %cst_29 = arith.constant 1.000000e+00 : f32
    %82 = vector.broadcast %cst_29 : f32 to vector<1x128xf32>
    %83 = arith.addf %82, %81 : vector<1x128xf32>
    %84 = arith.divf %82, %83 : vector<1x128xf32>
    %85 = arith.subf %76, %84 : vector<1x128xf32>
    %cst_30 = arith.constant 9.99999971E-10 : f32
    %86 = vector.broadcast %cst_30 : f32 to vector<1x128xf32>
    %87 = arith.maximumf %85, %86 : vector<1x128xf32>
    %88 = math.log %87 : vector<1x128xf32>
    %89 = arith.subf %57, %88 : vector<1x128xf32>
    %90 = vector.extract_strided_slice %15 {offsets = [4, 0], sizes = [1, 128], strides = [1, 1]} : vector<6x128xf32> to vector<1x128xf32>
    %91 = vector.extract_strided_slice %15 {offsets = [5, 0], sizes = [1, 128], strides = [1, 1]} : vector<6x128xf32> to vector<1x128xf32>
    %cst_31 = arith.constant -1.000000e+01 : f32
    %cst_32 = arith.constant 1.000000e+01 : f32
    %92 = vector.broadcast %cst_31 : f32 to vector<1x128xf32>
    %93 = arith.maximumf %92, %91 : vector<1x128xf32>
    %94 = vector.broadcast %cst_32 : f32 to vector<1x128xf32>
    %95 = arith.minimumf %94, %93 : vector<1x128xf32>
    %cst_33 = arith.constant 0.000000e+00 : f32
    %96 = vector.broadcast %cst_33 : f32 to vector<1x128xf32>
    %97 = arith.subf %96, %95 : vector<1x128xf32>
    %98 = math.exp %97 : vector<1x128xf32>
    %99 = vector.extract_strided_slice %24 {offsets = [2, 0], sizes = [1, 128], strides = [1, 1]} : vector<3x128xf32> to vector<1x128xf32>
    %100 = arith.subf %99, %90 : vector<1x128xf32>
    %cst_34 = arith.constant 5.000000e-01 : f32
    %101 = vector.broadcast %cst_34 : f32 to vector<1x128xf32>
    %102 = arith.addf %100, %101 : vector<1x128xf32>
    %103 = arith.mulf %102, %98 : vector<1x128xf32>
    %104 = arith.negf %103 : vector<1x128xf32>
    %105 = math.exp %104 : vector<1x128xf32>
    %cst_35 = arith.constant 1.000000e+00 : f32
    %106 = vector.broadcast %cst_35 : f32 to vector<1x128xf32>
    %107 = arith.addf %106, %105 : vector<1x128xf32>
    %108 = arith.divf %106, %107 : vector<1x128xf32>
    %cst_36 = arith.constant 5.000000e-01 : f32
    %109 = vector.broadcast %cst_36 : f32 to vector<1x128xf32>
    %110 = arith.subf %100, %109 : vector<1x128xf32>
    %111 = arith.mulf %110, %98 : vector<1x128xf32>
    %112 = arith.negf %111 : vector<1x128xf32>
    %113 = math.exp %112 : vector<1x128xf32>
    %cst_37 = arith.constant 1.000000e+00 : f32
    %114 = vector.broadcast %cst_37 : f32 to vector<1x128xf32>
    %115 = arith.addf %114, %113 : vector<1x128xf32>
    %116 = arith.divf %114, %115 : vector<1x128xf32>
    %117 = arith.subf %108, %116 : vector<1x128xf32>
    %cst_38 = arith.constant 9.99999971E-10 : f32
    %118 = vector.broadcast %cst_38 : f32 to vector<1x128xf32>
    %119 = arith.maximumf %117, %118 : vector<1x128xf32>
    %120 = math.log %119 : vector<1x128xf32>
    %121 = arith.subf %89, %120 : vector<1x128xf32>
    %c0_39 = arith.constant 0 : index
    %c0_40 = arith.constant 0 : index
    %122 = vector.load %arg7[%c0_39, %c0_40] : memref<1x128xf32, #tpu.memory_space<vmem>>, vector<1x128xf32>
    %cst_41 = arith.constant 1.44269502 : f32
    %123 = vector.broadcast %cst_41 : f32 to vector<1x128xf32>
    %124 = arith.mulf %23, %123 : vector<1x128xf32>
    %125 = arith.mulf %121, %124 : vector<1x128xf32>
    %126 = arith.addf %122, %125 : vector<1x128xf32>
    %c0_42 = arith.constant 0 : index
    %c0_43 = arith.constant 0 : index
    %127 = vector.load %arg7[%c0_42, %c0_43] : memref<1x128xf32, #tpu.memory_space<vmem>>, vector<1x128xf32>
    tpu.vector_store %arg7[%c0_42, %c0_43], %126 {strides = array<i32>} : memref<1x128xf32, #tpu.memory_space<vmem>>, vector<1x128xf32>,
    return
  }
  func.func @transform_0(%arg0: i32) -> (i32, i32) {
    %c0_i32 = arith.constant 0 : i32
    %c0_i32_0 = arith.constant 0 : i32
    return %c0_i32, %arg0 : i32, i32
  }
  func.func @transform_1(%arg0: i32) -> (i32, i32) {
    %c0_i32 = arith.constant 0 : i32
    %c0_i32_0 = arith.constant 0 : i32
    return %c0_i32, %arg0 : i32, i32
  }
  func.func @transform_2(%arg0: i32) -> (i32, i32) {
    %c0_i32 = arith.constant 0 : i32
    %c0_i32_0 = arith.constant 0 : i32
    %c0_i32_1 = arith.constant 0 : i32
    return %c0_i32, %c0_i32_0 : i32, i32
  }
  func.func @transform_3(%arg0: i32) -> (i32, i32) {
    %c0_i32 = arith.constant 0 : i32
    %c0_i32_0 = arith.constant 0 : i32
    %c0_i32_1 = arith.constant 0 : i32
    return %c0_i32, %c0_i32_0 : i32, i32
  }
  func.func @transform_4(%arg0: i32) -> (i32, i32) {
    %c0_i32 = arith.constant 0 : i32
    %c0_i32_0 = arith.constant 0 : i32
    %c0_i32_1 = arith.constant 0 : i32
    return %c0_i32, %c0_i32_0 : i32, i32
  }
  func.func @transform_5(%arg0: i32) -> (i32, i32) {
    %c0_i32 = arith.constant 0 : i32
    %c0_i32_0 = arith.constant 0 : i32
    %c0_i32_1 = arith.constant 0 : i32
    return %c0_i32, %c0_i32_0 : i32, i32
  }
  func.func @transform_6(%arg0: i32) -> (i32, i32) {
    %c0_i32 = arith.constant 0 : i32
    %c0_i32_0 = arith.constant 0 : i32
    %c0_i32_1 = arith.constant 0 : i32
    return %c0_i32, %c0_i32_0 : i32, i32
  }
}

module attributes {stable_mosaic.version = 11 : i64} {
  func.func @_coding_kernel(%arg0: i32, %arg1: memref<48x128xbf16, #tpu.memory_space<vmem>>, %arg2: memref<3x128xf32, #tpu.memory_space<vmem>>, %arg3: memref<96x48xbf16, #tpu.memory_space<vmem>>, %arg4: memref<96x1xf32, #tpu.memory_space<vmem>>, %arg5: memref<6x96xf32, #tpu.memory_space<vmem>>, %arg6: memref<6x1xf32, #tpu.memory_space<vmem>>, %arg7: memref<1x128xf32, #tpu.memory_space<vmem>>) attributes {dimension_semantics = [#tpu.dimension_semantics<arbitrary>], iteration_bounds = array<i64: 1>, scalar_prefetch = 0 : i64, scratch_operands = 0 : i64, tpu.core_type = #tpu.core_type<tc>, window_params = [{transform_indices = @transform_0, window_bounds = array<i64: 48, 128>}, {transform_indices = @transform_1, window_bounds = array<i64: 3, 128>}, {pipeline_mode = #tpu.pipeline_mode<synchronous>, transform_indices = @transform_2, window_bounds = array<i64: 96, 48>}, {pipeline_mode = #tpu.pipeline_mode<synchronous>, transform_indices = @transform_3, window_bounds = array<i64: 96, 1>}, {pipeline_mode = #tpu.pipeline_mode<synchronous>, transform_indices = @transform_4, window_bounds = array<i64: 6, 96>}, {pipeline_mode = #tpu.pipeline_mode<synchronous>, transform_indices = @transform_5, window_bounds = array<i64: 6, 1>}, {pipeline_mode = #tpu.pipeline_mode<synchronous>, transform_indices = @transform_6, window_bounds = array<i64: 1, 128>}]} {
    %c0_i32 = arith.constant 0 : i32
    %0 = arith.cmpi eq, %arg0, %c0_i32 : i32
    %1 = arith.extui %0 : i1 to i32
    %c0_i32_0 = arith.constant 0 : i32
    %2 = arith.cmpi ne, %1, %c0_i32_0 : i32
    scf.if %2 {
      %cst_45 = arith.constant 0.000000e+00 : f32
      %128 = vector.broadcast %cst_45 : f32 to vector<1x128xf32>
      %c0_46 = arith.constant 0 : index
      %c0_47 = arith.constant 0 : index
      %129 = vector.load %arg7[%c0_46, %c0_47] : memref<1x128xf32, #tpu.memory_space<vmem>>, vector<1x128xf32>
      tpu.vector_store %arg7[%c0_46, %c0_47], %128 {strides = array<i32>} : memref<1x128xf32, #tpu.memory_space<vmem>>, vector<1x128xf32>,
    } else {
    }
    %c0 = arith.constant 0 : index
    %c0_1 = arith.constant 0 : index
    %3 = vector.load %arg3[%c0, %c0_1] : memref<96x48xbf16, #tpu.memory_space<vmem>>, vector<96x48xbf16>
    %c0_2 = arith.constant 0 : index
    %c0_3 = arith.constant 0 : index
    %4 = vector.load %arg1[%c0_2, %c0_3] : memref<48x128xbf16, #tpu.memory_space<vmem>>, vector<48x128xbf16>
    %cst = arith.constant dense<0.000000e+00> : vector<96x128xf32>
    %5 = tpu.matmul %3, %4, %cst {dimension_numbers = #tpu.dot_dimension_numbers<[1], [0], [0], [1], [0, 0, 1, 1], [], []>} : vector<96x48xbf16>, vector<48x128xbf16>, vector<96x128xf32> -> vector<96x128xf32>
    %c0_4 = arith.constant 0 : index
    %c0_5 = arith.constant 0 : index
    %6 = vector.load %arg4[%c0_4, %c0_5] : memref<96x1xf32, #tpu.memory_space<vmem>>, vector<96x1xf32>
    %7 = vector.broadcast %6 : vector<96x1xf32> to vector<96x128xf32>
    %8 = arith.addf %5, %7 : vector<96x128xf32>
    %cst_6 = arith.constant 0.000000e+00 : f32
    %9 = vector.broadcast %cst_6 : f32 to vector<96x128xf32>
    %10 = arith.maximumf %8, %9 : vector<96x128xf32>
    %c0_7 = arith.constant 0 : index
    %c0_8 = arith.constant 0 : index
    %11 = vector.load %arg5[%c0_7, %c0_8] : memref<6x96xf32, #tpu.memory_space<vmem>>, vector<6x96xf32>
    %cst_9 = arith.constant dense<0.000000e+00> : vector<6x128xf32>
    %12 = tpu.matmul %11, %10, %cst_9 {dimension_numbers = #tpu.dot_dimension_numbers<[1], [0], [0], [1], [0, 0, 1, 1], [], []>} : vector<6x96xf32>, vector<96x128xf32>, vector<6x128xf32> -> vector<6x128xf32>
    %c0_10 = arith.constant 0 : index
    %c0_11 = arith.constant 0 : index
    %13 = vector.load %arg6[%c0_10, %c0_11] : memref<6x1xf32, #tpu.memory_space<vmem>>, vector<6x1xf32>
    %14 = vector.broadcast %13 : vector<6x1xf32> to vector<6x128xf32>
    %15 = arith.addf %12, %14 : vector<6x128xf32>
    %c128_i32 = arith.constant 128 : i32
    %16 = arith.muli %arg0, %c128_i32 : i32
    %17 = tpu.iota {dimensions = array<i32: 1>} : vector<1x128xi32>
    %18 = vector.broadcast %16 : i32 to vector<1x128xi32>
    %19 = arith.addi %18, %17 : vector<1x128xi32>
    %c128_i32_12 = arith.constant 128 : i32
    %20 = vector.broadcast %c128_i32_12 : i32 to vector<1x128xi32>
    %21 = arith.cmpi slt, %19, %20 : vector<1x128xi32>
    %22 = arith.extui %21 : vector<1x128xi1> to vector<1x128xi32>
    %23 = arith.sitofp %22 : vector<1x128xi32> to vector<1x128xf32>
    %c0_13 = arith.constant 0 : index
    %c0_14 = arith.constant 0 : index
    %24 = vector.load %arg2[%c0_13, %c0_14] : memref<3x128xf32, #tpu.memory_space<vmem>>, vector<3x128xf32>
    %cst_15 = arith.constant 0.000000e+00 : f32
    %25 = vector.broadcast %cst_15 : f32 to vector<1x128xf32>
    %26 = vector.extract_strided_slice %15 {offsets = [0, 0], sizes = [1, 128], strides = [1, 1]} : vector<6x128xf32> to vector<1x128xf32>
    %27 = vector.extract_strided_slice %15 {offsets = [1, 0], sizes = [1, 128], strides = [1, 1]} : vector<6x128xf32> to vector<1x128xf32>
    %cst_16 = arith.constant -1.000000e+01 : f32
    %cst_17 = arith.constant 1.000000e+01 : f32
    %28 = vector.broadcast %cst_16 : f32 to vector<1x128xf32>
    %29 = arith.maximumf %28, %27 : vector<1x128xf32>
    %30 = vector.broadcast %cst_17 : f32 to vector<1x128xf32>
    %31 = arith.minimumf %30, %29 : vector<1x128xf32>
    %cst_18 = arith.constant 0.000000e+00 : f32
    %32 = vector.broadcast %cst_18 : f32 to vector<1x128xf32>
    %33 = arith.subf %32, %31 : vector<1x128xf32>
    %34 = math.exp %33 : vector<1x128xf32>
    %35 = vector.extract_strided_slice %24 {offsets = [0, 0], sizes = [1, 128], strides = [1, 1]} : vector<3x128xf32> to vector<1x128xf32>
    %36 = arith.subf %35, %26 : vector<1x128xf32>
    %cst_19 = arith.constant 5.000000e-01 : f32
    %37 = vector.broadcast %cst_19 : f32 to vector<1x128xf32>
    %38 = arith.addf %36, %37 : vector<1x128xf32>
    %39 = arith.mulf %38, %34 : vector<1x128xf32>
    %40 = arith.negf %39 : vector<1x128xf32>
    %41 = math.exp %40 : vector<1x128xf32>
    %cst_20 = arith.constant 1.000000e+00 : f32
    %42 = vector.broadcast %cst_20 : f32 to vector<1x128xf32>
    %43 = arith.addf %42, %41 : vector<1x128xf32>
    %44 = arith.divf %42, %43 : vector<1x128xf32>
    %cst_21 = arith.constant 5.000000e-01 : f32
    %45 = vector.broadcast %cst_21 : f32 to vector<1x128xf32>
    %46 = arith.subf %36, %45 : vector<1x128xf32>
    %47 = arith.mulf %46, %34 : vector<1x128xf32>
    %48 = arith.negf %47 : vector<1x128xf32>
    %49 = math.exp %48 : vector<1x128xf32>
    %cst_22 = arith.constant 1.000000e+00 : f32
    %50 = vector.broadcast %cst_22 : f32 to vector<1x128xf32>
    %51 = arith.addf %50, %49 : vector<1x128xf32>
    %52 = arith.divf %50, %51 : vector<1x128xf32>
    %53 = arith.subf %44, %52 : vector<1x128xf32>
    %cst_23 = arith.constant 9.99999971E-10 : f32
    %54 = vector.broadcast %cst_23 : f32 to vector<1x128xf32>
    %55 = arith.maximumf %53, %54 : vector<1x128xf32>
    %56 = math.log %55 : vector<1x128xf32>
    %57 = arith.subf %25, %56 : vector<1x128xf32>
    %58 = vector.extract_strided_slice %15 {offsets = [2, 0], sizes = [1, 128], strides = [1, 1]} : vector<6x128xf32> to vector<1x128xf32>
    %59 = vector.extract_strided_slice %15 {offsets = [3, 0], sizes = [1, 128], strides = [1, 1]} : vector<6x128xf32> to vector<1x128xf32>
    %cst_24 = arith.constant -1.000000e+01 : f32
    %cst_25 = arith.constant 1.000000e+01 : f32
    %60 = vector.broadcast %cst_24 : f32 to vector<1x128xf32>
    %61 = arith.maximumf %60, %59 : vector<1x128xf32>
    %62 = vector.broadcast %cst_25 : f32 to vector<1x128xf32>
    %63 = arith.minimumf %62, %61 : vector<1x128xf32>
    %cst_26 = arith.constant 0.000000e+00 : f32
    %64 = vector.broadcast %cst_26 : f32 to vector<1x128xf32>
    %65 = arith.subf %64, %63 : vector<1x128xf32>
    %66 = math.exp %65 : vector<1x128xf32>
    %67 = vector.extract_strided_slice %24 {offsets = [1, 0], sizes = [1, 128], strides = [1, 1]} : vector<3x128xf32> to vector<1x128xf32>
    %68 = arith.subf %67, %58 : vector<1x128xf32>
    %cst_27 = arith.constant 5.000000e-01 : f32
    %69 = vector.broadcast %cst_27 : f32 to vector<1x128xf32>
    %70 = arith.addf %68, %69 : vector<1x128xf32>
    %71 = arith.mulf %70, %66 : vector<1x128xf32>
    %72 = arith.negf %71 : vector<1x128xf32>
    %73 = math.exp %72 : vector<1x128xf32>
    %cst_28 = arith.constant 1.000000e+00 : f32
    %74 = vector.broadcast %cst_28 : f32 to vector<1x128xf32>
    %75 = arith.addf %74, %73 : vector<1x128xf32>
    %76 = arith.divf %74, %75 : vector<1x128xf32>
    %cst_29 = arith.constant 5.000000e-01 : f32
    %77 = vector.broadcast %cst_29 : f32 to vector<1x128xf32>
    %78 = arith.subf %68, %77 : vector<1x128xf32>
    %79 = arith.mulf %78, %66 : vector<1x128xf32>
    %80 = arith.negf %79 : vector<1x128xf32>
    %81 = math.exp %80 : vector<1x128xf32>
    %cst_30 = arith.constant 1.000000e+00 : f32
    %82 = vector.broadcast %cst_30 : f32 to vector<1x128xf32>
    %83 = arith.addf %82, %81 : vector<1x128xf32>
    %84 = arith.divf %82, %83 : vector<1x128xf32>
    %85 = arith.subf %76, %84 : vector<1x128xf32>
    %cst_31 = arith.constant 9.99999971E-10 : f32
    %86 = vector.broadcast %cst_31 : f32 to vector<1x128xf32>
    %87 = arith.maximumf %85, %86 : vector<1x128xf32>
    %88 = math.log %87 : vector<1x128xf32>
    %89 = arith.subf %57, %88 : vector<1x128xf32>
    %90 = vector.extract_strided_slice %15 {offsets = [4, 0], sizes = [1, 128], strides = [1, 1]} : vector<6x128xf32> to vector<1x128xf32>
    %91 = vector.extract_strided_slice %15 {offsets = [5, 0], sizes = [1, 128], strides = [1, 1]} : vector<6x128xf32> to vector<1x128xf32>
    %cst_32 = arith.constant -1.000000e+01 : f32
    %cst_33 = arith.constant 1.000000e+01 : f32
    %92 = vector.broadcast %cst_32 : f32 to vector<1x128xf32>
    %93 = arith.maximumf %92, %91 : vector<1x128xf32>
    %94 = vector.broadcast %cst_33 : f32 to vector<1x128xf32>
    %95 = arith.minimumf %94, %93 : vector<1x128xf32>
    %cst_34 = arith.constant 0.000000e+00 : f32
    %96 = vector.broadcast %cst_34 : f32 to vector<1x128xf32>
    %97 = arith.subf %96, %95 : vector<1x128xf32>
    %98 = math.exp %97 : vector<1x128xf32>
    %99 = vector.extract_strided_slice %24 {offsets = [2, 0], sizes = [1, 128], strides = [1, 1]} : vector<3x128xf32> to vector<1x128xf32>
    %100 = arith.subf %99, %90 : vector<1x128xf32>
    %cst_35 = arith.constant 5.000000e-01 : f32
    %101 = vector.broadcast %cst_35 : f32 to vector<1x128xf32>
    %102 = arith.addf %100, %101 : vector<1x128xf32>
    %103 = arith.mulf %102, %98 : vector<1x128xf32>
    %104 = arith.negf %103 : vector<1x128xf32>
    %105 = math.exp %104 : vector<1x128xf32>
    %cst_36 = arith.constant 1.000000e+00 : f32
    %106 = vector.broadcast %cst_36 : f32 to vector<1x128xf32>
    %107 = arith.addf %106, %105 : vector<1x128xf32>
    %108 = arith.divf %106, %107 : vector<1x128xf32>
    %cst_37 = arith.constant 5.000000e-01 : f32
    %109 = vector.broadcast %cst_37 : f32 to vector<1x128xf32>
    %110 = arith.subf %100, %109 : vector<1x128xf32>
    %111 = arith.mulf %110, %98 : vector<1x128xf32>
    %112 = arith.negf %111 : vector<1x128xf32>
    %113 = math.exp %112 : vector<1x128xf32>
    %cst_38 = arith.constant 1.000000e+00 : f32
    %114 = vector.broadcast %cst_38 : f32 to vector<1x128xf32>
    %115 = arith.addf %114, %113 : vector<1x128xf32>
    %116 = arith.divf %114, %115 : vector<1x128xf32>
    %117 = arith.subf %108, %116 : vector<1x128xf32>
    %cst_39 = arith.constant 9.99999971E-10 : f32
    %118 = vector.broadcast %cst_39 : f32 to vector<1x128xf32>
    %119 = arith.maximumf %117, %118 : vector<1x128xf32>
    %120 = math.log %119 : vector<1x128xf32>
    %121 = arith.subf %89, %120 : vector<1x128xf32>
    %c0_40 = arith.constant 0 : index
    %c0_41 = arith.constant 0 : index
    %122 = vector.load %arg7[%c0_40, %c0_41] : memref<1x128xf32, #tpu.memory_space<vmem>>, vector<1x128xf32>
    %cst_42 = arith.constant 1.44269502 : f32
    %123 = vector.broadcast %cst_42 : f32 to vector<1x128xf32>
    %124 = arith.mulf %23, %123 : vector<1x128xf32>
    %125 = arith.mulf %121, %124 : vector<1x128xf32>
    %126 = arith.addf %122, %125 : vector<1x128xf32>
    %c0_43 = arith.constant 0 : index
    %c0_44 = arith.constant 0 : index
    %127 = vector.load %arg7[%c0_43, %c0_44] : memref<1x128xf32, #tpu.memory_space<vmem>>, vector<1x128xf32>
    tpu.vector_store %arg7[%c0_43, %c0_44], %126 {strides = array<i32>} : memref<1x128xf32, #tpu.memory_space<vmem>>, vector<1x128xf32>,
    return
  }
  func.func @transform_0(%arg0: i32) -> (i32, i32) {
    %c0_i32 = arith.constant 0 : i32
    %c0_i32_0 = arith.constant 0 : i32
    return %c0_i32, %arg0 : i32, i32
  }
  func.func @transform_1(%arg0: i32) -> (i32, i32) {
    %c0_i32 = arith.constant 0 : i32
    %c0_i32_0 = arith.constant 0 : i32
    return %c0_i32, %arg0 : i32, i32
  }
  func.func @transform_2(%arg0: i32) -> (i32, i32) {
    %c0_i32 = arith.constant 0 : i32
    %c0_i32_0 = arith.constant 0 : i32
    %c0_i32_1 = arith.constant 0 : i32
    return %c0_i32, %c0_i32_0 : i32, i32
  }
  func.func @transform_3(%arg0: i32) -> (i32, i32) {
    %c0_i32 = arith.constant 0 : i32
    %c0_i32_0 = arith.constant 0 : i32
    %c0_i32_1 = arith.constant 0 : i32
    return %c0_i32, %c0_i32_0 : i32, i32
  }
  func.func @transform_4(%arg0: i32) -> (i32, i32) {
    %c0_i32 = arith.constant 0 : i32
    %c0_i32_0 = arith.constant 0 : i32
    %c0_i32_1 = arith.constant 0 : i32
    return %c0_i32, %c0_i32_0 : i32, i32
  }
  func.func @transform_5(%arg0: i32) -> (i32, i32) {
    %c0_i32 = arith.constant 0 : i32
    %c0_i32_0 = arith.constant 0 : i32
    %c0_i32_1 = arith.constant 0 : i32
    return %c0_i32, %c0_i32_0 : i32, i32
  }
  func.func @transform_6(%arg0: i32) -> (i32, i32) {
    %c0_i32 = arith.constant 0 : i32
    %c0_i32_0 = arith.constant 0 : i32
    %c0_i32_1 = arith.constant 0 : i32
    return %c0_i32, %c0_i32_0 : i32, i32
  }
}

</mosaic_0001>

<bundles_post_ra>
// kernel: squeeze.98
= control target key start
LH: loop header
LB: loop body
LE: loop exit
PB: predicated region body
PF: predicated region fallthrough
CT: control target
= control target key end

     0   :  { %vm34_vm0 = vcmask 15360   ;;  %s68_s10 = smov 2   ;;  %s69_s11 = smov 4   ;;  %vm40_vm1 = vcmask 64560   ;;  %vm46_vm2 = vcmask 48160   ;;  %vm52_vm3 = vcmask 31760   ;;  %s90_s0 = inlined_call_operand.vmem [shape: bf16[2,1,2,2], index: 0, kind: input, shape index: {}]   ;;  %s91_s1 = inlined_call_operand.vmem [shape: bf16[1,8], index: 1, kind: output, shape index: {}]  }
   0x1   :  { %v62_v0 = vld [vmem:[%s90_s0 + $0x1] sm:$0x1]  ;;  %v29_v1 = vld [vmem:[%s90_s0] sm:$0x1]  ;;  %s67_s0 = smov 6   ;;  %v70_v12 = vmov 0.0  }
   0x2   :  { %v16_v2 = vunpack.c.l.bf16 %v62_v0  ;;  %v30_v3 = vunpack.c.l.bf16 %v29_v1 }
   0x4   :  { %19 = vst [vmem:[#allocation1 + $0x8] sm:$0x3] %v16_v2  ;;  %32 = vst [vmem:[#allocation1] sm:$0x3] %v30_v3 }
   0xb   :  { %v37_v4 = vld [vmem:[#allocation1 + $0x9] sm:$0x1]   ;;  %v49_v5 = vld [vmem:[#allocation1 + $0x1] sm:$0x1]   ;;  %v33_v6 = vld [vmem:[#allocation1] sm:$0x1]  }
   0xc   :  { %38 = vrot.lane.b32.xlu0 %v37_v4, %s67_s0  ;;  %50 = vrot.lane.b32.xlu1 %v49_v5, %s68_s10  ;;  %v43_v7 = vld [vmem:[#allocation1 + $0x8] sm:$0x1]   ;;  %35 = vst.msk [vmem:[#allocation0] sm:$0x1] %vm34_vm0, %v33_v6  }
  0x10   :  { %44 = vrot.lane.b32.xlu0 %v43_v7, %s69_s11 }
  0x7e   :  { %v39_v8 = vpop.permute.xlu0 %38   ;;  %v51_v9 = vpop.permute.xlu1 %50  }
  0x7f   :  { %41 = vst.msk [vmem:[#allocation0] sm:$0x1] %vm40_vm1, %v39_v8  }
  0x82   :  { %v45_v10 = vpop.permute.xlu0 %44  }
  0x83   :  { %47 = vst.msk [vmem:[#allocation0] sm:$0x1] %vm46_vm2, %v45_v10  }
  0x84   :  { %53 = vst.msk [vmem:[#allocation0] sm:$0x1] %vm52_vm3, %v51_v9  }
  0x8b   :  { %v58_v11 = vld [vmem:[#allocation0] sm:$0x3] }
  0x8c   :  { %v59_v13 = vpack.c.bf16 %v70_v12, %v58_v11 }
  0x8e   :  { %61 = vst [vmem:[%s91_s1] sm:$0x1] %v59_v13 }

// kernel: squeeze.94
= control target key start
LH: loop header
LB: loop body
LE: loop exit
PB: predicated region body
PF: predicated region fallthrough
CT: control target
= control target key end

     0   :  { %vm34_vm0 = vcmask 15360   ;;  %s68_s10 = smov 2   ;;  %s69_s11 = smov 4   ;;  %vm40_vm1 = vcmask 64560   ;;  %vm46_vm2 = vcmask 48160   ;;  %vm52_vm3 = vcmask 31760   ;;  %s90_s0 = inlined_call_operand.vmem [shape: bf16[2,1,2,1,2], index: 0, kind: input, shape index: {}]   ;;  %s91_s1 = inlined_call_operand.vmem [shape: bf16[1,8], index: 1, kind: output, shape index: {}]  }
   0x1   :  { %v62_v0 = vld [vmem:[%s90_s0 + $0x1] sm:$0x1]  ;;  %v29_v1 = vld [vmem:[%s90_s0] sm:$0x1]  ;;  %s67_s0 = smov 6   ;;  %v70_v12 = vmov 0.0  }
   0x2   :  { %v16_v2 = vunpack.c.l.bf16 %v62_v0  ;;  %v30_v3 = vunpack.c.l.bf16 %v29_v1 }
   0x4   :  { %19 = vst [vmem:[#allocation1 + $0x8] sm:$0x3] %v16_v2  ;;  %32 = vst [vmem:[#allocation1] sm:$0x3] %v30_v3 }
   0xb   :  { %v37_v4 = vld [vmem:[#allocation1 + $0x9] sm:$0x1]   ;;  %v49_v5 = vld [vmem:[#allocation1 + $0x1] sm:$0x1]   ;;  %v33_v6 = vld [vmem:[#allocation1] sm:$0x1]  }
   0xc   :  { %38 = vrot.lane.b32.xlu0 %v37_v4, %s67_s0  ;;  %50 = vrot.lane.b32.xlu1 %v49_v5, %s68_s10  ;;  %v43_v7 = vld [vmem:[#allocation1 + $0x8] sm:$0x1]   ;;  %35 = vst.msk [vmem:[#allocation0] sm:$0x1] %vm34_vm0, %v33_v6  }
  0x10   :  { %44 = vrot.lane.b32.xlu0 %v43_v7, %s69_s11 }
  0x7e   :  { %v39_v8 = vpop.permute.xlu0 %38   ;;  %v51_v9 = vpop.permute.xlu1 %50  }
  0x7f   :  { %41 = vst.msk [vmem:[#allocation0] sm:$0x1] %vm40_vm1, %v39_v8  }
  0x82   :  { %v45_v10 = vpop.permute.xlu0 %44  }
  0x83   :  { %47 = vst.msk [vmem:[#allocation0] sm:$0x1] %vm46_vm2, %v45_v10  }
  0x84   :  { %53 = vst.msk [vmem:[#allocation0] sm:$0x1] %vm52_vm3, %v51_v9  }
  0x8b   :  { %v58_v11 = vld [vmem:[#allocation0] sm:$0x3] }
  0x8c   :  { %v59_v13 = vpack.c.bf16 %v70_v12, %v58_v11 }
  0x8e   :  { %61 = vst [vmem:[%s91_s1] sm:$0x1] %v59_v13 }

// kernel: squeeze.220
= control target key start
LH: loop header
LB: loop body
LE: loop exit
PB: predicated region body
PF: predicated region fallthrough
CT: control target
= control target key end

     0   :  { %vm11_vm0 = vcmask 15360   ;;  %s42_s10 = smov 2   ;;  %s43_s11 = smov 4   ;;  %vm17_vm1 = vcmask 64560   ;;  %vm23_vm2 = vcmask 48160   ;;  %vm29_vm3 = vcmask 31760   ;;  %s63_s0 = inlined_call_operand.vmem [shape: f32[2,1,2,2], index: 0, kind: input, shape index: {}]   ;;  %s64_s1 = inlined_call_operand.vmem [shape: f32[1,8], index: 1, kind: output, shape index: {}]  }
   0x1   :  { %v37_v0 = vld [vmem:[%s63_s0 + $0x2] sm:$0x3]  ;;  %v8_v1 = vld [vmem:[%s63_s0] sm:$0x3]  ;;  %s41_s0 = smov 6  }
   0x2   :  { %7 = vst [vmem:[#allocation1 + $0x8] sm:$0x3] %v37_v0  ;;  %9 = vst [vmem:[#allocation1] sm:$0x3] %v8_v1 }
   0x9   :  { %v14_v2 = vld [vmem:[#allocation1 + $0x9] sm:$0x1]   ;;  %v26_v3 = vld [vmem:[#allocation1 + $0x1] sm:$0x1]   ;;  %v10_v4 = vld [vmem:[#allocation1] sm:$0x1]  }
   0xa   :  { %15 = vrot.lane.b32.xlu0 %v14_v2, %s41_s0  ;;  %27 = vrot.lane.b32.xlu1 %v26_v3, %s42_s10  ;;  %v20_v5 = vld [vmem:[#allocation1 + $0x8] sm:$0x1]   ;;  %12 = vst.msk [vmem:[#allocation0] sm:$0x1] %vm11_vm0, %v10_v4  }
   0xe   :  { %21 = vrot.lane.b32.xlu0 %v20_v5, %s43_s11 }
  0x7c   :  { %v16_v6 = vpop.permute.xlu0 %15   ;;  %v28_v7 = vpop.permute.xlu1 %27  }
  0x7d   :  { %18 = vst.msk [vmem:[#allocation0] sm:$0x1] %vm17_vm1, %v16_v6  }
  0x80   :  { %v22_v8 = vpop.permute.xlu0 %21  }
  0x81   :  { %24 = vst.msk [vmem:[#allocation0] sm:$0x1] %vm23_vm2, %v22_v8  }
  0x82   :  { %30 = vst.msk [vmem:[#allocation0] sm:$0x1] %vm29_vm3, %v28_v7  }
  0x89   :  { %v34_v9 = vld [vmem:[#allocation0] sm:$0x1] }
  0x8a   :  { %36 = vst [vmem:[%s64_s1] sm:$0x1] %v34_v9 }

// kernel: model_forward.6
= control target key start
LH: loop header
LB: loop body
LE: loop exit
PB: predicated region body
PF: predicated region fallthrough
CT: control target
= control target key end

     0   :  { %v626_v1 = vmov 0   ;;  %vm167_vm0 = vcmask 392192   ;;  %v627_v23 = vmov 0.0|0.0   ;;  %v628_v24 = vmov 0.0   ;;  %s761_s0 = inlined_call_operand.vmem [shape: bf16[48,128], index: 0, kind: input, shape index: {}]   ;;  %s762_s2 = inlined_call_operand.vmem [shape: bf16[96,48], index: 2, kind: input, shape index: {}]   ;;  %s763_s3 = inlined_call_operand.vmem [shape: f32[96,1], index: 3, kind: input, shape index: {}]   ;;  %s764_s5 = inlined_call_operand.vmem [shape: f32[6,1], index: 5, kind: input, shape index: {}]   ;;  %s765_s6 = inlined_call_operand.vmem [shape: f32[1,128], index: 6, kind: output, shape index: {}]   ;;  %s766_s4 = inlined_call_operand.vmem [shape: f32[6,96], index: 4, kind: input, shape index: {}]   ;;  %s767_s1 = inlined_call_operand.vmem [shape: f32[3,128], index: 1, kind: input, shape index: {}]  }
   0x1   :  { %v585_v0 = vld [vmem:[%s761_s0] sm:$0xff]   ;;  %583 = vset.pattern.permute.xlu0 %v626_v1  ;;  %584 = vset.pattern.permute.xlu1 %v626_v1  ;;  %v586_v2 = vld [vmem:[%s761_s0 + $0x8] sm:$0xff]   ;;  %v587_v4 = vld [vmem:[%s761_s0 + $0x10] sm:$0xff]   ;;  %28 = vst [vmem:[%s765_s6] sm:$0x1] %v628_v24  ;;  %vm629_vm1 = vmmov 0   ;;  %vm286_vm2 = vcmask 785408  }
   0x2   :  { %516 = vmatprep.subr.bf16.mxu0 %v585_v0  ;;  %v588_v3 = vld [vmem:[%s762_s2] sm:$0xff]   ;;  %v49_v6 = vld [vmem:[%s763_s3 + $0x10] sm:$0xff]  ;;  %v589_v7 = vld [vmem:[%s762_s2 + $0x8] sm:$0xff]   ;;  %561 = vmatprep.subr.bf16.mxu1 %v627_v23 }
   0x3   :  { %517 = vmatpush3.bf16.msra.mxu0 %v585_v0  ;;  %522 = vmatprep.mubr.msk.bf16.mxu0 %vm167_vm0, %v588_v3  ;;  %v47_v5 = vld [vmem:[%s763_s3] sm:$0xff]  ;;  %v590_v8 = vld [vmem:[%s762_s2 + $0x10] sm:$0xff]   ;;  %v48_v9 = vld [vmem:[%s763_s3 + $0x8] sm:$0xff] }
   0x4   :  { %518 = vmatprep.subr.bf16.mxu0 %v586_v2  ;;  %61 = vperm.xlu0 %583, %v47_v5   ;;  %v50_v10 = vld [vmem:[%s763_s3 + $0x18] sm:$0xff]  ;;  %v51_v11 = vld [vmem:[%s763_s3 + $0x20] sm:$0xff]  ;;  %v52_v12 = vld [vmem:[%s763_s3 + $0x28] sm:$0xff] }
   0x5   :  { %71 = vperm.xlu1 %584, %v49_v6   ;;  %v591_v13 = vld [vmem:[%s762_s2 + $0x18] sm:$0xff]   ;;  %v592_v14 = vld [vmem:[%s762_s2 + $0x20] sm:$0xff]   ;;  %v53_v15 = vld [vmem:[%s763_s3 + $0x30] sm:$0xff]  ;;  %558 = vmatprep.mubr.msk.f32.mxu1 %vm629_vm1, %v628_v24 }
   0x6   :  { %v54_v16 = vld [vmem:[%s763_s3 + $0x38] sm:$0xff]  ;;  %v55_v17 = vld [vmem:[%s763_s3 + $0x40] sm:$0xff]  ;;  %v56_v18 = vld [vmem:[%s763_s3 + $0x48] sm:$0xff] }
   0x7   :  { %519 = vmatpush3.bf16.msra.mxu0 %v586_v2  ;;  %v593_v19 = vld [vmem:[%s762_s2 + $0x28] sm:$0xff]   ;;  %v57_v20 = vld [vmem:[%s763_s3 + $0x50] sm:$0xff]  ;;  %v58_v21 = vld [vmem:[%s763_s3 + $0x58] sm:$0xff] }
   0x8   :  { %520 = vmatprep.subr.bf16.mxu0 %v587_v4  ;;  %66 = vperm.xlu0 %583, %v48_v9   ;;  %v280_v22 = vld [vmem:[%s764_s5] sm:$0x3f] }
   0x9   :  { %76 = vperm.xlu1 %584, %v50_v10  }
   0xb   :  { %521 = vmatpush3.bf16.msra.mxu0 %v587_v4 }
   0xc   :  { %81 = vperm.xlu0 %583, %v51_v11  }
   0xd   :  { %86 = vperm.xlu1 %584, %v52_v12  }
   0xe   :  { %523 = vmatmul.mubr.msk.bf16.vlgmr.msra.gmra.mrb[0].mxu0 %vm167_vm0, %v589_v7 }
   0xf   :  { %526 = vmatprep.mubr.msk.bf16.mxu0 %vm167_vm0, %v590_v8 }
  0x10   :  { %91 = vperm.xlu0 %583, %v53_v15   ;;  %v279_v15 = vld [vmem:[%s766_s4] sm:$0x3f] }
  0x11   :  { %96 = vperm.xlu1 %584, %v54_v16  }
  0x14   :  { %101 = vperm.xlu0 %583, %v55_v17  }
  0x15   :  { %106 = vperm.xlu1 %584, %v56_v18  }
  0x16   :  { %527 = vmatmul.mubr.msk.bf16.gmra.mrb[4].mxu0 %vm167_vm0, %v591_v13 }
  0x17   :  { %530 = vmatprep.mubr.msk.bf16.mxu0 %vm167_vm0, %v592_v14 }
  0x18   :  { %111 = vperm.xlu0 %583, %v57_v20  }
  0x19   :  { %116 = vperm.xlu1 %584, %v58_v21  }
  0x1c   :  { %283 = vperm.xlu0 %583, %v280_v22  }
  0x1e   :  { %531 = vmatmul.mubr.msk.bf16.gmra.mrb[8].mxu0 %vm167_vm0, %v593_v19 }
  0x83   :  { %v62_v25 = vpop.permute.xlu0 %61 }
  0x84   :  { %v72_v26 = vpop.permute.xlu1 %71 }
  0x87   :  { %v67_v27 = vpop.permute.xlu0 %66 }
  0x88   :  { %v77_v28 = vpop.permute.xlu1 %76 }
  0x8b   :  { %v82_v29 = vpop.permute.xlu0 %81 }
  0x8c   :  { %v87_v30 = vpop.permute.xlu1 %86 }
  0x8f   :  { %v92_v38 = vpop.permute.xlu0 %91 }
  0x90   :  { %v97_v42 = vpop.permute.xlu1 %96 }
  0x93   :  { %v102_v50 = vpop.permute.xlu0 %101 }
  0x94   :  { %v107_v55 = vpop.permute.xlu1 %106 }
  0x97   :  { %v112_v62 = vpop.permute.xlu0 %111 }
  0x98   :  { %v117_v3 = vpop.permute.xlu1 %116 }
  0x9b   :  { %v284_v16 = vpop.permute.xlu0 %283 }
  0xe1   :  { %v524_v31 = vpop.f32.mrb[0].mxu0 }
  0xe2   :  { %v229_v32 = vadd.f32 %v524_v31, %v72_v26  ;;  %v220_v33 = vpop.f32.mrb[1].mxu0 }
  0xe3   :  { %v221_v34 = vadd.f32 %v220_v33, %v62_v25  ;;  %v525_v35 = vpop.f32.mrb[2].mxu0 }
  0xe4   :  { %v232_v36 = vadd.f32 %v525_v35, %v77_v28  ;;  %v223_v37 = vpop.f32.mrb[3].mxu0  ;;  %v269_v40 = vmax.f32 %v229_v32, 0.0 }
  0xe5   :  { %v224_v39 = vadd.f32 %v223_v37, %v67_v27  ;;  %v267_v43 = vmax.f32 %v221_v34, 0.0 }
  0xe6   :  { %v270_v41 = vmax.f32 %v232_v36, 0.0 }
  0xe7   :  { %v268_v44 = vmax.f32 %v224_v39, 0.0 }
  0xe8   :  { %v565_v45 = vpack.c.bf16 %v270_v41, %v269_v40 }
  0xe9   :  { %v528_v46 = vpop.f32.mrb[4].mxu0  ;;  %v562_v47 = vpack.c.bf16 %v268_v44, %v267_v43 }
  0xea   :  { %v245_v48 = vadd.f32 %v528_v46, %v92_v38  ;;  %v236_v49 = vpop.f32.mrb[5].mxu0 }
  0xeb   :  { %v237_v51 = vadd.f32 %v236_v49, %v82_v29  ;;  %v529_v52 = vpop.f32.mrb[6].mxu0  ;;  %563 = vmatpush3.bf16.msra.mxu1 %v562_v47 }
  0xec   :  { %v248_v53 = vadd.f32 %v529_v52, %v97_v42  ;;  %v239_v54 = vpop.f32.mrb[7].mxu0  ;;  %564 = vmatprep.subr.bf16.mxu1 %v627_v23  ;;  %v273_v57 = vmax.f32 %v245_v48, 0.0 }
  0xed   :  { %v240_v56 = vadd.f32 %v239_v54, %v87_v30  ;;  %v271_v59 = vmax.f32 %v237_v51, 0.0 }
  0xee   :  { %v274_v58 = vmax.f32 %v248_v53, 0.0 }
  0xef   :  { %v272_v60 = vmax.f32 %v240_v56, 0.0  ;;  %566 = vmatpush3.bf16.msra.mxu1 %v565_v45 }
  0xf0   :  { %v571_v61 = vpack.c.bf16 %v274_v58, %v273_v57  ;;  %567 = vmatprep.subr.bf16.mxu1 %v627_v23 }
  0xf1   :  { %v568_v63 = vpack.c.bf16 %v272_v60, %v271_v59  ;;  %v532_v0 = vpop.f32.mrb[8].mxu0 }
  0xf2   :  { %v261_v1 = vadd.f32 %v532_v0, %v112_v62  ;;  %v252_v2 = vpop.f32.mrb[9].mxu0 }
  0xf3   :  { %v253_v4 = vadd.f32 %v252_v2, %v102_v50  ;;  %v533_v5 = vpop.f32.mrb[10].mxu0  ;;  %569 = vmatpush3.bf16.msra.mxu1 %v568_v63 }
  0xf4   :  { %v264_v6 = vadd.f32 %v533_v5, %v117_v3  ;;  %v255_v7 = vpop.f32.mrb[11].mxu0  ;;  %570 = vmatprep.subr.bf16.mxu1 %v627_v23  ;;  %v277_v9 = vmax.f32 %v261_v1, 0.0 }
  0xf5   :  { %v256_v8 = vadd.f32 %v255_v7, %v107_v55  ;;  %v275_v11 = vmax.f32 %v253_v4, 0.0 }
  0xf6   :  { %v278_v10 = vmax.f32 %v264_v6, 0.0 }
  0xf7   :  { %v276_v12 = vmax.f32 %v256_v8, 0.0  ;;  %572 = vmatpush3.bf16.msra.mxu1 %v571_v61 }
  0xf8   :  { %v577_v13 = vpack.c.bf16 %v278_v10, %v277_v9  ;;  %573 = vmatprep.subr.bf16.mxu1 %v627_v23 }
  0xf9   :  { %v574_v14 = vpack.c.bf16 %v276_v12, %v275_v11  ;;  %v361_v12 = vlaneseq }
  0xfb   :  { %575 = vmatpush3.bf16.msra.mxu1 %v574_v14 }
  0xfc   :  { %576 = vmatprep.subr.bf16.mxu1 %v627_v23  ;;  %v368_v23 = vld [vmem:[%s767_s1] sm:$0x7] }
  0xff   :  { %578 = vmatpush3.bf16.msra.mxu1 %v577_v13  ;;  %v362_v13 = vand.u32 127, %v361_v12 }
 0x101   :  { %vm365_vm3 = vcmp.lt.s32.totalorder %v362_v13, 2 }
 0x102   :  { %559 = vmatmul.mubr.msk.f32.vlgmr.msra.gmra.mrb[0].mxu1 %vm286_vm2, %v279_v15 }
 0x1d5   :  { %v356_v17 = vpop.f32.mrb[0].mxu1 }
 0x1d6   :  { %v357_v18 = vadd.f32 %v356_v17, %v284_v16  ;;  %v560_v19 = vpop.f32.mrb[1].mxu1 }
 0x1d8   :  { %v484_v20 = vclamps-f32 %v357_v18, 10.0  ;;  %v400_v25 = vrot.slane %v357_v18, 1  ;;  %v429_v26 = vrot.slane %v357_v18, 2  ;;  %v374_v27 = vsub.f32 %v368_v23, %v357_v18 }
 0x1da   :  { %v371_v21 = vsub.f32 0.0, %v484_v20  ;;  %v402_v28 = vsub.f32 %v368_v23, %v400_v25  ;;  %v431_v29 = vsub.f32 %v368_v23, %v429_v26  ;;  %v375_v31 = vadd.f32 0.5, %v374_v27 }
 0x1db   :  { %v486_v32 = vadd.f32 -0.5, %v374_v27  ;;  %v483_v20 = vsel %vm365_vm3, 1.0, %v628_v24 }
 0x1dc   :  { %v372_v22 = vmul.f32 1.442695, %v371_v21  ;;  %v403_v33 = vadd.f32 0.5, %v402_v28  ;;  %v489_v36 = vadd.f32 -0.5, %v402_v28  ;;  %v432_v38 = vadd.f32 0.5, %v431_v29 }
 0x1dd   :  { %v492_v39 = vadd.f32 -0.5, %v431_v29  ;;  %v459_v25 = vmul.f32 1.442695, %v483_v20  ;;  %v458_v28 = vld [vmem:[%s765_s6] sm:$0x1] }
 0x1de   :  { %594 = vpow2.f32 %v372_v22 }
 0x1e8   :  { %v595_v30 = vpop.eup %594 }
 0x1e9   :  { %v377_v34 = vrot.slane %v595_v30, 1  ;;  %v404_v35 = vrot.slane %v595_v30, 2  ;;  %v433_v37 = vrot.slane %v595_v30, 3 }
 0x1eb   :  { %v379_v40 = vmul.f32 %v377_v34, %v375_v31  ;;  %v387_v41 = vmul.f32 %v486_v32, %v377_v34  ;;  %v406_v42 = vmul.f32 %v404_v35, %v403_v33  ;;  %v414_v43 = vmul.f32 %v489_v36, %v404_v35 }
 0x1ec   :  { %v435_v44 = vmul.f32 %v433_v37, %v432_v38  ;;  %v443_v45 = vmul.f32 %v492_v39, %v433_v37 }
 0x1ed   :  { %v485_v46 = vmul.f32 -1.442695, %v379_v40  ;;  %v487_v47 = vmul.f32 -1.442695, %v387_v41  ;;  %v488_v48 = vmul.f32 -1.442695, %v406_v42 }
 0x1ee   :  { %v490_v49 = vmul.f32 -1.442695, %v414_v43  ;;  %v491_v50 = vmul.f32 -1.442695, %v435_v44  ;;  %v493_v51 = vmul.f32 -1.442695, %v443_v45 }
 0x1ef   :  { %596 = vpow2.f32 %v485_v46 }
 0x1f0   :  { %598 = vpow2.f32 %v487_v47 }
 0x1f1   :  { %600 = vpow2.f32 %v488_v48 }
 0x1f2   :  { %602 = vpow2.f32 %v490_v49 }
 0x1f3   :  { %604 = vpow2.f32 %v491_v50 }
 0x1f4   :  { %606 = vpow2.f32 %v493_v51 }
 0x1f9   :  { %v597_v52 = vpop.eup %596 }
 0x1fa   :  { %v599_v53 = vpop.eup %598  ;;  %v383_v54 = vadd.f32 1.0, %v597_v52 }
 0x1fb   :  { %v601_v55 = vpop.eup %600  ;;  %v391_v56 = vadd.f32 1.0, %v599_v53 }
 0x1fc   :  { %v603_v57 = vpop.eup %602  ;;  %608 = vrcp.f32 %v383_v54  ;;  %v410_v58 = vadd.f32 1.0, %v601_v55 }
 0x1fd   :  { %v605_v59 = vpop.eup %604  ;;  %610 = vrcp.f32 %v391_v56  ;;  %v418_v60 = vadd.f32 1.0, %v603_v57 }
 0x1fe   :  { %v607_v61 = vpop.eup %606  ;;  %612 = vrcp.f32 %v410_v58  ;;  %v439_v62 = vadd.f32 1.0, %v605_v59 }
 0x1ff   :  { %614 = vrcp.f32 %v418_v60  ;;  %v447_v63 = vadd.f32 1.0, %v607_v61 }
 0x200   :  { %616 = vrcp.f32 %v439_v62 }
 0x201   :  { %618 = vrcp.f32 %v447_v63 }
 0x206   :  { %v609_v0 = vpop.eup %608 }
 0x207   :  { %v611_v1 = vpop.eup %610 }
 0x208   :  { %v613_v2 = vpop.eup %612  ;;  %v394_v3 = vsub.f32 %v609_v0, %v611_v1 }
 0x209   :  { %v615_v4 = vpop.eup %614 }
 0x20a   :  { %v617_v5 = vpop.eup %616  ;;  %v395_v6 = vmax.f32 %v394_v3, 1e-09  ;;  %v421_v7 = vsub.f32 %v613_v2, %v615_v4 }
 0x20b   :  { %v619_v8 = vpop.eup %618 }
 0x20c   :  { %620 = vlog2.f32 %v395_v6  ;;  %v422_v9 = vmax.f32 %v421_v7, 1e-09  ;;  %v450_v10 = vsub.f32 %v617_v5, %v619_v8 }
 0x20e   :  { %622 = vlog2.f32 %v422_v9  ;;  %v451_v11 = vmax.f32 %v450_v10, 1e-09 }
 0x210   :  { %624 = vlog2.f32 %v451_v11 }
 0x216   :  { %v621_v14 = vpop.eup %620 }
 0x217   :  { %v397_v15 = vmul.f32 0.6931472, %v621_v14 }
 0x218   :  { %v623_v16 = vpop.eup %622 }
 0x219   :  { %v398_v17 = vsub.f32 0.0, %v397_v15  ;;  %v424_v18 = vmul.f32 0.6931472, %v623_v16 }
 0x21a   :  { %v625_v19 = vpop.eup %624 }
 0x21b   :  { %v426_v21 = vrot.slane %v424_v18, 1  ;;  %v453_v22 = vmul.f32 0.6931472, %v625_v19 }
 0x21d   :  { %v428_v23 = vsub.f32 %v398_v17, %v426_v21  ;;  %v455_v26 = vrot.slane %v453_v22, 2 }
 0x21f   :  { %v457_v27 = vsub.f32 %v428_v23, %v455_v26 }
 0x221   :  { %v460_v29 = vmul.f32 %v459_v25, %v457_v27 }
 0x223   :  { %v461_v30 = vadd.f32 %v460_v29, %v458_v28 }
 0x225   :  { %462 = vst [vmem:[%s765_s6] sm:$0x1] %v461_v30 }

// kernel: model_forward.5
= control target key start
LH: loop header
LB: loop body
LE: loop exit
PB: predicated region body
PF: predicated region fallthrough
CT: control target
= control target key end

     0   :  { %vm75_vm0 = vcmask 130048   ;;  %v342_v1 = vmov 0   ;;  %v343_v9 = vmov 0.0|0.0   ;;  %v344_v10 = vmov 0.0   ;;  %s426_s0 = inlined_call_operand.vmem [shape: bf16[16,128], index: 0, kind: input, shape index: {}]   ;;  %s427_s2 = inlined_call_operand.vmem [shape: bf16[32,16], index: 2, kind: input, shape index: {}]   ;;  %s428_s3 = inlined_call_operand.vmem [shape: f32[32,1], index: 3, kind: input, shape index: {}]   ;;  %s429_s5 = inlined_call_operand.vmem [shape: f32[2,1], index: 5, kind: input, shape index: {}]   ;;  %s430_s6 = inlined_call_operand.vmem [shape: f32[1,128], index: 6, kind: output, shape index: {}]   ;;  %s431_s4 = inlined_call_operand.vmem [shape: f32[2,32], index: 4, kind: input, shape index: {}]   ;;  %s432_s1 = inlined_call_operand.vmem [shape: f32[1,128], index: 1, kind: input, shape index: {}]  }
   0x1   :  { %v327_v0 = vld [vmem:[%s426_s0] sm:$0xff]   ;;  %325 = vset.pattern.permute.xlu0 %v342_v1  ;;  %326 = vset.pattern.permute.xlu1 %v342_v1  ;;  %v329_v3 = vld [vmem:[%s427_s2 + $0x8] sm:$0xff]   ;;  %v37_v5 = vld [vmem:[%s428_s3 + $0x10] sm:$0xff]  ;;  %28 = vst [vmem:[%s430_s6] sm:$0x1] %v344_v10  ;;  %vm345_vm1 = vmmov 0   ;;  %vm142_vm2 = vcmask 261120   ;;  %v217_v37 = vlaneseq }
   0x2   :  { %v328_v2 = vld [vmem:[%s427_s2] sm:$0xff]   ;;  %297 = vmatprep.subr.bf16.mxu0 %v327_v0  ;;  %51 = vperm.xlu1 %326, %v37_v5   ;;  %v36_v6 = vld [vmem:[%s428_s3 + $0x8] sm:$0xff]  ;;  %v38_v7 = vld [vmem:[%s428_s3 + $0x18] sm:$0xff]  ;;  %v346_v38 = vmov 1966171168  }
   0x3   :  { %298 = vmatpush3.bf16.msra.mxu0 %v327_v0  ;;  %299 = vmatprep.mubr.msk.bf16.mxu0 %vm75_vm0, %v328_v2  ;;  %v35_v4 = vld [vmem:[%s428_s3] sm:$0xff]  ;;  %v234_v39 = vunpack.c.l.s4 %v346_v38  ;;  %v237_v40 = vshrl.u32 %v217_v37, 7  ;;  %v218_v63 = vand.u32 127, %v217_v37 }
   0x4   :  { %41 = vperm.xlu0 %325, %v35_v4   ;;  %v136_v8 = vld [vmem:[%s429_s5] sm:$0x3]  ;;  %314 = vmatprep.subr.bf16.mxu1 %v343_v9 }
   0x5   :  { %311 = vmatprep.mubr.msk.f32.mxu1 %vm345_vm1, %v344_v10  ;;  %v135_v29 = vld [vmem:[%s431_s4] sm:$0x3]  ;;  %v235_v41 = vunpack.c.0.s8 %v234_v39  ;;  %vm221_vm3 = vcmp.lt.s32.totalorder %v218_v63, 2 }
   0x6   :  { %300 = vmatmul.mubr.msk.bf16.vlgmr.msra.gmra.mrb[0].mxu0 %vm75_vm0, %v329_v3  ;;  %56 = vperm.xlu1 %326, %v38_v7   ;;  %v224_v43 = vld [vmem:[%s432_s1] sm:$0x1]  ;;  %v284_v0 = vsel %vm221_vm3, 1.0, %v344_v10 }
   0x7   :  { %v238_v42 = vsub.s32 %v235_v41, %v237_v40  ;;  %v270_v2 = vmul.f32 1.442695, %v284_v0 }
   0x8   :  { %46 = vperm.xlu0 %325, %v36_v6   ;;  %v269_v5 = vld [vmem:[%s430_s6] sm:$0x1] }
   0xc   :  { %139 = vperm.xlu0 %325, %v136_v8  }
  0x81   :  { %v52_v11 = vpop.permute.xlu1 %51 }
  0x83   :  { %v42_v12 = vpop.permute.xlu0 %41 }
  0x85   :  { %v57_v14 = vpop.permute.xlu1 %56 }
  0x87   :  { %v47_v19 = vpop.permute.xlu0 %46 }
  0x8b   :  { %v140_v30 = vpop.permute.xlu0 %139 }
  0xd9   :  { %v301_v13 = vpop.f32.mrb[0].mxu0 }
  0xda   :  { %v125_v15 = vadd.f32 %v301_v13, %v52_v11  ;;  %v116_v16 = vpop.f32.mrb[1].mxu0 }
  0xdb   :  { %v117_v17 = vadd.f32 %v116_v16, %v42_v12  ;;  %v302_v18 = vpop.f32.mrb[2].mxu0 }
  0xdc   :  { %v128_v20 = vadd.f32 %v302_v18, %v57_v14  ;;  %v119_v21 = vpop.f32.mrb[3].mxu0  ;;  %v133_v23 = vmax.f32 %v125_v15, 0.0 }
  0xdd   :  { %v120_v22 = vadd.f32 %v119_v21, %v47_v19  ;;  %v131_v25 = vmax.f32 %v117_v17, 0.0 }
  0xde   :  { %v134_v24 = vmax.f32 %v128_v20, 0.0 }
  0xdf   :  { %v132_v26 = vmax.f32 %v120_v22, 0.0 }
  0xe0   :  { %v318_v27 = vpack.c.bf16 %v134_v24, %v133_v23 }
  0xe1   :  { %v315_v28 = vpack.c.bf16 %v132_v26, %v131_v25 }
  0xe3   :  { %316 = vmatpush3.bf16.msra.mxu1 %v315_v28 }
  0xe4   :  { %317 = vmatprep.subr.bf16.mxu1 %v343_v9 }
  0xe7   :  { %319 = vmatpush3.bf16.msra.mxu1 %v318_v27 }
  0xea   :  { %312 = vmatmul.mubr.msk.f32.vlgmr.msra.gmra.mrb[0].mxu1 %vm142_vm2, %v135_v29 }
 0x1bd   :  { %v212_v31 = vpop.f32.mrb[0].mxu1 }
 0x1be   :  { %v213_v32 = vadd.f32 %v212_v31, %v140_v30  ;;  %v313_v33 = vpop.f32.mrb[1].mxu1 }
 0x1c0   :  { %v285_v34 = vclamps-f32 %v213_v32, 10.0  ;;  %v230_v45 = vsub.f32 %v224_v43, %v213_v32 }
 0x1c2   :  { %v227_v35 = vsub.f32 0.0, %v285_v34  ;;  %v231_v48 = vadd.f32 0.5, %v230_v45  ;;  %v287_v50 = vadd.f32 -0.5, %v230_v45 }
 0x1c4   :  { %v228_v36 = vmul.f32 1.442695, %v227_v35 }
 0x1c6   :  { %330 = vpow2.f32 %v228_v36 }
 0x1d0   :  { %v331_v44 = vpop.eup %330 }
 0x1d1   :  { %v239_v46 = vrot.slane %v331_v44, %v238_v42 }
 0x1d3   :  { %v240_v47 = vcombine.high %v239_v46, %v239_v46 }
 0x1d5   :  { %v247_v49 = vrot.slane %v240_v47, %v238_v42 }
 0x1d7   :  { %v249_v51 = vmul.f32 %v247_v49, %v231_v48  ;;  %v257_v52 = vmul.f32 %v287_v50, %v247_v49 }
 0x1d9   :  { %v286_v53 = vmul.f32 -1.442695, %v249_v51  ;;  %v288_v54 = vmul.f32 -1.442695, %v257_v52 }
 0x1db   :  { %332 = vpow2.f32 %v286_v53 }
 0x1dc   :  { %334 = vpow2.f32 %v288_v54 }
 0x1e5   :  { %v333_v55 = vpop.eup %332 }
 0x1e6   :  { %v335_v56 = vpop.eup %334  ;;  %v253_v57 = vadd.f32 1.0, %v333_v55 }
 0x1e7   :  { %v261_v58 = vadd.f32 1.0, %v335_v56 }
 0x1e8   :  { %336 = vrcp.f32 %v253_v57 }
 0x1e9   :  { %338 = vrcp.f32 %v261_v58 }
 0x1f2   :  { %v337_v59 = vpop.eup %336 }
 0x1f3   :  { %v339_v60 = vpop.eup %338 }
 0x1f4   :  { %v264_v61 = vsub.f32 %v337_v59, %v339_v60 }
 0x1f6   :  { %v265_v62 = vmax.f32 %v264_v61, 1e-09 }
 0x1f8   :  { %340 = vlog2.f32 %v265_v62 }
 0x202   :  { %v341_v1 = vpop.eup %340 }
 0x203   :  { %v267_v3 = vmul.f32 0.6931472, %v341_v1 }
 0x205   :  { %v268_v4 = vsub.f32 0.0, %v267_v3 }
 0x207   :  { %v271_v6 = vmul.f32 %v270_v2, %v268_v4 }
 0x209   :  { %v272_v7 = vadd.f32 %v271_v6, %v269_v5 }
 0x20b   :  { %273 = vst [vmem:[%s430_s6] sm:$0x1] %v272_v7 }

// kernel: squeeze.65
= control target key start
LH: loop header
LB: loop body
LE: loop exit
PB: predicated region body
PF: predicated region fallthrough
CT: control target
= control target key end

     0   :  { %vm34_vm0 = vcmask 31744   ;;  %s96_s8 = smov 20   ;;  %s97_s9 = smov 24   ;;  %vm40_vm1 = vcmask 261344   ;;  %vm46_vm2 = vcmask 228544   ;;  %vm52_vm3 = vcmask 195744   ;;  %s119_s0 = inlined_call_operand.vmem [shape: bf16[2,1,4,4], index: 0, kind: input, shape index: {}]   ;;  %s120_s1 = inlined_call_operand.vmem [shape: bf16[1,32], index: 1, kind: output, shape index: {}]  }
   0x1   :  { %v86_v0 = vld [vmem:[%s119_s0] sm:$0xf]   ;;  %s95_s0 = smov 28   ;;  %s98_s10 = smov 16   ;;  %vm58_vm4 = vcmask 162944   ;;  %vm64_vm5 = vcmask 130144  }
   0x2   :  { %v16_v1 = vunpack.c.l.bf16 %v86_v0  ;;  %s99_s11 = smov 12   ;;  %s100_s12 = smov 8   ;;  %vm70_vm6 = vcmask 97344   ;;  %vm76_vm7 = vcmask 64544   ;;  %v102_v18 = vmov 0.0  }
   0x3   :  { %s101_s13 = smov 4  }
   0x4   :  { %19 = vst [vmem:[#allocation1] ss:$8 sps:$4 sm:$0xff] %v16_v1  }
   0xb   :  { %v37_v2 = vld [vmem:[#allocation1 + $0xb] sm:$0x1]   ;;  %v49_v3 = vld [vmem:[#allocation1 + $0x9] sm:$0x1]   ;;  %v43_v4 = vld [vmem:[#allocation1 + $0xa] sm:$0x1]  }
   0xc   :  { %38 = vrot.lane.b32.xlu0 %v37_v2, %s95_s0  ;;  %50 = vrot.lane.b32.xlu1 %v49_v3, %s96_s8  ;;  %v55_v5 = vld [vmem:[#allocation1 + $0x8] sm:$0x1]   ;;  %v33_v6 = vld [vmem:[#allocation1] sm:$0x1]   ;;  %v61_v7 = vld [vmem:[#allocation1 + $0x3] sm:$0x1]  }
   0xd   :  { %35 = vst.msk [vmem:[#allocation0] sm:$0x1] %vm34_vm0, %v33_v6   ;;  %v67_v8 = vld [vmem:[#allocation1 + $0x2] sm:$0x1]   ;;  %v73_v9 = vld [vmem:[#allocation1 + $0x1] sm:$0x1]  }
  0x10   :  { %44 = vrot.lane.b32.xlu0 %v43_v4, %s97_s9  ;;  %56 = vrot.lane.b32.xlu1 %v55_v5, %s98_s10 }
  0x14   :  { %62 = vrot.lane.b32.xlu0 %v61_v7, %s99_s11  ;;  %68 = vrot.lane.b32.xlu1 %v67_v8, %s100_s12 }
  0x18   :  { %74 = vrot.lane.b32.xlu0 %v73_v9, %s101_s13 }
  0x7e   :  { %v39_v10 = vpop.permute.xlu0 %38   ;;  %v51_v11 = vpop.permute.xlu1 %50  }
  0x7f   :  { %41 = vst.msk [vmem:[#allocation0] sm:$0x1] %vm40_vm1, %v39_v10  }
  0x82   :  { %v45_v12 = vpop.permute.xlu0 %44   ;;  %v57_v13 = vpop.permute.xlu1 %56  }
  0x83   :  { %47 = vst.msk [vmem:[#allocation0] sm:$0x1] %vm46_vm2, %v45_v12  }
  0x84   :  { %53 = vst.msk [vmem:[#allocation0] sm:$0x1] %vm52_vm3, %v51_v11  }
  0x85   :  { %59 = vst.msk [vmem:[#allocation0] sm:$0x1] %vm58_vm4, %v57_v13  }
  0x86   :  { %v63_v14 = vpop.permute.xlu0 %62   ;;  %v69_v15 = vpop.permute.xlu1 %68  }
  0x87   :  { %65 = vst.msk [vmem:[#allocation0] sm:$0x1] %vm64_vm5, %v63_v14  }
  0x88   :  { %71 = vst.msk [vmem:[#allocation0] sm:$0x1] %vm70_vm6, %v69_v15  }
  0x8a   :  { %v75_v16 = vpop.permute.xlu0 %74  }
  0x8b   :  { %77 = vst.msk [vmem:[#allocation0] sm:$0x1] %vm76_vm7, %v75_v16  }
  0x92   :  { %v82_v17 = vld [vmem:[#allocation0] sm:$0x3] }
  0x93   :  { %v83_v19 = vpack.c.bf16 %v102_v18, %v82_v17 }
  0x95   :  { %85 = vst [vmem:[%s120_s1] sm:$0x1] %v83_v19 }

// kernel: squeeze.61
= control target key start
LH: loop header
LB: loop body
LE: loop exit
PB: predicated region body
PF: predicated region fallthrough
CT: control target
= control target key end

     0   :  { %s260_s22 = smov 26   ;;  %vm130_vm0 = vcmask 15360   ;;  %s261_s23 = smov 28   ;;  %vm136_vm1 = vcmask 261360   ;;  %vm142_vm2 = vcmask 244960   ;;  %vm148_vm3 = vcmask 228560   ;;  %s312_s0 = inlined_call_operand.vmem [shape: bf16[2,1,4,2,2], index: 0, kind: input, shape index: {}]   ;;  %s313_s1 = inlined_call_operand.vmem [shape: bf16[1,32], index: 1, kind: output, shape index: {}]  }
   0x1   :  { %v236_v0 = vld [vmem:[%s312_s0 + $0x7] sm:$0x1]  ;;  %v237_v1 = vld [vmem:[%s312_s0 + $0x6] sm:$0x1]  ;;  %v238_v4 = vld [vmem:[%s312_s0 + $0x5] sm:$0x1] }
   0x2   :  { %v17_v2 = vunpack.c.l.bf16 %v236_v0  ;;  %v33_v3 = vunpack.c.l.bf16 %v237_v1  ;;  %v239_v5 = vld [vmem:[%s312_s0 + $0x4] sm:$0x1]  ;;  %v49_v6 = vunpack.c.l.bf16 %v238_v4  ;;  %v240_v8 = vld [vmem:[%s312_s0 + $0x3] sm:$0x1]  ;;  %v241_v9 = vld [vmem:[%s312_s0 + $0x2] sm:$0x1] }
   0x3   :  { %v65_v7 = vunpack.c.l.bf16 %v239_v5  ;;  %v81_v10 = vunpack.c.l.bf16 %v240_v8  ;;  %v97_v11 = vunpack.c.l.bf16 %v241_v9  ;;  %v242_v12 = vld [vmem:[%s312_s0 + $0x1] sm:$0x1]  ;;  %v125_v13 = vld [vmem:[%s312_s0] sm:$0x1]  ;;  %s259_s0 = smov 30   ;;  %s262_s24 = smov 24  }
   0x4   :  { %20 = vst [vmem:[#allocation1 + $0x38] sm:$0x3] %v17_v2  ;;  %36 = vst [vmem:[#allocation1 + $0x30] sm:$0x3] %v33_v3  ;;  %v112_v14 = vunpack.c.l.bf16 %v242_v12  ;;  %v126_v15 = vunpack.c.l.bf16 %v125_v13  ;;  %s263_s25 = smov 22   ;;  %s264_s26 = smov 20  }
   0x5   :  { %52 = vst [vmem:[#allocation1 + $0x28] sm:$0x3] %v49_v6  ;;  %68 = vst [vmem:[#allocation1 + $0x20] sm:$0x3] %v65_v7  ;;  %s265_s27 = smov 18   ;;  %s266_s28 = smov 16  }
   0x6   :  { %84 = vst [vmem:[#allocation1 + $0x18] sm:$0x3] %v81_v10  ;;  %100 = vst [vmem:[#allocation1 + $0x10] sm:$0x3] %v97_v11  ;;  %s267_s29 = smov 14   ;;  %s268_s30 = smov 12  }
   0x7   :  { %115 = vst [vmem:[#allocation1 + $0x8] sm:$0x3] %v112_v14  ;;  %128 = vst [vmem:[#allocation1] sm:$0x3] %v126_v15  ;;  %s269_s2 = smov 10   ;;  %s270_s3 = smov 8  }
   0x8   :  { %s271_s4 = smov 6   ;;  %s272_s5 = smov 4   ;;  %vm154_vm4 = vcmask 212160   ;;  %vm160_vm5 = vcmask 195760   ;;  %vm166_vm6 = vcmask 179360   ;;  %vm172_vm7 = vcmask 162960  }
   0x9   :  { %s273_s6 = smov 2   ;;  %vm178_vm8 = vcmask 146560   ;;  %vm184_vm9 = vcmask 130160   ;;  %vm190_vm10 = vcmask 113760   ;;  %vm196_vm11 = vcmask 97360  }
   0xa   :  { %vm202_vm12 = vcmask 80960   ;;  %vm208_vm13 = vcmask 64560   ;;  %vm214_vm14 = vcmask 48160   ;;  %vm220_vm15 = vcmask 31760  }
   0xb   :  { %v133_v16 = vld [vmem:[#allocation1 + $0x39] sm:$0x1]   ;;  %v145_v17 = vld [vmem:[#allocation1 + $0x31] sm:$0x1]   ;;  %v139_v18 = vld [vmem:[#allocation1 + $0x38] sm:$0x1]  }
   0xc   :  { %134 = vrot.lane.b32.xlu0 %v133_v16, %s259_s0  ;;  %146 = vrot.lane.b32.xlu1 %v145_v17, %s260_s22  ;;  %v151_v19 = vld [vmem:[#allocation1 + $0x30] sm:$0x1]   ;;  %v157_v21 = vld [vmem:[#allocation1 + $0x29] sm:$0x1]   ;;  %v163_v22 = vld [vmem:[#allocation1 + $0x28] sm:$0x1]  }
   0xd   :  { %v169_v23 = vld [vmem:[#allocation1 + $0x21] sm:$0x1]   ;;  %v175_v24 = vld [vmem:[#allocation1 + $0x20] sm:$0x1]   ;;  %v181_v25 = vld [vmem:[#allocation1 + $0x19] sm:$0x1]  }
   0xe   :  { %v129_v20 = vld [vmem:[#allocation1] sm:$0x1]   ;;  %v187_v26 = vld [vmem:[#allocation1 + $0x18] sm:$0x1]   ;;  %v193_v27 = vld [vmem:[#allocation1 + $0x11] sm:$0x1]  }
   0xf   :  { %131 = vst.msk [vmem:[#allocation0] sm:$0x1] %vm130_vm0, %v129_v20   ;;  %v199_v28 = vld [vmem:[#allocation1 + $0x10] sm:$0x1]   ;;  %v205_v29 = vld [vmem:[#allocation1 + $0x9] sm:$0x1]  }
  0x10   :  { %140 = vrot.lane.b32.xlu0 %v139_v18, %s261_s23  ;;  %152 = vrot.lane.b32.xlu1 %v151_v19, %s262_s24  ;;  %v211_v30 = vld [vmem:[#allocation1 + $0x8] sm:$0x1]   ;;  %v217_v31 = vld [vmem:[#allocation1 + $0x1] sm:$0x1]   ;;  %v274_v48 = vmov 0.0  }
  0x14   :  { %158 = vrot.lane.b32.xlu0 %v157_v21, %s263_s25  ;;  %164 = vrot.lane.b32.xlu1 %v163_v22, %s264_s26 }
  0x18   :  { %170 = vrot.lane.b32.xlu0 %v169_v23, %s265_s27  ;;  %176 = vrot.lane.b32.xlu1 %v175_v24, %s266_s28 }
  0x1c   :  { %182 = vrot.lane.b32.xlu0 %v181_v25, %s267_s29  ;;  %188 = vrot.lane.b32.xlu1 %v187_v26, %s268_s30 }
  0x20   :  { %194 = vrot.lane.b32.xlu0 %v193_v27, %s269_s2  ;;  %200 = vrot.lane.b32.xlu1 %v199_v28, %s270_s3 }
  0x24   :  { %206 = vrot.lane.b32.xlu0 %v205_v29, %s271_s4  ;;  %212 = vrot.lane.b32.xlu1 %v211_v30, %s272_s5 }
  0x28   :  { %218 = vrot.lane.b32.xlu0 %v217_v31, %s273_s6 }
  0x7e   :  { %v135_v32 = vpop.permute.xlu0 %134   ;;  %v147_v33 = vpop.permute.xlu1 %146  }
  0x7f   :  { %137 = vst.msk [vmem:[#allocation0] sm:$0x1] %vm136_vm1, %v135_v32  }
  0x82   :  { %v141_v34 = vpop.permute.xlu0 %140   ;;  %v153_v35 = vpop.permute.xlu1 %152  }
  0x83   :  { %143 = vst.msk [vmem:[#allocation0] sm:$0x1] %vm142_vm2, %v141_v34  }
  0x84   :  { %149 = vst.msk [vmem:[#allocation0] sm:$0x1] %vm148_vm3, %v147_v33  }
  0x85   :  { %155 = vst.msk [vmem:[#allocation0] sm:$0x1] %vm154_vm4, %v153_v35  }
  0x86   :  { %v159_v36 = vpop.permute.xlu0 %158   ;;  %v165_v37 = vpop.permute.xlu1 %164  }
  0x87   :  { %161 = vst.msk [vmem:[#allocation0] sm:$0x1] %vm160_vm5, %v159_v36  }
  0x88   :  { %167 = vst.msk [vmem:[#allocation0] sm:$0x1] %vm166_vm6, %v165_v37  }
  0x8a   :  { %v171_v38 = vpop.permute.xlu0 %170   ;;  %v177_v39 = vpop.permute.xlu1 %176  }
  0x8b   :  { %173 = vst.msk [vmem:[#allocation0] sm:$0x1] %vm172_vm7, %v171_v38  }
  0x8c   :  { %179 = vst.msk [vmem:[#allocation0] sm:$0x1] %vm178_vm8, %v177_v39  }
  0x8e   :  { %v183_v40 = vpop.permute.xlu0 %182   ;;  %v189_v41 = vpop.permute.xlu1 %188  }
  0x8f   :  { %185 = vst.msk [vmem:[#allocation0] sm:$0x1] %vm184_vm9, %v183_v40  }
  0x90   :  { %191 = vst.msk [vmem:[#allocation0] sm:$0x1] %vm190_vm10, %v189_v41  }
  0x92   :  { %v195_v42 = vpop.permute.xlu0 %194   ;;  %v201_v43 = vpop.permute.xlu1 %200  }
  0x93   :  { %197 = vst.msk [vmem:[#allocation0] sm:$0x1] %vm196_vm11, %v195_v42  }
  0x94   :  { %203 = vst.msk [vmem:[#allocation0] sm:$0x1] %vm202_vm12, %v201_v43  }
  0x96   :  { %v207_v44 = vpop.permute.xlu0 %206   ;;  %v213_v45 = vpop.permute.xlu1 %212  }
  0x97   :  { %209 = vst.msk [vmem:[#allocation0] sm:$0x1] %vm208_vm13, %v207_v44  }
  0x98   :  { %215 = vst.msk [vmem:[#allocation0] sm:$0x1] %vm214_vm14, %v213_v45  }
  0x9a   :  { %v219_v46 = vpop.permute.xlu0 %218  }
  0x9b   :  { %221 = vst.msk [vmem:[#allocation0] sm:$0x1] %vm220_vm15, %v219_v46  }
  0xa2   :  { %v226_v47 = vld [vmem:[#allocation0] sm:$0x3] }
  0xa3   :  { %v227_v49 = vpack.c.bf16 %v274_v48, %v226_v47 }
  0xa5   :  { %229 = vst [vmem:[%s313_s1] sm:$0x1] %v227_v49 }

// kernel: squeeze.259
= control target key start
LH: loop header
LB: loop body
LE: loop exit
PB: predicated region body
PF: predicated region fallthrough
CT: control target
= control target key end

     0   :  { %vm11_vm0 = vcmask 31744   ;;  %s70_s10 = smov 20   ;;  %s71_s11 = smov 24   ;;  %vm17_vm1 = vcmask 261344   ;;  %vm23_vm2 = vcmask 228544   ;;  %vm29_vm3 = vcmask 195744   ;;  %s95_s0 = inlined_call_operand.vmem [shape: f32[2,1,4,4], index: 0, kind: input, shape index: {}]   ;;  %s96_s1 = inlined_call_operand.vmem [shape: f32[1,32], index: 1, kind: output, shape index: {}]  }
   0x1   :  { %v61_v0 = vld [vmem:[%s95_s0 + $0x4] sm:$0xf]  ;;  %v8_v1 = vld [vmem:[%s95_s0] sm:$0xf]  ;;  %s69_s0 = smov 28   ;;  %s72_s12 = smov 16  }
   0x2   :  { %7 = vst [vmem:[#allocation1 + $0x8] sm:$0xf] %v61_v0  ;;  %9 = vst [vmem:[#allocation1] sm:$0xf] %v8_v1  ;;  %s73_s13 = smov 12   ;;  %s74_s14 = smov 8  }
   0x3   :  { %s75_s15 = smov 4   ;;  %vm35_vm4 = vcmask 162944   ;;  %vm41_vm5 = vcmask 130144   ;;  %vm47_vm6 = vcmask 97344   ;;  %vm53_vm7 = vcmask 64544  }
   0x9   :  { %v14_v2 = vld [vmem:[#allocation1 + $0xb] sm:$0x1]   ;;  %v26_v3 = vld [vmem:[#allocation1 + $0x9] sm:$0x1]   ;;  %v20_v4 = vld [vmem:[#allocation1 + $0xa] sm:$0x1]  }
   0xa   :  { %15 = vrot.lane.b32.xlu0 %v14_v2, %s69_s0  ;;  %27 = vrot.lane.b32.xlu1 %v26_v3, %s70_s10  ;;  %v32_v5 = vld [vmem:[#allocation1 + $0x8] sm:$0x1]   ;;  %v10_v6 = vld [vmem:[#allocation1] sm:$0x1]   ;;  %v38_v7 = vld [vmem:[#allocation1 + $0x3] sm:$0x1]  }
   0xb   :  { %12 = vst.msk [vmem:[#allocation0] sm:$0x1] %vm11_vm0, %v10_v6   ;;  %v44_v8 = vld [vmem:[#allocation1 + $0x2] sm:$0x1]   ;;  %v50_v9 = vld [vmem:[#allocation1 + $0x1] sm:$0x1]  }
   0xe   :  { %21 = vrot.lane.b32.xlu0 %v20_v4, %s71_s11  ;;  %33 = vrot.lane.b32.xlu1 %v32_v5, %s72_s12 }
  0x12   :  { %39 = vrot.lane.b32.xlu0 %v38_v7, %s73_s13  ;;  %45 = vrot.lane.b32.xlu1 %v44_v8, %s74_s14 }
  0x16   :  { %51 = vrot.lane.b32.xlu0 %v50_v9, %s75_s15 }
  0x7c   :  { %v16_v10 = vpop.permute.xlu0 %15   ;;  %v28_v11 = vpop.permute.xlu1 %27  }
  0x7d   :  { %18 = vst.msk [vmem:[#allocation0] sm:$0x1] %vm17_vm1, %v16_v10  }
  0x80   :  { %v22_v12 = vpop.permute.xlu0 %21   ;;  %v34_v13 = vpop.permute.xlu1 %33  }
  0x81   :  { %24 = vst.msk [vmem:[#allocation0] sm:$0x1] %vm23_vm2, %v22_v12  }
  0x82   :  { %30 = vst.msk [vmem:[#allocation0] sm:$0x1] %vm29_vm3, %v28_v11  }
  0x83   :  { %36 = vst.msk [vmem:[#allocation0] sm:$0x1] %vm35_vm4, %v34_v13  }
  0x84   :  { %v40_v14 = vpop.permute.xlu0 %39   ;;  %v46_v15 = vpop.permute.xlu1 %45  }
  0x85   :  { %42 = vst.msk [vmem:[#allocation0] sm:$0x1] %vm41_vm5, %v40_v14  }
  0x86   :  { %48 = vst.msk [vmem:[#allocation0] sm:$0x1] %vm47_vm6, %v46_v15  }
  0x88   :  { %v52_v16 = vpop.permute.xlu0 %51  }
  0x89   :  { %54 = vst.msk [vmem:[#allocation0] sm:$0x1] %vm53_vm7, %v52_v16  }
  0x90   :  { %v58_v17 = vld [vmem:[#allocation0] sm:$0x1] }
  0x91   :  { %60 = vst [vmem:[%s96_s1] sm:$0x1] %v58_v17 }

// kernel: model_forward.7
= control target key start
LH: loop header
LB: loop body
LE: loop exit
PB: predicated region body
PF: predicated region fallthrough
CT: control target
= control target key end

     0   :  { %v626_v1 = vmov 0   ;;  %vm167_vm0 = vcmask 392192   ;;  %v627_v23 = vmov 0.0|0.0   ;;  %v628_v24 = vmov 0.0   ;;  %s761_s0 = inlined_call_operand.vmem [shape: bf16[48,128], index: 0, kind: input, shape index: {}]   ;;  %s762_s2 = inlined_call_operand.vmem [shape: bf16[96,48], index: 2, kind: input, shape index: {}]   ;;  %s763_s3 = inlined_call_operand.vmem [shape: f32[96,1], index: 3, kind: input, shape index: {}]   ;;  %s764_s5 = inlined_call_operand.vmem [shape: f32[6,1], index: 5, kind: input, shape index: {}]   ;;  %s765_s6 = inlined_call_operand.vmem [shape: f32[1,128], index: 6, kind: output, shape index: {}]   ;;  %s766_s4 = inlined_call_operand.vmem [shape: f32[6,96], index: 4, kind: input, shape index: {}]   ;;  %s767_s1 = inlined_call_operand.vmem [shape: f32[3,128], index: 1, kind: input, shape index: {}]  }
   0x1   :  { %v585_v0 = vld [vmem:[%s761_s0] sm:$0xff]   ;;  %583 = vset.pattern.permute.xlu0 %v626_v1  ;;  %584 = vset.pattern.permute.xlu1 %v626_v1  ;;  %v586_v2 = vld [vmem:[%s761_s0 + $0x8] sm:$0xff]   ;;  %v587_v4 = vld [vmem:[%s761_s0 + $0x10] sm:$0xff]   ;;  %28 = vst [vmem:[%s765_s6] sm:$0x1] %v628_v24  ;;  %vm629_vm1 = vmmov 0   ;;  %vm286_vm2 = vcmask 785408  }
   0x2   :  { %516 = vmatprep.subr.bf16.mxu0 %v585_v0  ;;  %v588_v3 = vld [vmem:[%s762_s2] sm:$0xff]   ;;  %v49_v6 = vld [vmem:[%s763_s3 + $0x10] sm:$0xff]  ;;  %v589_v7 = vld [vmem:[%s762_s2 + $0x8] sm:$0xff]   ;;  %561 = vmatprep.subr.bf16.mxu1 %v627_v23 }
   0x3   :  { %517 = vmatpush3.bf16.msra.mxu0 %v585_v0  ;;  %522 = vmatprep.mubr.msk.bf16.mxu0 %vm167_vm0, %v588_v3  ;;  %v47_v5 = vld [vmem:[%s763_s3] sm:$0xff]  ;;  %v590_v8 = vld [vmem:[%s762_s2 + $0x10] sm:$0xff]   ;;  %v48_v9 = vld [vmem:[%s763_s3 + $0x8] sm:$0xff] }
   0x4   :  { %518 = vmatprep.subr.bf16.mxu0 %v586_v2  ;;  %61 = vperm.xlu0 %583, %v47_v5   ;;  %v50_v10 = vld [vmem:[%s763_s3 + $0x18] sm:$0xff]  ;;  %v51_v11 = vld [vmem:[%s763_s3 + $0x20] sm:$0xff]  ;;  %v52_v12 = vld [vmem:[%s763_s3 + $0x28] sm:$0xff] }
   0x5   :  { %71 = vperm.xlu1 %584, %v49_v6   ;;  %v591_v13 = vld [vmem:[%s762_s2 + $0x18] sm:$0xff]   ;;  %v592_v14 = vld [vmem:[%s762_s2 + $0x20] sm:$0xff]   ;;  %v53_v15 = vld [vmem:[%s763_s3 + $0x30] sm:$0xff]  ;;  %558 = vmatprep.mubr.msk.f32.mxu1 %vm629_vm1, %v628_v24 }
   0x6   :  { %v54_v16 = vld [vmem:[%s763_s3 + $0x38] sm:$0xff]  ;;  %v55_v17 = vld [vmem:[%s763_s3 + $0x40] sm:$0xff]  ;;  %v56_v18 = vld [vmem:[%s763_s3 + $0x48] sm:$0xff] }
   0x7   :  { %519 = vmatpush3.bf16.msra.mxu0 %v586_v2  ;;  %v593_v19 = vld [vmem:[%s762_s2 + $0x28] sm:$0xff]   ;;  %v57_v20 = vld [vmem:[%s763_s3 + $0x50] sm:$0xff]  ;;  %v58_v21 = vld [vmem:[%s763_s3 + $0x58] sm:$0xff] }
   0x8   :  { %520 = vmatprep.subr.bf16.mxu0 %v587_v4  ;;  %66 = vperm.xlu0 %583, %v48_v9   ;;  %v280_v22 = vld [vmem:[%s764_s5] sm:$0x3f] }
   0x9   :  { %76 = vperm.xlu1 %584, %v50_v10  }
   0xb   :  { %521 = vmatpush3.bf16.msra.mxu0 %v587_v4 }
   0xc   :  { %81 = vperm.xlu0 %583, %v51_v11  }
   0xd   :  { %86 = vperm.xlu1 %584, %v52_v12  }
   0xe   :  { %523 = vmatmul.mubr.msk.bf16.vlgmr.msra.gmra.mrb[0].mxu0 %vm167_vm0, %v589_v7 }
   0xf   :  { %526 = vmatprep.mubr.msk.bf16.mxu0 %vm167_vm0, %v590_v8 }
  0x10   :  { %91 = vperm.xlu0 %583, %v53_v15   ;;  %v279_v15 = vld [vmem:[%s766_s4] sm:$0x3f] }
  0x11   :  { %96 = vperm.xlu1 %584, %v54_v16  }
  0x14   :  { %101 = vperm.xlu0 %583, %v55_v17  }
  0x15   :  { %106 = vperm.xlu1 %584, %v56_v18  }
  0x16   :  { %527 = vmatmul.mubr.msk.bf16.gmra.mrb[4].mxu0 %vm167_vm0, %v591_v13 }
  0x17   :  { %530 = vmatprep.mubr.msk.bf16.mxu0 %vm167_vm0, %v592_v14 }
  0x18   :  { %111 = vperm.xlu0 %583, %v57_v20  }
  0x19   :  { %116 = vperm.xlu1 %584, %v58_v21  }
  0x1c   :  { %283 = vperm.xlu0 %583, %v280_v22  }
  0x1e   :  { %531 = vmatmul.mubr.msk.bf16.gmra.mrb[8].mxu0 %vm167_vm0, %v593_v19 }
  0x83   :  { %v62_v25 = vpop.permute.xlu0 %61 }
  0x84   :  { %v72_v26 = vpop.permute.xlu1 %71 }
  0x87   :  { %v67_v27 = vpop.permute.xlu0 %66 }
  0x88   :  { %v77_v28 = vpop.permute.xlu1 %76 }
  0x8b   :  { %v82_v29 = vpop.permute.xlu0 %81 }
  0x8c   :  { %v87_v30 = vpop.permute.xlu1 %86 }
  0x8f   :  { %v92_v38 = vpop.permute.xlu0 %91 }
  0x90   :  { %v97_v42 = vpop.permute.xlu1 %96 }
  0x93   :  { %v102_v50 = vpop.permute.xlu0 %101 }
  0x94   :  { %v107_v55 = vpop.permute.xlu1 %106 }
  0x97   :  { %v112_v62 = vpop.permute.xlu0 %111 }
  0x98   :  { %v117_v3 = vpop.permute.xlu1 %116 }
  0x9b   :  { %v284_v16 = vpop.permute.xlu0 %283 }
  0xe1   :  { %v524_v31 = vpop.f32.mrb[0].mxu0 }
  0xe2   :  { %v229_v32 = vadd.f32 %v524_v31, %v72_v26  ;;  %v220_v33 = vpop.f32.mrb[1].mxu0 }
  0xe3   :  { %v221_v34 = vadd.f32 %v220_v33, %v62_v25  ;;  %v525_v35 = vpop.f32.mrb[2].mxu0 }
  0xe4   :  { %v232_v36 = vadd.f32 %v525_v35, %v77_v28  ;;  %v223_v37 = vpop.f32.mrb[3].mxu0  ;;  %v269_v40 = vmax.f32 %v229_v32, 0.0 }
  0xe5   :  { %v224_v39 = vadd.f32 %v223_v37, %v67_v27  ;;  %v267_v43 = vmax.f32 %v221_v34, 0.0 }
  0xe6   :  { %v270_v41 = vmax.f32 %v232_v36, 0.0 }
  0xe7   :  { %v268_v44 = vmax.f32 %v224_v39, 0.0 }
  0xe8   :  { %v565_v45 = vpack.c.bf16 %v270_v41, %v269_v40 }
  0xe9   :  { %v528_v46 = vpop.f32.mrb[4].mxu0  ;;  %v562_v47 = vpack.c.bf16 %v268_v44, %v267_v43 }
  0xea   :  { %v245_v48 = vadd.f32 %v528_v46, %v92_v38  ;;  %v236_v49 = vpop.f32.mrb[5].mxu0 }
  0xeb   :  { %v237_v51 = vadd.f32 %v236_v49, %v82_v29  ;;  %v529_v52 = vpop.f32.mrb[6].mxu0  ;;  %563 = vmatpush3.bf16.msra.mxu1 %v562_v47 }
  0xec   :  { %v248_v53 = vadd.f32 %v529_v52, %v97_v42  ;;  %v239_v54 = vpop.f32.mrb[7].mxu0  ;;  %564 = vmatprep.subr.bf16.mxu1 %v627_v23  ;;  %v273_v57 = vmax.f32 %v245_v48, 0.0 }
  0xed   :  { %v240_v56 = vadd.f32 %v239_v54, %v87_v30  ;;  %v271_v59 = vmax.f32 %v237_v51, 0.0 }
  0xee   :  { %v274_v58 = vmax.f32 %v248_v53, 0.0 }
  0xef   :  { %v272_v60 = vmax.f32 %v240_v56, 0.0  ;;  %566 = vmatpush3.bf16.msra.mxu1 %v565_v45 }
  0xf0   :  { %v571_v61 = vpack.c.bf16 %v274_v58, %v273_v57  ;;  %567 = vmatprep.subr.bf16.mxu1 %v627_v23 }
  0xf1   :  { %v568_v63 = vpack.c.bf16 %v272_v60, %v271_v59  ;;  %v532_v0 = vpop.f32.mrb[8].mxu0 }
  0xf2   :  { %v261_v1 = vadd.f32 %v532_v0, %v112_v62  ;;  %v252_v2 = vpop.f32.mrb[9].mxu0 }
  0xf3   :  { %v253_v4 = vadd.f32 %v252_v2, %v102_v50  ;;  %v533_v5 = vpop.f32.mrb[10].mxu0  ;;  %569 = vmatpush3.bf16.msra.mxu1 %v568_v63 }
  0xf4   :  { %v264_v6 = vadd.f32 %v533_v5, %v117_v3  ;;  %v255_v7 = vpop.f32.mrb[11].mxu0  ;;  %570 = vmatprep.subr.bf16.mxu1 %v627_v23  ;;  %v277_v9 = vmax.f32 %v261_v1, 0.0 }
  0xf5   :  { %v256_v8 = vadd.f32 %v255_v7, %v107_v55  ;;  %v275_v11 = vmax.f32 %v253_v4, 0.0 }
  0xf6   :  { %v278_v10 = vmax.f32 %v264_v6, 0.0 }
  0xf7   :  { %v276_v12 = vmax.f32 %v256_v8, 0.0  ;;  %572 = vmatpush3.bf16.msra.mxu1 %v571_v61 }
  0xf8   :  { %v577_v13 = vpack.c.bf16 %v278_v10, %v277_v9  ;;  %573 = vmatprep.subr.bf16.mxu1 %v627_v23 }
  0xf9   :  { %v574_v14 = vpack.c.bf16 %v276_v12, %v275_v11  ;;  %v361_v12 = vlaneseq }
  0xfb   :  { %575 = vmatpush3.bf16.msra.mxu1 %v574_v14 }
  0xfc   :  { %576 = vmatprep.subr.bf16.mxu1 %v627_v23  ;;  %v368_v23 = vld [vmem:[%s767_s1] sm:$0x7] }
  0xff   :  { %578 = vmatpush3.bf16.msra.mxu1 %v577_v13  ;;  %v362_v13 = vand.u32 127, %v361_v12 }
 0x101   :  { %vm365_vm3 = vcmp.lt.s32.totalorder %v362_v13, 8 }
 0x102   :  { %559 = vmatmul.mubr.msk.f32.vlgmr.msra.gmra.mrb[0].mxu1 %vm286_vm2, %v279_v15 }
 0x1d5   :  { %v356_v17 = vpop.f32.mrb[0].mxu1 }
 0x1d6   :  { %v357_v18 = vadd.f32 %v356_v17, %v284_v16  ;;  %v560_v19 = vpop.f32.mrb[1].mxu1 }
 0x1d8   :  { %v484_v20 = vclamps-f32 %v357_v18, 10.0  ;;  %v400_v25 = vrot.slane %v357_v18, 1  ;;  %v429_v26 = vrot.slane %v357_v18, 2  ;;  %v374_v27 = vsub.f32 %v368_v23, %v357_v18 }
 0x1da   :  { %v371_v21 = vsub.f32 0.0, %v484_v20  ;;  %v402_v28 = vsub.f32 %v368_v23, %v400_v25  ;;  %v431_v29 = vsub.f32 %v368_v23, %v429_v26  ;;  %v375_v31 = vadd.f32 0.5, %v374_v27 }
 0x1db   :  { %v486_v32 = vadd.f32 -0.5, %v374_v27  ;;  %v483_v20 = vsel %vm365_vm3, 1.0, %v628_v24 }
 0x1dc   :  { %v372_v22 = vmul.f32 1.442695, %v371_v21  ;;  %v403_v33 = vadd.f32 0.5, %v402_v28  ;;  %v489_v36 = vadd.f32 -0.5, %v402_v28  ;;  %v432_v38 = vadd.f32 0.5, %v431_v29 }
 0x1dd   :  { %v492_v39 = vadd.f32 -0.5, %v431_v29  ;;  %v459_v25 = vmul.f32 1.442695, %v483_v20  ;;  %v458_v28 = vld [vmem:[%s765_s6] sm:$0x1] }
 0x1de   :  { %594 = vpow2.f32 %v372_v22 }
 0x1e8   :  { %v595_v30 = vpop.eup %594 }
 0x1e9   :  { %v377_v34 = vrot.slane %v595_v30, 1  ;;  %v404_v35 = vrot.slane %v595_v30, 2  ;;  %v433_v37 = vrot.slane %v595_v30, 3 }
 0x1eb   :  { %v379_v40 = vmul.f32 %v377_v34, %v375_v31  ;;  %v387_v41 = vmul.f32 %v486_v32, %v377_v34  ;;  %v406_v42 = vmul.f32 %v404_v35, %v403_v33  ;;  %v414_v43 = vmul.f32 %v489_v36, %v404_v35 }
 0x1ec   :  { %v435_v44 = vmul.f32 %v433_v37, %v432_v38  ;;  %v443_v45 = vmul.f32 %v492_v39, %v433_v37 }
 0x1ed   :  { %v485_v46 = vmul.f32 -1.442695, %v379_v40  ;;  %v487_v47 = vmul.f32 -1.442695, %v387_v41  ;;  %v488_v48 = vmul.f32 -1.442695, %v406_v42 }
 0x1ee   :  { %v490_v49 = vmul.f32 -1.442695, %v414_v43  ;;  %v491_v50 = vmul.f32 -1.442695, %v435_v44  ;;  %v493_v51 = vmul.f32 -1.442695, %v443_v45 }
 0x1ef   :  { %596 = vpow2.f32 %v485_v46 }
 0x1f0   :  { %598 = vpow2.f32 %v487_v47 }
 0x1f1   :  { %600 = vpow2.f32 %v488_v48 }
 0x1f2   :  { %602 = vpow2.f32 %v490_v49 }
 0x1f3   :  { %604 = vpow2.f32 %v491_v50 }
 0x1f4   :  { %606 = vpow2.f32 %v493_v51 }
 0x1f9   :  { %v597_v52 = vpop.eup %596 }
 0x1fa   :  { %v599_v53 = vpop.eup %598  ;;  %v383_v54 = vadd.f32 1.0, %v597_v52 }
 0x1fb   :  { %v601_v55 = vpop.eup %600  ;;  %v391_v56 = vadd.f32 1.0, %v599_v53 }
 0x1fc   :  { %v603_v57 = vpop.eup %602  ;;  %608 = vrcp.f32 %v383_v54  ;;  %v410_v58 = vadd.f32 1.0, %v601_v55 }
 0x1fd   :  { %v605_v59 = vpop.eup %604  ;;  %610 = vrcp.f32 %v391_v56  ;;  %v418_v60 = vadd.f32 1.0, %v603_v57 }
 0x1fe   :  { %v607_v61 = vpop.eup %606  ;;  %612 = vrcp.f32 %v410_v58  ;;  %v439_v62 = vadd.f32 1.0, %v605_v59 }
 0x1ff   :  { %614 = vrcp.f32 %v418_v60  ;;  %v447_v63 = vadd.f32 1.0, %v607_v61 }
 0x200   :  { %616 = vrcp.f32 %v439_v62 }
 0x201   :  { %618 = vrcp.f32 %v447_v63 }
 0x206   :  { %v609_v0 = vpop.eup %608 }
 0x207   :  { %v611_v1 = vpop.eup %610 }
 0x208   :  { %v613_v2 = vpop.eup %612  ;;  %v394_v3 = vsub.f32 %v609_v0, %v611_v1 }
 0x209   :  { %v615_v4 = vpop.eup %614 }
 0x20a   :  { %v617_v5 = vpop.eup %616  ;;  %v395_v6 = vmax.f32 %v394_v3, 1e-09  ;;  %v421_v7 = vsub.f32 %v613_v2, %v615_v4 }
 0x20b   :  { %v619_v8 = vpop.eup %618 }
 0x20c   :  { %620 = vlog2.f32 %v395_v6  ;;  %v422_v9 = vmax.f32 %v421_v7, 1e-09  ;;  %v450_v10 = vsub.f32 %v617_v5, %v619_v8 }
 0x20e   :  { %622 = vlog2.f32 %v422_v9  ;;  %v451_v11 = vmax.f32 %v450_v10, 1e-09 }
 0x210   :  { %624 = vlog2.f32 %v451_v11 }
 0x216   :  { %v621_v14 = vpop.eup %620 }
 0x217   :  { %v397_v15 = vmul.f32 0.6931472, %v621_v14 }
 0x218   :  { %v623_v16 = vpop.eup %622 }
 0x219   :  { %v398_v17 = vsub.f32 0.0, %v397_v15  ;;  %v424_v18 = vmul.f32 0.6931472, %v623_v16 }
 0x21a   :  { %v625_v19 = vpop.eup %624 }
 0x21b   :  { %v426_v21 = vrot.slane %v424_v18, 1  ;;  %v453_v22 = vmul.f32 0.6931472, %v625_v19 }
 0x21d   :  { %v428_v23 = vsub.f32 %v398_v17, %v426_v21  ;;  %v455_v26 = vrot.slane %v453_v22, 2 }
 0x21f   :  { %v457_v27 = vsub.f32 %v428_v23, %v455_v26 }
 0x221   :  { %v460_v29 = vmul.f32 %v459_v25, %v457_v27 }
 0x223   :  { %v461_v30 = vadd.f32 %v460_v29, %v458_v28 }
 0x225   :  { %462 = vst [vmem:[%s765_s6] sm:$0x1] %v461_v30 }

// kernel: squeeze.32
= control target key start
LH: loop header
LB: loop body
LE: loop exit
PB: predicated region body
PF: predicated region fallthrough
CT: control target
= control target key end

     0   :  { %s156_s8 = smov 104   ;;  %vm34_vm0 = vcmask 64512   ;;  %s157_s9 = smov 112   ;;  %vm40_vm1 = vcmask 1048512   ;;  %vm46_vm2 = vcmask 982912   ;;  %vm52_vm3 = vcmask 917312   ;;  %s187_s0 = inlined_call_operand.vmem [shape: bf16[2,1,8,8], index: 0, kind: input, shape index: {}]   ;;  %s188_s1 = inlined_call_operand.vmem [shape: bf16[1,128], index: 1, kind: output, shape index: {}]  }
   0x1   :  { %v136_v0 = vld [vmem:[%s187_s0] sm:$0xff]   ;;  %s155_s0 = smov 120   ;;  %s158_s10 = smov 96   ;;  %vm58_vm4 = vcmask 851712   ;;  %vm64_vm5 = vcmask 786112   ;;  %vm70_vm6 = vcmask 720512  }
   0x2   :  { %v138_v1 = vunpack.c.h.bf16 %v136_v0  ;;  %v137_v2 = vunpack.c.l.bf16 %v136_v0  ;;  %s159_s11 = smov 88   ;;  %s160_s12 = smov 80   ;;  %vm76_vm7 = vcmask 654912   ;;  %vm82_vm8 = vcmask 589312  }
   0x3   :  { %s161_s13 = smov 72   ;;  %s162_s14 = smov 64   ;;  %vm88_vm9 = vcmask 523712   ;;  %vm94_vm10 = vcmask 458112   ;;  %vm100_vm11 = vcmask 392512   ;;  %vm106_vm12 = vcmask 326912  }
   0x4   :  { %19 = vst [vmem:[#allocation1 + $0x8] sm:$0xff] %v138_v1  ;;  %32 = vst [vmem:[#allocation1] sm:$0xff] %v137_v2  ;;  %s163_s15 = smov 56   ;;  %s164_s16 = smov 48   ;;  %vm112_vm13 = vcmask 261312   ;;  %vm118_vm14 = vcmask 195712  }
   0x5   :  { %s165_s17 = smov 40   ;;  %s166_s18 = smov 32   ;;  %vm124_vm15 = vcmask 130112   ;;  %v170_v35 = vmov 0.0  }
   0x6   :  { %s167_s19 = smov 24   ;;  %s168_s20 = smov 16  }
   0x7   :  { %s169_s21 = smov 8  }
   0xb   :  { %v37_v3 = vld [vmem:[#allocation1 + $0xf] sm:$0x1]   ;;  %v49_v4 = vld [vmem:[#allocation1 + $0xd] sm:$0x1]   ;;  %v43_v5 = vld [vmem:[#allocation1 + $0xe] sm:$0x1]  }
   0xc   :  { %38 = vrot.lane.b32.xlu0 %v37_v3, %s155_s0  ;;  %50 = vrot.lane.b32.xlu1 %v49_v4, %s156_s8  ;;  %v55_v6 = vld [vmem:[#allocation1 + $0xc] sm:$0x1]   ;;  %v33_v7 = vld [vmem:[#allocation1] sm:$0x1]   ;;  %v61_v8 = vld [vmem:[#allocation1 + $0xb] sm:$0x1]  }
   0xd   :  { %v67_v9 = vld [vmem:[#allocation1 + $0xa] sm:$0x1]   ;;  %35 = vst.msk [vmem:[#allocation0] sm:$0x1] %vm34_vm0, %v33_v7   ;;  %v73_v10 = vld [vmem:[#allocation1 + $0x9] sm:$0x1]  }
   0xe   :  { %v79_v11 = vld [vmem:[#allocation1 + $0x8] sm:$0x1]   ;;  %v85_v12 = vld [vmem:[#allocation1 + $0x7] sm:$0x1]   ;;  %v91_v13 = vld [vmem:[#allocation1 + $0x6] sm:$0x1]  }
   0xf   :  { %v97_v14 = vld [vmem:[#allocation1 + $0x5] sm:$0x1]   ;;  %v103_v15 = vld [vmem:[#allocation1 + $0x4] sm:$0x1]   ;;  %v109_v16 = vld [vmem:[#allocation1 + $0x3] sm:$0x1]  }
  0x10   :  { %44 = vrot.lane.b32.xlu0 %v43_v5, %s157_s9  ;;  %56 = vrot.lane.b32.xlu1 %v55_v6, %s158_s10  ;;  %v115_v17 = vld [vmem:[#allocation1 + $0x2] sm:$0x1]   ;;  %v121_v18 = vld [vmem:[#allocation1 + $0x1] sm:$0x1]  }
  0x14   :  { %62 = vrot.lane.b32.xlu0 %v61_v8, %s159_s11  ;;  %68 = vrot.lane.b32.xlu1 %v67_v9, %s160_s12 }
  0x18   :  { %74 = vrot.lane.b32.xlu0 %v73_v10, %s161_s13  ;;  %80 = vrot.lane.b32.xlu1 %v79_v11, %s162_s14 }
  0x1c   :  { %86 = vrot.lane.b32.xlu0 %v85_v12, %s163_s15  ;;  %92 = vrot.lane.b32.xlu1 %v91_v13, %s164_s16 }
  0x20   :  { %98 = vrot.lane.b32.xlu0 %v97_v14, %s165_s17  ;;  %104 = vrot.lane.b32.xlu1 %v103_v15, %s166_s18 }
  0x24   :  { %110 = vrot.lane.b32.xlu0 %v109_v16, %s167_s19  ;;  %116 = vrot.lane.b32.xlu1 %v115_v17, %s168_s20 }
  0x28   :  { %122 = vrot.lane.b32.xlu0 %v121_v18, %s169_s21 }
  0x7e   :  { %v39_v19 = vpop.permute.xlu0 %38   ;;  %v51_v20 = vpop.permute.xlu1 %50  }
  0x7f   :  { %41 = vst.msk [vmem:[#allocation0] sm:$0x1] %vm40_vm1, %v39_v19  }
  0x82   :  { %v45_v21 = vpop.permute.xlu0 %44   ;;  %v57_v22 = vpop.permute.xlu1 %56  }
  0x83   :  { %47 = vst.msk [vmem:[#allocation0] sm:$0x1] %vm46_vm2, %v45_v21  }
  0x84   :  { %53 = vst.msk [vmem:[#allocation0] sm:$0x1] %vm52_vm3, %v51_v20  }
  0x85   :  { %59 = vst.msk [vmem:[#allocation0] sm:$0x1] %vm58_vm4, %v57_v22  }
  0x86   :  { %v63_v23 = vpop.permute.xlu0 %62   ;;  %v69_v24 = vpop.permute.xlu1 %68  }
  0x87   :  { %65 = vst.msk [vmem:[#allocation0] sm:$0x1] %vm64_vm5, %v63_v23  }
  0x88   :  { %71 = vst.msk [vmem:[#allocation0] sm:$0x1] %vm70_vm6, %v69_v24  }
  0x8a   :  { %v75_v25 = vpop.permute.xlu0 %74   ;;  %v81_v26 = vpop.permute.xlu1 %80  }
  0x8b   :  { %77 = vst.msk [vmem:[#allocation0] sm:$0x1] %vm76_vm7, %v75_v25  }
  0x8c   :  { %83 = vst.msk [vmem:[#allocation0] sm:$0x1] %vm82_vm8, %v81_v26  }
  0x8e   :  { %v87_v27 = vpop.permute.xlu0 %86   ;;  %v93_v28 = vpop.permute.xlu1 %92  }
  0x8f   :  { %89 = vst.msk [vmem:[#allocation0] sm:$0x1] %vm88_vm9, %v87_v27  }
  0x90   :  { %95 = vst.msk [vmem:[#allocation0] sm:$0x1] %vm94_vm10, %v93_v28  }
  0x92   :  { %v99_v29 = vpop.permute.xlu0 %98   ;;  %v105_v30 = vpop.permute.xlu1 %104  }
  0x93   :  { %101 = vst.msk [vmem:[#allocation0] sm:$0x1] %vm100_vm11, %v99_v29  }
  0x94   :  { %107 = vst.msk [vmem:[#allocation0] sm:$0x1] %vm106_vm12, %v105_v30  }
  0x96   :  { %v111_v31 = vpop.permute.xlu0 %110   ;;  %v117_v32 = vpop.permute.xlu1 %116  }
  0x97   :  { %113 = vst.msk [vmem:[#allocation0] sm:$0x1] %vm112_vm13, %v111_v31  }
  0x98   :  { %119 = vst.msk [vmem:[#allocation0] sm:$0x1] %vm118_vm14, %v117_v32  }
  0x9a   :  { %v123_v33 = vpop.permute.xlu0 %122  }
  0x9b   :  { %125 = vst.msk [vmem:[#allocation0] sm:$0x1] %vm124_vm15, %v123_v33  }
  0xa2   :  { %v130_v34 = vld [vmem:[#allocation0] sm:$0x3] }
  0xa3   :  { %v131_v36 = vpack.c.bf16 %v170_v35, %v130_v34 }
  0xa5   :  { %133 = vst [vmem:[%s188_s1] sm:$0x1] %v131_v36 }

// kernel: squeeze.298
= control target key start
LH: loop header
LB: loop body
LE: loop exit
PB: predicated region body
PF: predicated region fallthrough
CT: control target
= control target key end

     0   :  { %s131_s10 = smov 120   ;;  %s132_s11 = smov 104   ;;  %vm3_vm0 = vcmask 64512   ;;  %vm9_vm1 = vcmask 1048512   ;;  %vm15_vm2 = vcmask 982912   ;;  %vm21_vm3 = vcmask 917312   ;;  %s207_s0 = inlined_call_operand.vmem [shape: f32[2,1,8,8], index: 0, kind: input, shape index: {}]   ;;  %s208_s1 = inlined_call_operand.vmem [shape: f32[1,128], index: 1, kind: output, shape index: {}]  }
   0x1   :  { %v101_v0 = vld [vmem:[%s207_s0 + $0xf] sm:$0x1]   ;;  %v103_v1 = vld [vmem:[%s207_s0 + $0xd] sm:$0x1]   ;;  %v102_v2 = vld [vmem:[%s207_s0 + $0xe] sm:$0x1]  }
   0x2   :  { %7 = vrot.lane.b32.xlu0 %v101_v0, %s131_s10  ;;  %19 = vrot.lane.b32.xlu1 %v103_v1, %s132_s11  ;;  %v104_v3 = vld [vmem:[%s207_s0 + $0xc] sm:$0x1]   ;;  %s133_s16 = smov 112   ;;  %s134_s17 = smov 96   ;;  %v105_v4 = vld [vmem:[%s207_s0 + $0xb] sm:$0x1]  }
   0x3   :  { %v106_v5 = vld [vmem:[%s207_s0 + $0xa] sm:$0x1]   ;;  %v2_v6 = vld [vmem:[%s207_s0] sm:$0x1]   ;;  %s135_s24 = smov 88   ;;  %s136_s25 = smov 80  }
   0x4   :  { %4 = vst.msk [vmem:[#allocation0] sm:$0x1] %vm3_vm0, %v2_v6   ;;  %v107_v7 = vld [vmem:[%s207_s0 + $0x9] sm:$0x1]   ;;  %v108_v8 = vld [vmem:[%s207_s0 + $0x8] sm:$0x1]  }
   0x5   :  { %s137_s30 = smov 72   ;;  %s138_s2 = smov 64   ;;  %v109_v9 = vld [vmem:[%s207_s0 + $0x7] sm:$0x1]   ;;  %v110_v10 = vld [vmem:[%s207_s0 + $0x6] sm:$0x1]  }
   0x6   :  { %13 = vrot.lane.b32.xlu0 %v102_v2, %s133_s16  ;;  %25 = vrot.lane.b32.xlu1 %v104_v3, %s134_s17  ;;  %s139_s7 = smov 56   ;;  %s140_s8 = smov 48   ;;  %v111_v11 = vld [vmem:[%s207_s0 + $0x5] sm:$0x1]   ;;  %v112_v12 = vld [vmem:[%s207_s0 + $0x4] sm:$0x1]  }
   0x7   :  { %s141_s13 = smov 40   ;;  %s142_s14 = smov 32   ;;  %v113_v13 = vld [vmem:[%s207_s0 + $0x3] sm:$0x1]   ;;  %v114_v14 = vld [vmem:[%s207_s0 + $0x2] sm:$0x1]  }
   0x8   :  { %s143_s19 = smov 24   ;;  %s144_s20 = smov 16   ;;  %v115_v15 = vld [vmem:[%s207_s0 + $0x1] sm:$0x1]   ;;  %vm27_vm4 = vcmask 851712   ;;  %vm33_vm5 = vcmask 786112  }
   0x9   :  { %s145_s0 = smov 8   ;;  %vm39_vm6 = vcmask 720512   ;;  %vm45_vm7 = vcmask 654912   ;;  %vm51_vm8 = vcmask 589312   ;;  %vm57_vm9 = vcmask 523712  }
   0xa   :  { %31 = vrot.lane.b32.xlu0 %v105_v4, %s135_s24  ;;  %37 = vrot.lane.b32.xlu1 %v106_v5, %s136_s25  ;;  %vm63_vm10 = vcmask 458112   ;;  %vm69_vm11 = vcmask 392512   ;;  %vm75_vm12 = vcmask 326912   ;;  %vm81_vm13 = vcmask 261312  }
   0xb   :  { %vm87_vm14 = vcmask 195712   ;;  %vm93_vm15 = vcmask 130112  }
   0xe   :  { %43 = vrot.lane.b32.xlu0 %v107_v7, %s137_s30  ;;  %49 = vrot.lane.b32.xlu1 %v108_v8, %s138_s2 }
  0x12   :  { %55 = vrot.lane.b32.xlu0 %v109_v9, %s139_s7  ;;  %61 = vrot.lane.b32.xlu1 %v110_v10, %s140_s8 }
  0x16   :  { %67 = vrot.lane.b32.xlu0 %v111_v11, %s141_s13  ;;  %73 = vrot.lane.b32.xlu1 %v112_v12, %s142_s14 }
  0x1a   :  { %79 = vrot.lane.b32.xlu0 %v113_v13, %s143_s19  ;;  %85 = vrot.lane.b32.xlu1 %v114_v14, %s144_s20 }
  0x1e   :  { %91 = vrot.lane.b32.xlu0 %v115_v15, %s145_s0 }
  0x74   :  { %v8_v16 = vpop.permute.xlu0 %7   ;;  %v20_v17 = vpop.permute.xlu1 %19  }
  0x75   :  { %10 = vst.msk [vmem:[#allocation0] sm:$0x1] %vm9_vm1, %v8_v16  }
  0x78   :  { %v14_v18 = vpop.permute.xlu0 %13   ;;  %v26_v19 = vpop.permute.xlu1 %25  }
  0x79   :  { %16 = vst.msk [vmem:[#allocation0] sm:$0x1] %vm15_vm2, %v14_v18  }
  0x7a   :  { %22 = vst.msk [vmem:[#allocation0] sm:$0x1] %vm21_vm3, %v20_v17  }
  0x7b   :  { %28 = vst.msk [vmem:[#allocation0] sm:$0x1] %vm27_vm4, %v26_v19  }
  0x7c   :  { %v32_v20 = vpop.permute.xlu0 %31   ;;  %v38_v21 = vpop.permute.xlu1 %37  }
  0x7d   :  { %34 = vst.msk [vmem:[#allocation0] sm:$0x1] %vm33_vm5, %v32_v20  }
  0x7e   :  { %40 = vst.msk [vmem:[#allocation0] sm:$0x1] %vm39_vm6, %v38_v21  }
  0x80   :  { %v44_v22 = vpop.permute.xlu0 %43   ;;  %v50_v23 = vpop.permute.xlu1 %49  }
  0x81   :  { %46 = vst.msk [vmem:[#allocation0] sm:$0x1] %vm45_vm7, %v44_v22  }
  0x82   :  { %52 = vst.msk [vmem:[#allocation0] sm:$0x1] %vm51_vm8, %v50_v23  }
  0x84   :  { %v56_v24 = vpop.permute.xlu0 %55   ;;  %v62_v25 = vpop.permute.xlu1 %61  }
  0x85   :  { %58 = vst.msk [vmem:[#allocation0] sm:$0x1] %vm57_vm9, %v56_v24  }
  0x86   :  { %64 = vst.msk [vmem:[#allocation0] sm:$0x1] %vm63_vm10, %v62_v25  }
  0x88   :  { %v68_v26 = vpop.permute.xlu0 %67   ;;  %v74_v27 = vpop.permute.xlu1 %73  }
  0x89   :  { %70 = vst.msk [vmem:[#allocation0] sm:$0x1] %vm69_vm11, %v68_v26  }
  0x8a   :  { %76 = vst.msk [vmem:[#allocation0] sm:$0x1] %vm75_vm12, %v74_v27  }
  0x8c   :  { %v80_v28 = vpop.permute.xlu0 %79   ;;  %v86_v29 = vpop.permute.xlu1 %85  }
  0x8d   :  { %82 = vst.msk [vmem:[#allocation0] sm:$0x1] %vm81_vm13, %v80_v28  }
  0x8e   :  { %88 = vst.msk [vmem:[#allocation0] sm:$0x1] %vm87_vm14, %v86_v29  }
  0x90   :  { %v92_v30 = vpop.permute.xlu0 %91  }
  0x91   :  { %94 = vst.msk [vmem:[#allocation0] sm:$0x1] %vm93_vm15, %v92_v30  }
  0x98   :  { %v98_v31 = vld [vmem:[#allocation0] sm:$0x1] }
  0x99   :  { %100 = vst [vmem:[%s208_s1] sm:$0x1] %v98_v31 }

// kernel: squeeze.28
= control target key start
LH: loop header
LB: loop body
LE: loop exit
PB: predicated region body
PF: predicated region fallthrough
CT: control target
= control target key end

     0   :  { %s740_s14 = smov 122   ;;  %s741_s15 = smov 124   ;;  %vm258_vm0 = vcmask 15360   ;;  %vm264_vm1 = vcmask 1048560   ;;  %vm276_vm2 = vcmask 1015760   ;;  %vm270_vm3 = vcmask 1032160   ;;  %s828_s0 = inlined_call_operand.vmem [shape: bf16[2,1,8,4,2], index: 0, kind: input, shape index: {}]   ;;  %s829_s1 = inlined_call_operand.vmem [shape: bf16[1,128], index: 1, kind: output, shape index: {}]  }
   0x1   :  { %v660_v0 = vld [vmem:[%s828_s0 + $0x18] sm:$0xff]   ;;  %v664_v1 = vld [vmem:[%s828_s0 + $0x10] sm:$0xff]   ;;  %v668_v2 = vld [vmem:[%s828_s0 + $0x8] sm:$0xff]   ;;  %s742_s16 = smov 120   ;;  %s743_s17 = smov 118   ;;  %vm282_vm4 = vcmask 999360  }
   0x2   :  { %v17_v3 = vunpack.c.h.bf16 %v660_v0  ;;  %v49_v4 = vunpack.c.l.bf16 %v660_v0  ;;  %v672_v5 = vld [vmem:[%s828_s0] sm:$0xff]   ;;  %v81_v6 = vunpack.c.h.bf16 %v664_v1  ;;  %v113_v7 = vunpack.c.l.bf16 %v664_v1  ;;  %s739_s0 = smov 126   ;;  %s744_s18 = smov 116  }
   0x3   :  { %v145_v8 = vunpack.c.h.bf16 %v668_v2  ;;  %v177_v9 = vunpack.c.l.bf16 %v668_v2  ;;  %v209_v10 = vunpack.c.h.bf16 %v672_v5  ;;  %v240_v11 = vunpack.c.l.bf16 %v672_v5  ;;  %s745_s19 = smov 114   ;;  %s746_s20 = smov 112  }
   0x4   :  { %20 = vst [vmem:[#allocation1 + $0x70] ss:$8 sps:$4 sm:$0xff] %v17_v3   ;;  %52 = vst [vmem:[#allocation1 + $0x60] ss:$8 sps:$4 sm:$0xff] %v49_v4   ;;  %s747_s21 = smov 110   ;;  %s748_s22 = smov 108  }
   0x5   :  { %84 = vst [vmem:[#allocation1 + $0x50] ss:$8 sps:$4 sm:$0xff] %v81_v6   ;;  %116 = vst [vmem:[#allocation1 + $0x40] ss:$8 sps:$4 sm:$0xff] %v113_v7   ;;  %s749_s23 = smov 106   ;;  %s750_s24 = smov 104  }
   0x6   :  { %148 = vst [vmem:[#allocation1 + $0x30] ss:$8 sps:$4 sm:$0xff] %v145_v8   ;;  %180 = vst [vmem:[#allocation1 + $0x20] ss:$8 sps:$4 sm:$0xff] %v177_v9   ;;  %s751_s25 = smov 102   ;;  %s752_s26 = smov 100  }
   0x7   :  { %212 = vst [vmem:[#allocation1 + $0x10] ss:$8 sps:$4 sm:$0xff] %v209_v10   ;;  %243 = vst [vmem:[#allocation1] ss:$8 sps:$4 sm:$0xff] %v240_v11   ;;  %s753_s27 = smov 98   ;;  %s754_s28 = smov 96  }
   0x8   :  { %s755_s29 = smov 94   ;;  %s756_s30 = smov 92   ;;  %vm288_vm5 = vcmask 982960   ;;  %vm294_vm6 = vcmask 966560   ;;  %vm300_vm7 = vcmask 950160   ;;  %vm306_vm8 = vcmask 933760  }
   0x9   :  { %s757_s2 = smov 90   ;;  %s758_s3 = smov 88   ;;  %vm312_vm9 = vcmask 917360   ;;  %vm318_vm10 = vcmask 900960   ;;  %vm324_vm11 = vcmask 884560   ;;  %vm330_vm12 = vcmask 868160  }
   0xa   :  { %s759_s4 = smov 86   ;;  %s760_s5 = smov 84   ;;  %vm336_vm13 = vcmask 851760   ;;  %vm342_vm14 = vcmask 835360   ;;  %vm348_vm15 = vcmask 818960  }
   0xb   :  { %v261_v12 = vld [vmem:[#allocation1 + $0x7b] sm:$0x1]   ;;  %v273_v13 = vld [vmem:[#allocation1 + $0x79] sm:$0x1]   ;;  %v267_v14 = vld [vmem:[#allocation1 + $0x7a] sm:$0x1]  }
   0xc   :  { %262 = vrot.lane.b32.xlu0 %v261_v12, %s739_s0  ;;  %274 = vrot.lane.b32.xlu1 %v273_v13, %s740_s14  ;;  %v279_v15 = vld [vmem:[#allocation1 + $0x78] sm:$0x1]   ;;  %v285_v16 = vld [vmem:[#allocation1 + $0x73] sm:$0x1]   ;;  %v291_v17 = vld [vmem:[#allocation1 + $0x72] sm:$0x1]  }
   0xd   :  { %v297_v18 = vld [vmem:[#allocation1 + $0x71] sm:$0x1]   ;;  %v303_v19 = vld [vmem:[#allocation1 + $0x70] sm:$0x1]   ;;  %v309_v20 = vld [vmem:[#allocation1 + $0x6b] sm:$0x1]  }
   0xe   :  { %v315_v21 = vld [vmem:[#allocation1 + $0x6a] sm:$0x1]   ;;  %v321_v22 = vld [vmem:[#allocation1 + $0x69] sm:$0x1]   ;;  %v327_v23 = vld [vmem:[#allocation1 + $0x68] sm:$0x1]  }
   0xf   :  { %v333_v24 = vld [vmem:[#allocation1 + $0x63] sm:$0x1]   ;;  %v339_v25 = vld [vmem:[#allocation1 + $0x62] sm:$0x1]   ;;  %v257_v26 = vld [vmem:[#allocation1] sm:$0x1]  }
  0x10   :  { %268 = vrot.lane.b32.xlu0 %v267_v14, %s741_s15  ;;  %280 = vrot.lane.b32.xlu1 %v279_v15, %s742_s16  ;;  %v345_v27 = vld [vmem:[#allocation1 + $0x61] sm:$0x1]   ;;  %v351_v28 = vld [vmem:[#allocation1 + $0x60] sm:$0x1]   ;;  %259 = vst.msk [vmem:[#allocation0] sm:$0x1] %vm258_vm0, %v257_v26  }
  0x11   :  { %v357_v29 = vld [vmem:[#allocation1 + $0x5b] sm:$0x1]   ;;  %v363_v30 = vld [vmem:[#allocation1 + $0x5a] sm:$0x1]   ;;  %v369_v31 = vld [vmem:[#allocation1 + $0x59] sm:$0x1]  }
  0x12   :  { %v375_v32 = vld [vmem:[#allocation1 + $0x58] sm:$0x1]   ;;  %v381_v33 = vld [vmem:[#allocation1 + $0x53] sm:$0x1]   ;;  %v387_v34 = vld [vmem:[#allocation1 + $0x52] sm:$0x1]  }
  0x13   :  { %v393_v35 = vld [vmem:[#allocation1 + $0x51] sm:$0x1]   ;;  %v399_v36 = vld [vmem:[#allocation1 + $0x50] sm:$0x1]   ;;  %s761_s6 = smov 82   ;;  %s762_s7 = smov 80  }
  0x14   :  { %286 = vrot.lane.b32.xlu0 %v285_v16, %s743_s17  ;;  %292 = vrot.lane.b32.xlu1 %v291_v17, %s744_s18  ;;  %v405_v37 = vld [vmem:[#allocation1 + $0x4b] sm:$0x1]   ;;  %v411_v38 = vld [vmem:[#allocation1 + $0x4a] sm:$0x1]   ;;  %s763_s8 = smov 78   ;;  %s764_s9 = smov 76  }
  0x15   :  { %v417_v39 = vld [vmem:[#allocation1 + $0x49] sm:$0x1]   ;;  %v423_v40 = vld [vmem:[#allocation1 + $0x48] sm:$0x1]   ;;  %s765_s10 = smov 74   ;;  %s766_s11 = smov 72  }
  0x16   :  { %v429_v41 = vld [vmem:[#allocation1 + $0x43] sm:$0x1]   ;;  %v435_v42 = vld [vmem:[#allocation1 + $0x42] sm:$0x1]   ;;  %s767_s12 = smov 70   ;;  %s768_s13 = smov 68  }
  0x17   :  { %v441_v43 = vld [vmem:[#allocation1 + $0x41] sm:$0x1]   ;;  %v447_v44 = vld [vmem:[#allocation1 + $0x40] sm:$0x1]   ;;  %s769_s0 = smov 66   ;;  %s770_s14 = smov 64  }
  0x18   :  { %298 = vrot.lane.b32.xlu0 %v297_v18, %s745_s19  ;;  %304 = vrot.lane.b32.xlu1 %v303_v19, %s746_s20  ;;  %v453_v45 = vld [vmem:[#allocation1 + $0x3b] sm:$0x1]   ;;  %v459_v46 = vld [vmem:[#allocation1 + $0x3a] sm:$0x1]   ;;  %s771_s15 = smov 62   ;;  %s772_s16 = smov 60  }
  0x19   :  { %v465_v47 = vld [vmem:[#allocation1 + $0x39] sm:$0x1]   ;;  %v471_v48 = vld [vmem:[#allocation1 + $0x38] sm:$0x1]   ;;  %s773_s17 = smov 58   ;;  %s774_s18 = smov 56  }
  0x1a   :  { %v477_v49 = vld [vmem:[#allocation1 + $0x33] sm:$0x1]   ;;  %v483_v50 = vld [vmem:[#allocation1 + $0x32] sm:$0x1]   ;;  %s775_s19 = smov 54   ;;  %s776_s20 = smov 52  }
  0x1b   :  { %v489_v51 = vld [vmem:[#allocation1 + $0x31] sm:$0x1]   ;;  %v495_v52 = vld [vmem:[#allocation1 + $0x30] sm:$0x1]   ;;  %v501_v53 = vld [vmem:[#allocation1 + $0x2b] sm:$0x1]  }
  0x1c   :  { %310 = vrot.lane.b32.xlu0 %v309_v20, %s747_s21  ;;  %316 = vrot.lane.b32.xlu1 %v315_v21, %s748_s22  ;;  %s777_s21 = smov 50   ;;  %s778_s22 = smov 48   ;;  %v507_v54 = vld [vmem:[#allocation1 + $0x2a] sm:$0x1]   ;;  %v513_v55 = vld [vmem:[#allocation1 + $0x29] sm:$0x1]  }
  0x1d   :  { %v519_v56 = vld [vmem:[#allocation1 + $0x28] sm:$0x1]   ;;  %v525_v57 = vld [vmem:[#allocation1 + $0x23] sm:$0x1]   ;;  %v531_v58 = vld [vmem:[#allocation1 + $0x22] sm:$0x1]  }
  0x1e   :  { %v537_v59 = vld [vmem:[#allocation1 + $0x21] sm:$0x1]   ;;  %v543_v60 = vld [vmem:[#allocation1 + $0x20] sm:$0x1]   ;;  %v549_v61 = vld [vmem:[#allocation1 + $0x1b] sm:$0x1]  }
  0x1f   :  { %v555_v62 = vld [vmem:[#allocation1 + $0x1a] sm:$0x1]   ;;  %v561_v63 = vld [vmem:[#allocation1 + $0x19] sm:$0x1]   ;;  %v567_v0 = vld [vmem:[#allocation1 + $0x18] sm:$0x1]  }
  0x20   :  { %322 = vrot.lane.b32.xlu0 %v321_v22, %s749_s23  ;;  %328 = vrot.lane.b32.xlu1 %v327_v23, %s750_s24  ;;  %s779_s23 = smov 46   ;;  %s780_s24 = smov 44   ;;  %v573_v1 = vld [vmem:[#allocation1 + $0x13] sm:$0x1]   ;;  %v579_v2 = vld [vmem:[#allocation1 + $0x12] sm:$0x1]  }
  0x21   :  { %v585_v3 = vld [vmem:[#allocation1 + $0x11] sm:$0x1]   ;;  %v591_v4 = vld [vmem:[#allocation1 + $0x10] sm:$0x1]   ;;  %v597_v5 = vld [vmem:[#allocation1 + $0xb] sm:$0x1]  }
  0x22   :  { %v603_v6 = vld [vmem:[#allocation1 + $0xa] sm:$0x1]   ;;  %v609_v7 = vld [vmem:[#allocation1 + $0x9] sm:$0x1]   ;;  %v615_v8 = vld [vmem:[#allocation1 + $0x8] sm:$0x1]  }
  0x23   :  { %v621_v11 = vld [vmem:[#allocation1 + $0x3] sm:$0x1]   ;;  %v627_v12 = vld [vmem:[#allocation1 + $0x2] sm:$0x1]   ;;  %v633_v15 = vld [vmem:[#allocation1 + $0x1] sm:$0x1]  }
  0x24   :  { %334 = vrot.lane.b32.xlu0 %v333_v24, %s751_s25  ;;  %340 = vrot.lane.b32.xlu1 %v339_v25, %s752_s26  ;;  %s781_s25 = smov 42   ;;  %s782_s26 = smov 40   ;;  %vm354_vm0 = vcmask 802560  }
  0x28   :  { %346 = vrot.lane.b32.xlu0 %v345_v27, %s753_s27  ;;  %352 = vrot.lane.b32.xlu1 %v351_v28, %s754_s28  ;;  %s783_s27 = smov 38   ;;  %s784_s28 = smov 36  }
  0x2c   :  { %358 = vrot.lane.b32.xlu0 %v357_v29, %s755_s29  ;;  %364 = vrot.lane.b32.xlu1 %v363_v30, %s756_s30  ;;  %s785_s29 = smov 34   ;;  %s786_s30 = smov 32  }
  0x30   :  { %370 = vrot.lane.b32.xlu0 %v369_v31, %s757_s2  ;;  %376 = vrot.lane.b32.xlu1 %v375_v32, %s758_s3  ;;  %s787_s2 = smov 30   ;;  %s788_s3 = smov 28  }
  0x34   :  { %382 = vrot.lane.b32.xlu0 %v381_v33, %s759_s4  ;;  %388 = vrot.lane.b32.xlu1 %v387_v34, %s760_s5  ;;  %s789_s4 = smov 26   ;;  %s790_s5 = smov 24  }
  0x38   :  { %394 = vrot.lane.b32.xlu0 %v393_v35, %s761_s6  ;;  %400 = vrot.lane.b32.xlu1 %v399_v36, %s762_s7  ;;  %s791_s6 = smov 22   ;;  %s792_s7 = smov 20  }
  0x3c   :  { %406 = vrot.lane.b32.xlu0 %v405_v37, %s763_s8  ;;  %412 = vrot.lane.b32.xlu1 %v411_v38, %s764_s9  ;;  %s793_s8 = smov 18   ;;  %s794_s9 = smov 16  }
  0x40   :  { %418 = vrot.lane.b32.xlu0 %v417_v39, %s765_s10  ;;  %424 = vrot.lane.b32.xlu1 %v423_v40, %s766_s11  ;;  %s795_s10 = smov 14   ;;  %s796_s11 = smov 12  }
  0x44   :  { %430 = vrot.lane.b32.xlu0 %v429_v41, %s767_s12  ;;  %436 = vrot.lane.b32.xlu1 %v435_v42, %s768_s13  ;;  %s797_s12 = smov 10   ;;  %s798_s13 = smov 8  }
  0x48   :  { %442 = vrot.lane.b32.xlu0 %v441_v43, %s769_s0  ;;  %448 = vrot.lane.b32.xlu1 %v447_v44, %s770_s14  ;;  %s799_s0 = smov 6   ;;  %s800_s14 = smov 4  }
  0x4c   :  { %454 = vrot.lane.b32.xlu0 %v453_v45, %s771_s15  ;;  %460 = vrot.lane.b32.xlu1 %v459_v46, %s772_s16  ;;  %s801_s15 = smov 2  }
  0x50   :  { %466 = vrot.lane.b32.xlu0 %v465_v47, %s773_s17  ;;  %472 = vrot.lane.b32.xlu1 %v471_v48, %s774_s18 }
  0x54   :  { %478 = vrot.lane.b32.xlu0 %v477_v49, %s775_s19  ;;  %484 = vrot.lane.b32.xlu1 %v483_v50, %s776_s20 }
  0x58   :  { %490 = vrot.lane.b32.xlu0 %v489_v51, %s777_s21  ;;  %496 = vrot.lane.b32.xlu1 %v495_v52, %s778_s22 }
  0x5c   :  { %502 = vrot.lane.b32.xlu0 %v501_v53, %s779_s23  ;;  %508 = vrot.lane.b32.xlu1 %v507_v54, %s780_s24 }
  0x60   :  { %514 = vrot.lane.b32.xlu0 %v513_v55, %s781_s25  ;;  %520 = vrot.lane.b32.xlu1 %v519_v56, %s782_s26 }
  0x64   :  { %526 = vrot.lane.b32.xlu0 %v525_v57, %s783_s27  ;;  %532 = vrot.lane.b32.xlu1 %v531_v58, %s784_s28 }
  0x68   :  { %538 = vrot.lane.b32.xlu0 %v537_v59, %s785_s29  ;;  %544 = vrot.lane.b32.xlu1 %v543_v60, %s786_s30 }
  0x6c   :  { %550 = vrot.lane.b32.xlu0 %v549_v61, %s787_s2  ;;  %556 = vrot.lane.b32.xlu1 %v555_v62, %s788_s3 }
  0x70   :  { %562 = vrot.lane.b32.xlu0 %v561_v63, %s789_s4  ;;  %568 = vrot.lane.b32.xlu1 %v567_v0, %s790_s5 }
  0x74   :  { %574 = vrot.lane.b32.xlu0 %v573_v1, %s791_s6  ;;  %580 = vrot.lane.b32.xlu1 %v579_v2, %s792_s7 }
  0x78   :  { %586 = vrot.lane.b32.xlu0 %v585_v3, %s793_s8  ;;  %592 = vrot.lane.b32.xlu1 %v591_v4, %s794_s9 }
  0x7c   :  { %598 = vrot.lane.b32.xlu0 %v597_v5, %s795_s10  ;;  %604 = vrot.lane.b32.xlu1 %v603_v6, %s796_s11 }
  0x7e   :  { %v263_v9 = vpop.permute.xlu0 %262   ;;  %v275_v10 = vpop.permute.xlu1 %274  }
  0x7f   :  { %265 = vst.msk [vmem:[#allocation0] sm:$0x1] %vm264_vm1, %v263_v9   ;;  %vm360_vm1 = vcmask 786160  }
  0x80   :  { %610 = vrot.lane.b32.xlu0 %v609_v7, %s797_s12  ;;  %616 = vrot.lane.b32.xlu1 %v615_v8, %s798_s13 }
  0x82   :  { %v269_v13 = vpop.permute.xlu0 %268   ;;  %v281_v14 = vpop.permute.xlu1 %280  }
  0x83   :  { %271 = vst.msk [vmem:[#allocation0] sm:$0x1] %vm270_vm3, %v269_v13   ;;  %vm372_vm3 = vcmask 753360  }
  0x84   :  { %277 = vst.msk [vmem:[#allocation0] sm:$0x1] %vm276_vm2, %v275_v10   ;;  %622 = vrot.lane.b32.xlu0 %v621_v11, %s799_s0  ;;  %628 = vrot.lane.b32.xlu1 %v627_v12, %s800_s14  ;;  %vm366_vm2 = vcmask 769760   ;;  %v802_v12 = vmov 0.0  }
  0x85   :  { %283 = vst.msk [vmem:[#allocation0] sm:$0x1] %vm282_vm4, %v281_v14   ;;  %vm378_vm4 = vcmask 736960  }
  0x86   :  { %v287_v16 = vpop.permute.xlu0 %286   ;;  %v293_v17 = vpop.permute.xlu1 %292  }
  0x87   :  { %289 = vst.msk [vmem:[#allocation0] sm:$0x1] %vm288_vm5, %v287_v16   ;;  %vm384_vm5 = vcmask 720560  }
  0x88   :  { %634 = vrot.lane.b32.xlu0 %v633_v15, %s801_s15  ;;  %295 = vst.msk [vmem:[#allocation0] sm:$0x1] %vm294_vm6, %v293_v17   ;;  %vm390_vm6 = vcmask 704160  }
  0x8a   :  { %v299_v18 = vpop.permute.xlu0 %298   ;;  %v305_v19 = vpop.permute.xlu1 %304  }
  0x8b   :  { %301 = vst.msk [vmem:[#allocation0] sm:$0x1] %vm300_vm7, %v299_v18   ;;  %vm396_vm7 = vcmask 687760  }
  0x8c   :  { %307 = vst.msk [vmem:[#allocation0] sm:$0x1] %vm306_vm8, %v305_v19   ;;  %vm402_vm8 = vcmask 671360  }
  0x8e   :  { %v311_v20 = vpop.permute.xlu0 %310   ;;  %v317_v21 = vpop.permute.xlu1 %316  }
  0x8f   :  { %313 = vst.msk [vmem:[#allocation0] sm:$0x1] %vm312_vm9, %v311_v20   ;;  %vm408_vm9 = vcmask 654960  }
  0x90   :  { %319 = vst.msk [vmem:[#allocation0] sm:$0x1] %vm318_vm10, %v317_v21   ;;  %vm414_vm10 = vcmask 638560  }
  0x92   :  { %v323_v22 = vpop.permute.xlu0 %322   ;;  %v329_v23 = vpop.permute.xlu1 %328  }
  0x93   :  { %325 = vst.msk [vmem:[#allocation0] sm:$0x1] %vm324_vm11, %v323_v22   ;;  %vm420_vm11 = vcmask 622160  }
  0x94   :  { %331 = vst.msk [vmem:[#allocation0] sm:$0x1] %vm330_vm12, %v329_v23   ;;  %vm426_vm12 = vcmask 605760  }
  0x96   :  { %v335_v24 = vpop.permute.xlu0 %334   ;;  %v341_v25 = vpop.permute.xlu1 %340  }
  0x97   :  { %337 = vst.msk [vmem:[#allocation0] sm:$0x1] %vm336_vm13, %v335_v24   ;;  %vm432_vm13 = vcmask 589360  }
  0x98   :  { %343 = vst.msk [vmem:[#allocation0] sm:$0x1] %vm342_vm14, %v341_v25   ;;  %vm438_vm14 = vcmask 572960  }
  0x9a   :  { %v347_v26 = vpop.permute.xlu0 %346   ;;  %v353_v27 = vpop.permute.xlu1 %352  }
  0x9b   :  { %349 = vst.msk [vmem:[#allocation0] sm:$0x1] %vm348_vm15, %v347_v26   ;;  %vm444_vm15 = vcmask 556560  }
  0x9c   :  { %355 = vst.msk [vmem:[#allocation0] sm:$0x1] %vm354_vm0, %v353_v27   ;;  %vm450_vm0 = vcmask 540160  }
  0x9e   :  { %v359_v28 = vpop.permute.xlu0 %358   ;;  %v365_v29 = vpop.permute.xlu1 %364  }
  0x9f   :  { %361 = vst.msk [vmem:[#allocation0] sm:$0x1] %vm360_vm1, %v359_v28   ;;  %vm456_vm1 = vcmask 523760  }
  0xa0   :  { %367 = vst.msk [vmem:[#allocation0] sm:$0x1] %vm366_vm2, %v365_v29   ;;  %vm462_vm2 = vcmask 507360  }
  0xa2   :  { %v371_v30 = vpop.permute.xlu0 %370   ;;  %v377_v31 = vpop.permute.xlu1 %376  }
  0xa3   :  { %373 = vst.msk [vmem:[#allocation0] sm:$0x1] %vm372_vm3, %v371_v30   ;;  %vm468_vm3 = vcmask 490960  }
  0xa4   :  { %379 = vst.msk [vmem:[#allocation0] sm:$0x1] %vm378_vm4, %v377_v31   ;;  %vm474_vm4 = vcmask 474560  }
  0xa6   :  { %v383_v32 = vpop.permute.xlu0 %382   ;;  %v389_v33 = vpop.permute.xlu1 %388  }
  0xa7   :  { %385 = vst.msk [vmem:[#allocation0] sm:$0x1] %vm384_vm5, %v383_v32   ;;  %vm480_vm5 = vcmask 458160  }
  0xa8   :  { %391 = vst.msk [vmem:[#allocation0] sm:$0x1] %vm390_vm6, %v389_v33   ;;  %vm486_vm6 = vcmask 441760  }
  0xaa   :  { %v395_v34 = vpop.permute.xlu0 %394   ;;  %v401_v35 = vpop.permute.xlu1 %400  }
  0xab   :  { %397 = vst.msk [vmem:[#allocation0] sm:$0x1] %vm396_vm7, %v395_v34   ;;  %vm492_vm7 = vcmask 425360  }
  0xac   :  { %403 = vst.msk [vmem:[#allocation0] sm:$0x1] %vm402_vm8, %v401_v35   ;;  %vm498_vm8 = vcmask 408960  }
  0xae   :  { %v407_v36 = vpop.permute.xlu0 %406   ;;  %v413_v37 = vpop.permute.xlu1 %412  }
  0xaf   :  { %409 = vst.msk [vmem:[#allocation0] sm:$0x1] %vm408_vm9, %v407_v36   ;;  %vm504_vm9 = vcmask 392560  }
  0xb0   :  { %415 = vst.msk [vmem:[#allocation0] sm:$0x1] %vm414_vm10, %v413_v37   ;;  %vm510_vm10 = vcmask 376160  }
  0xb2   :  { %v419_v38 = vpop.permute.xlu0 %418   ;;  %v425_v39 = vpop.permute.xlu1 %424  }
  0xb3   :  { %421 = vst.msk [vmem:[#allocation0] sm:$0x1] %vm420_vm11, %v419_v38   ;;  %vm516_vm11 = vcmask 359760  }
  0xb4   :  { %427 = vst.msk [vmem:[#allocation0] sm:$0x1] %vm426_vm12, %v425_v39   ;;  %vm522_vm12 = vcmask 343360  }
  0xb6   :  { %v431_v40 = vpop.permute.xlu0 %430   ;;  %v437_v41 = vpop.permute.xlu1 %436  }
  0xb7   :  { %433 = vst.msk [vmem:[#allocation0] sm:$0x1] %vm432_vm13, %v431_v40   ;;  %vm528_vm13 = vcmask 326960  }
  0xb8   :  { %439 = vst.msk [vmem:[#allocation0] sm:$0x1] %vm438_vm14, %v437_v41   ;;  %vm534_vm14 = vcmask 310560  }
  0xba   :  { %v443_v42 = vpop.permute.xlu0 %442   ;;  %v449_v43 = vpop.permute.xlu1 %448  }
  0xbb   :  { %445 = vst.msk [vmem:[#allocation0] sm:$0x1] %vm444_vm15, %v443_v42   ;;  %vm540_vm15 = vcmask 294160  }
  0xbc   :  { %451 = vst.msk [vmem:[#allocation0] sm:$0x1] %vm450_vm0, %v449_v43   ;;  %vm546_vm0 = vcmask 277760  }
  0xbe   :  { %v455_v44 = vpop.permute.xlu0 %454   ;;  %v461_v45 = vpop.permute.xlu1 %460  }
  0xbf   :  { %457 = vst.msk [vmem:[#allocation0] sm:$0x1] %vm456_vm1, %v455_v44   ;;  %vm552_vm1 = vcmask 261360  }
  0xc0   :  { %463 = vst.msk [vmem:[#allocation0] sm:$0x1] %vm462_vm2, %v461_v45   ;;  %vm558_vm2 = vcmask 244960  }
  0xc2   :  { %v467_v46 = vpop.permute.xlu0 %466   ;;  %v473_v47 = vpop.permute.xlu1 %472  }
  0xc3   :  { %469 = vst.msk [vmem:[#allocation0] sm:$0x1] %vm468_vm3, %v467_v46   ;;  %vm564_vm3 = vcmask 228560  }
  0xc4   :  { %475 = vst.msk [vmem:[#allocation0] sm:$0x1] %vm474_vm4, %v473_v47   ;;  %vm570_vm4 = vcmask 212160  }
  0xc6   :  { %v479_v48 = vpop.permute.xlu0 %478   ;;  %v485_v49 = vpop.permute.xlu1 %484  }
  0xc7   :  { %481 = vst.msk [vmem:[#allocation0] sm:$0x1] %vm480_vm5, %v479_v48   ;;  %vm576_vm5 = vcmask 195760  }
  0xc8   :  { %487 = vst.msk [vmem:[#allocation0] sm:$0x1] %vm486_vm6, %v485_v49   ;;  %vm582_vm6 = vcmask 179360  }
  0xca   :  { %v491_v50 = vpop.permute.xlu0 %490   ;;  %v497_v51 = vpop.permute.xlu1 %496  }
  0xcb   :  { %493 = vst.msk [vmem:[#allocation0] sm:$0x1] %vm492_vm7, %v491_v50   ;;  %vm588_vm7 = vcmask 162960  }
  0xcc   :  { %499 = vst.msk [vmem:[#allocation0] sm:$0x1] %vm498_vm8, %v497_v51   ;;  %vm594_vm8 = vcmask 146560  }
  0xce   :  { %v503_v52 = vpop.permute.xlu0 %502   ;;  %v509_v53 = vpop.permute.xlu1 %508  }
  0xcf   :  { %505 = vst.msk [vmem:[#allocation0] sm:$0x1] %vm504_vm9, %v503_v52   ;;  %vm600_vm9 = vcmask 130160  }
  0xd0   :  { %511 = vst.msk [vmem:[#allocation0] sm:$0x1] %vm510_vm10, %v509_v53   ;;  %vm606_vm10 = vcmask 113760  }
  0xd2   :  { %v515_v54 = vpop.permute.xlu0 %514   ;;  %v521_v55 = vpop.permute.xlu1 %520  }
  0xd3   :  { %517 = vst.msk [vmem:[#allocation0] sm:$0x1] %vm516_vm11, %v515_v54   ;;  %vm612_vm11 = vcmask 97360  }
  0xd4   :  { %523 = vst.msk [vmem:[#allocation0] sm:$0x1] %vm522_vm12, %v521_v55   ;;  %vm618_vm12 = vcmask 80960  }
  0xd6   :  { %v527_v56 = vpop.permute.xlu0 %526   ;;  %v533_v57 = vpop.permute.xlu1 %532  }
  0xd7   :  { %529 = vst.msk [vmem:[#allocation0] sm:$0x1] %vm528_vm13, %v527_v56   ;;  %vm624_vm13 = vcmask 64560  }
  0xd8   :  { %535 = vst.msk [vmem:[#allocation0] sm:$0x1] %vm534_vm14, %v533_v57   ;;  %vm630_vm14 = vcmask 48160  }
  0xda   :  { %v539_v58 = vpop.permute.xlu0 %538   ;;  %v545_v59 = vpop.permute.xlu1 %544  }
  0xdb   :  { %541 = vst.msk [vmem:[#allocation0] sm:$0x1] %vm540_vm15, %v539_v58   ;;  %vm636_vm15 = vcmask 31760  }
  0xdc   :  { %547 = vst.msk [vmem:[#allocation0] sm:$0x1] %vm546_vm0, %v545_v59  }
  0xde   :  { %v551_v60 = vpop.permute.xlu0 %550   ;;  %v557_v61 = vpop.permute.xlu1 %556  }
  0xdf   :  { %553 = vst.msk [vmem:[#allocation0] sm:$0x1] %vm552_vm1, %v551_v60  }
  0xe0   :  { %559 = vst.msk [vmem:[#allocation0] sm:$0x1] %vm558_vm2, %v557_v61  }
  0xe2   :  { %v563_v62 = vpop.permute.xlu0 %562   ;;  %v569_v63 = vpop.permute.xlu1 %568  }
  0xe3   :  { %565 = vst.msk [vmem:[#allocation0] sm:$0x1] %vm564_vm3, %v563_v62  }
  0xe4   :  { %571 = vst.msk [vmem:[#allocation0] sm:$0x1] %vm570_vm4, %v569_v63  }
  0xe6   :  { %v575_v0 = vpop.permute.xlu0 %574   ;;  %v581_v1 = vpop.permute.xlu1 %580  }
  0xe7   :  { %577 = vst.msk [vmem:[#allocation0] sm:$0x1] %vm576_vm5, %v575_v0  }
  0xe8   :  { %583 = vst.msk [vmem:[#allocation0] sm:$0x1] %vm582_vm6, %v581_v1  }
  0xea   :  { %v587_v2 = vpop.permute.xlu0 %586   ;;  %v593_v3 = vpop.permute.xlu1 %592  }
  0xeb   :  { %589 = vst.msk [vmem:[#allocation0] sm:$0x1] %vm588_vm7, %v587_v2  }
  0xec   :  { %595 = vst.msk [vmem:[#allocation0] sm:$0x1] %vm594_vm8, %v593_v3  }
  0xee   :  { %v599_v4 = vpop.permute.xlu0 %598   ;;  %v605_v5 = vpop.permute.xlu1 %604  }
  0xef   :  { %601 = vst.msk [vmem:[#allocation0] sm:$0x1] %vm600_vm9, %v599_v4  }
  0xf0   :  { %607 = vst.msk [vmem:[#allocation0] sm:$0x1] %vm606_vm10, %v605_v5  }
  0xf2   :  { %v611_v6 = vpop.permute.xlu0 %610   ;;  %v617_v7 = vpop.permute.xlu1 %616  }
  0xf3   :  { %613 = vst.msk [vmem:[#allocation0] sm:$0x1] %vm612_vm11, %v611_v6  }
  0xf4   :  { %619 = vst.msk [vmem:[#allocation0] sm:$0x1] %vm618_vm12, %v617_v7  }
  0xf6   :  { %v623_v8 = vpop.permute.xlu0 %622   ;;  %v629_v9 = vpop.permute.xlu1 %628  }
  0xf7   :  { %625 = vst.msk [vmem:[#allocation0] sm:$0x1] %vm624_vm13, %v623_v8  }
  0xf8   :  { %631 = vst.msk [vmem:[#allocation0] sm:$0x1] %vm630_vm14, %v629_v9  }
  0xfa   :  { %v635_v10 = vpop.permute.xlu0 %634  }
  0xfb   :  { %637 = vst.msk [vmem:[#allocation0] sm:$0x1] %vm636_vm15, %v635_v10  }
 0x102   :  { %v642_v11 = vld [vmem:[#allocation0] sm:$0x3] }
 0x103   :  { %v643_v13 = vpack.c.bf16 %v802_v12, %v642_v11 }
 0x105   :  { %645 = vst [vmem:[%s829_s1] sm:$0x1] %v643_v13 }

// kernel: model_forward.8
= control target key start
LH: loop header
LB: loop body
LE: loop exit
PB: predicated region body
PF: predicated region fallthrough
CT: control target
= control target key end

     0   :  { %v626_v1 = vmov 0   ;;  %vm167_vm0 = vcmask 392192   ;;  %v627_v23 = vmov 0.0|0.0   ;;  %v628_v24 = vmov 0.0   ;;  %s761_s0 = inlined_call_operand.vmem [shape: bf16[48,128], index: 0, kind: input, shape index: {}]   ;;  %s762_s2 = inlined_call_operand.vmem [shape: bf16[96,48], index: 2, kind: input, shape index: {}]   ;;  %s763_s3 = inlined_call_operand.vmem [shape: f32[96,1], index: 3, kind: input, shape index: {}]   ;;  %s764_s5 = inlined_call_operand.vmem [shape: f32[6,1], index: 5, kind: input, shape index: {}]   ;;  %s765_s6 = inlined_call_operand.vmem [shape: f32[1,128], index: 6, kind: output, shape index: {}]   ;;  %s766_s4 = inlined_call_operand.vmem [shape: f32[6,96], index: 4, kind: input, shape index: {}]   ;;  %s767_s1 = inlined_call_operand.vmem [shape: f32[3,128], index: 1, kind: input, shape index: {}]  }
   0x1   :  { %v585_v0 = vld [vmem:[%s761_s0] sm:$0xff]   ;;  %583 = vset.pattern.permute.xlu0 %v626_v1  ;;  %584 = vset.pattern.permute.xlu1 %v626_v1  ;;  %v586_v2 = vld [vmem:[%s761_s0 + $0x8] sm:$0xff]   ;;  %v587_v4 = vld [vmem:[%s761_s0 + $0x10] sm:$0xff]   ;;  %28 = vst [vmem:[%s765_s6] sm:$0x1] %v628_v24  ;;  %vm629_vm1 = vmmov 0   ;;  %vm286_vm2 = vcmask 785408  }
   0x2   :  { %516 = vmatprep.subr.bf16.mxu0 %v585_v0  ;;  %v588_v3 = vld [vmem:[%s762_s2] sm:$0xff]   ;;  %v49_v6 = vld [vmem:[%s763_s3 + $0x10] sm:$0xff]  ;;  %v589_v7 = vld [vmem:[%s762_s2 + $0x8] sm:$0xff]   ;;  %561 = vmatprep.subr.bf16.mxu1 %v627_v23 }
   0x3   :  { %517 = vmatpush3.bf16.msra.mxu0 %v585_v0  ;;  %522 = vmatprep.mubr.msk.bf16.mxu0 %vm167_vm0, %v588_v3  ;;  %v47_v5 = vld [vmem:[%s763_s3] sm:$0xff]  ;;  %v590_v8 = vld [vmem:[%s762_s2 + $0x10] sm:$0xff]   ;;  %v48_v9 = vld [vmem:[%s763_s3 + $0x8] sm:$0xff] }
   0x4   :  { %518 = vmatprep.subr.bf16.mxu0 %v586_v2  ;;  %61 = vperm.xlu0 %583, %v47_v5   ;;  %v50_v10 = vld [vmem:[%s763_s3 + $0x18] sm:$0xff]  ;;  %v51_v11 = vld [vmem:[%s763_s3 + $0x20] sm:$0xff]  ;;  %v52_v12 = vld [vmem:[%s763_s3 + $0x28] sm:$0xff] }
   0x5   :  { %71 = vperm.xlu1 %584, %v49_v6   ;;  %v591_v13 = vld [vmem:[%s762_s2 + $0x18] sm:$0xff]   ;;  %v592_v14 = vld [vmem:[%s762_s2 + $0x20] sm:$0xff]   ;;  %v53_v15 = vld [vmem:[%s763_s3 + $0x30] sm:$0xff]  ;;  %558 = vmatprep.mubr.msk.f32.mxu1 %vm629_vm1, %v628_v24 }
   0x6   :  { %v54_v16 = vld [vmem:[%s763_s3 + $0x38] sm:$0xff]  ;;  %v55_v17 = vld [vmem:[%s763_s3 + $0x40] sm:$0xff]  ;;  %v56_v18 = vld [vmem:[%s763_s3 + $0x48] sm:$0xff] }
   0x7   :  { %519 = vmatpush3.bf16.msra.mxu0 %v586_v2  ;;  %v593_v19 = vld [vmem:[%s762_s2 + $0x28] sm:$0xff]   ;;  %v57_v20 = vld [vmem:[%s763_s3 + $0x50] sm:$0xff]  ;;  %v58_v21 = vld [vmem:[%s763_s3 + $0x58] sm:$0xff] }
   0x8   :  { %520 = vmatprep.subr.bf16.mxu0 %v587_v4  ;;  %66 = vperm.xlu0 %583, %v48_v9   ;;  %v280_v22 = vld [vmem:[%s764_s5] sm:$0x3f] }
   0x9   :  { %76 = vperm.xlu1 %584, %v50_v10  }
   0xb   :  { %521 = vmatpush3.bf16.msra.mxu0 %v587_v4 }
   0xc   :  { %81 = vperm.xlu0 %583, %v51_v11  }
   0xd   :  { %86 = vperm.xlu1 %584, %v52_v12  }
   0xe   :  { %523 = vmatmul.mubr.msk.bf16.vlgmr.msra.gmra.mrb[0].mxu0 %vm167_vm0, %v589_v7 }
   0xf   :  { %526 = vmatprep.mubr.msk.bf16.mxu0 %vm167_vm0, %v590_v8 }
  0x10   :  { %91 = vperm.xlu0 %583, %v53_v15   ;;  %v279_v15 = vld [vmem:[%s766_s4] sm:$0x3f] }
  0x11   :  { %96 = vperm.xlu1 %584, %v54_v16  }
  0x14   :  { %101 = vperm.xlu0 %583, %v55_v17  }
  0x15   :  { %106 = vperm.xlu1 %584, %v56_v18  }
  0x16   :  { %527 = vmatmul.mubr.msk.bf16.gmra.mrb[4].mxu0 %vm167_vm0, %v591_v13 }
  0x17   :  { %530 = vmatprep.mubr.msk.bf16.mxu0 %vm167_vm0, %v592_v14 }
  0x18   :  { %111 = vperm.xlu0 %583, %v57_v20  }
  0x19   :  { %116 = vperm.xlu1 %584, %v58_v21  }
  0x1c   :  { %283 = vperm.xlu0 %583, %v280_v22  }
  0x1e   :  { %531 = vmatmul.mubr.msk.bf16.gmra.mrb[8].mxu0 %vm167_vm0, %v593_v19 }
  0x83   :  { %v62_v25 = vpop.permute.xlu0 %61 }
  0x84   :  { %v72_v26 = vpop.permute.xlu1 %71 }
  0x87   :  { %v67_v27 = vpop.permute.xlu0 %66 }
  0x88   :  { %v77_v28 = vpop.permute.xlu1 %76 }
  0x8b   :  { %v82_v29 = vpop.permute.xlu0 %81 }
  0x8c   :  { %v87_v30 = vpop.permute.xlu1 %86 }
  0x8f   :  { %v92_v38 = vpop.permute.xlu0 %91 }
  0x90   :  { %v97_v42 = vpop.permute.xlu1 %96 }
  0x93   :  { %v102_v50 = vpop.permute.xlu0 %101 }
  0x94   :  { %v107_v55 = vpop.permute.xlu1 %106 }
  0x97   :  { %v112_v62 = vpop.permute.xlu0 %111 }
  0x98   :  { %v117_v3 = vpop.permute.xlu1 %116 }
  0x9b   :  { %v284_v16 = vpop.permute.xlu0 %283 }
  0xe1   :  { %v524_v31 = vpop.f32.mrb[0].mxu0 }
  0xe2   :  { %v229_v32 = vadd.f32 %v524_v31, %v72_v26  ;;  %v220_v33 = vpop.f32.mrb[1].mxu0 }
  0xe3   :  { %v221_v34 = vadd.f32 %v220_v33, %v62_v25  ;;  %v525_v35 = vpop.f32.mrb[2].mxu0 }
  0xe4   :  { %v232_v36 = vadd.f32 %v525_v35, %v77_v28  ;;  %v223_v37 = vpop.f32.mrb[3].mxu0  ;;  %v269_v40 = vmax.f32 %v229_v32, 0.0 }
  0xe5   :  { %v224_v39 = vadd.f32 %v223_v37, %v67_v27  ;;  %v267_v43 = vmax.f32 %v221_v34, 0.0 }
  0xe6   :  { %v270_v41 = vmax.f32 %v232_v36, 0.0 }
  0xe7   :  { %v268_v44 = vmax.f32 %v224_v39, 0.0 }
  0xe8   :  { %v565_v45 = vpack.c.bf16 %v270_v41, %v269_v40 }
  0xe9   :  { %v528_v46 = vpop.f32.mrb[4].mxu0  ;;  %v562_v47 = vpack.c.bf16 %v268_v44, %v267_v43 }
  0xea   :  { %v245_v48 = vadd.f32 %v528_v46, %v92_v38  ;;  %v236_v49 = vpop.f32.mrb[5].mxu0 }
  0xeb   :  { %v237_v51 = vadd.f32 %v236_v49, %v82_v29  ;;  %v529_v52 = vpop.f32.mrb[6].mxu0  ;;  %563 = vmatpush3.bf16.msra.mxu1 %v562_v47 }
  0xec   :  { %v248_v53 = vadd.f32 %v529_v52, %v97_v42  ;;  %v239_v54 = vpop.f32.mrb[7].mxu0  ;;  %564 = vmatprep.subr.bf16.mxu1 %v627_v23  ;;  %v273_v57 = vmax.f32 %v245_v48, 0.0 }
  0xed   :  { %v240_v56 = vadd.f32 %v239_v54, %v87_v30  ;;  %v271_v59 = vmax.f32 %v237_v51, 0.0 }
  0xee   :  { %v274_v58 = vmax.f32 %v248_v53, 0.0 }
  0xef   :  { %v272_v60 = vmax.f32 %v240_v56, 0.0  ;;  %566 = vmatpush3.bf16.msra.mxu1 %v565_v45 }
  0xf0   :  { %v571_v61 = vpack.c.bf16 %v274_v58, %v273_v57  ;;  %567 = vmatprep.subr.bf16.mxu1 %v627_v23 }
  0xf1   :  { %v568_v63 = vpack.c.bf16 %v272_v60, %v271_v59  ;;  %v532_v0 = vpop.f32.mrb[8].mxu0 }
  0xf2   :  { %v261_v1 = vadd.f32 %v532_v0, %v112_v62  ;;  %v252_v2 = vpop.f32.mrb[9].mxu0 }
  0xf3   :  { %v253_v4 = vadd.f32 %v252_v2, %v102_v50  ;;  %v533_v5 = vpop.f32.mrb[10].mxu0  ;;  %569 = vmatpush3.bf16.msra.mxu1 %v568_v63 }
  0xf4   :  { %v264_v6 = vadd.f32 %v533_v5, %v117_v3  ;;  %v255_v7 = vpop.f32.mrb[11].mxu0  ;;  %570 = vmatprep.subr.bf16.mxu1 %v627_v23  ;;  %v277_v9 = vmax.f32 %v261_v1, 0.0 }
  0xf5   :  { %v256_v8 = vadd.f32 %v255_v7, %v107_v55  ;;  %v275_v11 = vmax.f32 %v253_v4, 0.0 }
  0xf6   :  { %v278_v10 = vmax.f32 %v264_v6, 0.0 }
  0xf7   :  { %v276_v12 = vmax.f32 %v256_v8, 0.0  ;;  %572 = vmatpush3.bf16.msra.mxu1 %v571_v61 }
  0xf8   :  { %v577_v13 = vpack.c.bf16 %v278_v10, %v277_v9  ;;  %573 = vmatprep.subr.bf16.mxu1 %v627_v23 }
  0xf9   :  { %v574_v14 = vpack.c.bf16 %v276_v12, %v275_v11  ;;  %v361_v12 = vlaneseq }
  0xfb   :  { %575 = vmatpush3.bf16.msra.mxu1 %v574_v14 }
  0xfc   :  { %576 = vmatprep.subr.bf16.mxu1 %v627_v23  ;;  %v368_v23 = vld [vmem:[%s767_s1] sm:$0x7] }
  0xff   :  { %578 = vmatpush3.bf16.msra.mxu1 %v577_v13  ;;  %v362_v13 = vand.u32 127, %v361_v12 }
 0x101   :  { %vm365_vm3 = vcmp.lt.s32.totalorder %v362_v13, 32 }
 0x102   :  { %559 = vmatmul.mubr.msk.f32.vlgmr.msra.gmra.mrb[0].mxu1 %vm286_vm2, %v279_v15 }
 0x1d5   :  { %v356_v17 = vpop.f32.mrb[0].mxu1 }
 0x1d6   :  { %v357_v18 = vadd.f32 %v356_v17, %v284_v16  ;;  %v560_v19 = vpop.f32.mrb[1].mxu1 }
 0x1d8   :  { %v484_v20 = vclamps-f32 %v357_v18, 10.0  ;;  %v400_v25 = vrot.slane %v357_v18, 1  ;;  %v429_v26 = vrot.slane %v357_v18, 2  ;;  %v374_v27 = vsub.f32 %v368_v23, %v357_v18 }
 0x1da   :  { %v371_v21 = vsub.f32 0.0, %v484_v20  ;;  %v402_v28 = vsub.f32 %v368_v23, %v400_v25  ;;  %v431_v29 = vsub.f32 %v368_v23, %v429_v26  ;;  %v375_v31 = vadd.f32 0.5, %v374_v27 }
 0x1db   :  { %v486_v32 = vadd.f32 -0.5, %v374_v27  ;;  %v483_v20 = vsel %vm365_vm3, 1.0, %v628_v24 }
 0x1dc   :  { %v372_v22 = vmul.f32 1.442695, %v371_v21  ;;  %v403_v33 = vadd.f32 0.5, %v402_v28  ;;  %v489_v36 = vadd.f32 -0.5, %v402_v28  ;;  %v432_v38 = vadd.f32 0.5, %v431_v29 }
 0x1dd   :  { %v492_v39 = vadd.f32 -0.5, %v431_v29  ;;  %v459_v25 = vmul.f32 1.442695, %v483_v20  ;;  %v458_v28 = vld [vmem:[%s765_s6] sm:$0x1] }
 0x1de   :  { %594 = vpow2.f32 %v372_v22 }
 0x1e8   :  { %v595_v30 = vpop.eup %594 }
 0x1e9   :  { %v377_v34 = vrot.slane %v595_v30, 1  ;;  %v404_v35 = vrot.slane %v595_v30, 2  ;;  %v433_v37 = vrot.slane %v595_v30, 3 }
 0x1eb   :  { %v379_v40 = vmul.f32 %v377_v34, %v375_v31  ;;  %v387_v41 = vmul.f32 %v486_v32, %v377_v34  ;;  %v406_v42 = vmul.f32 %v404_v35, %v403_v33  ;;  %v414_v43 = vmul.f32 %v489_v36, %v404_v35 }
 0x1ec   :  { %v435_v44 = vmul.f32 %v433_v37, %v432_v38  ;;  %v443_v45 = vmul.f32 %v492_v39, %v433_v37 }
 0x1ed   :  { %v485_v46 = vmul.f32 -1.442695, %v379_v40  ;;  %v487_v47 = vmul.f32 -1.442695, %v387_v41  ;;  %v488_v48 = vmul.f32 -1.442695, %v406_v42 }
 0x1ee   :  { %v490_v49 = vmul.f32 -1.442695, %v414_v43  ;;  %v491_v50 = vmul.f32 -1.442695, %v435_v44  ;;  %v493_v51 = vmul.f32 -1.442695, %v443_v45 }
 0x1ef   :  { %596 = vpow2.f32 %v485_v46 }
 0x1f0   :  { %598 = vpow2.f32 %v487_v47 }
 0x1f1   :  { %600 = vpow2.f32 %v488_v48 }
 0x1f2   :  { %602 = vpow2.f32 %v490_v49 }
 0x1f3   :  { %604 = vpow2.f32 %v491_v50 }
 0x1f4   :  { %606 = vpow2.f32 %v493_v51 }
 0x1f9   :  { %v597_v52 = vpop.eup %596 }
 0x1fa   :  { %v599_v53 = vpop.eup %598  ;;  %v383_v54 = vadd.f32 1.0, %v597_v52 }
 0x1fb   :  { %v601_v55 = vpop.eup %600  ;;  %v391_v56 = vadd.f32 1.0, %v599_v53 }
 0x1fc   :  { %v603_v57 = vpop.eup %602  ;;  %608 = vrcp.f32 %v383_v54  ;;  %v410_v58 = vadd.f32 1.0, %v601_v55 }
 0x1fd   :  { %v605_v59 = vpop.eup %604  ;;  %610 = vrcp.f32 %v391_v56  ;;  %v418_v60 = vadd.f32 1.0, %v603_v57 }
 0x1fe   :  { %v607_v61 = vpop.eup %606  ;;  %612 = vrcp.f32 %v410_v58  ;;  %v439_v62 = vadd.f32 1.0, %v605_v59 }
 0x1ff   :  { %614 = vrcp.f32 %v418_v60  ;;  %v447_v63 = vadd.f32 1.0, %v607_v61 }
 0x200   :  { %616 = vrcp.f32 %v439_v62 }
 0x201   :  { %618 = vrcp.f32 %v447_v63 }
 0x206   :  { %v609_v0 = vpop.eup %608 }
 0x207   :  { %v611_v1 = vpop.eup %610 }
 0x208   :  { %v613_v2 = vpop.eup %612  ;;  %v394_v3 = vsub.f32 %v609_v0, %v611_v1 }
 0x209   :  { %v615_v4 = vpop.eup %614 }
 0x20a   :  { %v617_v5 = vpop.eup %616  ;;  %v395_v6 = vmax.f32 %v394_v3, 1e-09  ;;  %v421_v7 = vsub.f32 %v613_v2, %v615_v4 }
 0x20b   :  { %v619_v8 = vpop.eup %618 }
 0x20c   :  { %620 = vlog2.f32 %v395_v6  ;;  %v422_v9 = vmax.f32 %v421_v7, 1e-09  ;;  %v450_v10 = vsub.f32 %v617_v5, %v619_v8 }
 0x20e   :  { %622 = vlog2.f32 %v422_v9  ;;  %v451_v11 = vmax.f32 %v450_v10, 1e-09 }
 0x210   :  { %624 = vlog2.f32 %v451_v11 }
 0x216   :  { %v621_v14 = vpop.eup %620 }
 0x217   :  { %v397_v15 = vmul.f32 0.6931472, %v621_v14 }
 0x218   :  { %v623_v16 = vpop.eup %622 }
 0x219   :  { %v398_v17 = vsub.f32 0.0, %v397_v15  ;;  %v424_v18 = vmul.f32 0.6931472, %v623_v16 }
 0x21a   :  { %v625_v19 = vpop.eup %624 }
 0x21b   :  { %v426_v21 = vrot.slane %v424_v18, 1  ;;  %v453_v22 = vmul.f32 0.6931472, %v625_v19 }
 0x21d   :  { %v428_v23 = vsub.f32 %v398_v17, %v426_v21  ;;  %v455_v26 = vrot.slane %v453_v22, 2 }
 0x21f   :  { %v457_v27 = vsub.f32 %v428_v23, %v455_v26 }
 0x221   :  { %v460_v29 = vmul.f32 %v459_v25, %v457_v27 }
 0x223   :  { %v461_v30 = vadd.f32 %v460_v29, %v458_v28 }
 0x225   :  { %462 = vst [vmem:[%s765_s6] sm:$0x1] %v461_v30 }

// kernel: model_forward.9
= control target key start
LH: loop header
LB: loop body
LE: loop exit
PB: predicated region body
PF: predicated region fallthrough
CT: control target
= control target key end

     0   :  { %v625_v1 = vmov 0   ;;  %vm167_vm0 = vcmask 392192   ;;  %v626_v23 = vmov 0.0|0.0   ;;  %v627_v24 = vmov 0.0   ;;  %s757_s0 = inlined_call_operand.vmem [shape: bf16[48,128], index: 0, kind: input, shape index: {}]   ;;  %s758_s2 = inlined_call_operand.vmem [shape: bf16[96,48], index: 2, kind: input, shape index: {}]   ;;  %s759_s3 = inlined_call_operand.vmem [shape: f32[96,1], index: 3, kind: input, shape index: {}]   ;;  %s760_s5 = inlined_call_operand.vmem [shape: f32[6,1], index: 5, kind: input, shape index: {}]   ;;  %s761_s6 = inlined_call_operand.vmem [shape: f32[1,128], index: 6, kind: output, shape index: {}]   ;;  %s762_s4 = inlined_call_operand.vmem [shape: f32[6,96], index: 4, kind: input, shape index: {}]   ;;  %s763_s1 = inlined_call_operand.vmem [shape: f32[3,128], index: 1, kind: input, shape index: {}]  }
   0x1   :  { %v584_v0 = vld [vmem:[%s757_s0] sm:$0xff]   ;;  %582 = vset.pattern.permute.xlu0 %v625_v1  ;;  %583 = vset.pattern.permute.xlu1 %v625_v1  ;;  %v585_v2 = vld [vmem:[%s757_s0 + $0x8] sm:$0xff]   ;;  %v586_v4 = vld [vmem:[%s757_s0 + $0x10] sm:$0xff]   ;;  %28 = vst [vmem:[%s761_s6] sm:$0x1] %v627_v24  ;;  %vm628_vm1 = vmmov 0   ;;  %vm286_vm2 = vcmask 785408  }
   0x2   :  { %515 = vmatprep.subr.bf16.mxu0 %v584_v0  ;;  %v587_v3 = vld [vmem:[%s758_s2] sm:$0xff]   ;;  %v49_v6 = vld [vmem:[%s759_s3 + $0x10] sm:$0xff]  ;;  %v588_v7 = vld [vmem:[%s758_s2 + $0x8] sm:$0xff]   ;;  %560 = vmatprep.subr.bf16.mxu1 %v626_v23 }
   0x3   :  { %516 = vmatpush3.bf16.msra.mxu0 %v584_v0  ;;  %521 = vmatprep.mubr.msk.bf16.mxu0 %vm167_vm0, %v587_v3  ;;  %v47_v5 = vld [vmem:[%s759_s3] sm:$0xff]  ;;  %v589_v8 = vld [vmem:[%s758_s2 + $0x10] sm:$0xff]   ;;  %v48_v9 = vld [vmem:[%s759_s3 + $0x8] sm:$0xff] }
   0x4   :  { %517 = vmatprep.subr.bf16.mxu0 %v585_v2  ;;  %61 = vperm.xlu0 %582, %v47_v5   ;;  %v50_v10 = vld [vmem:[%s759_s3 + $0x18] sm:$0xff]  ;;  %v51_v11 = vld [vmem:[%s759_s3 + $0x20] sm:$0xff]  ;;  %v52_v12 = vld [vmem:[%s759_s3 + $0x28] sm:$0xff] }
   0x5   :  { %71 = vperm.xlu1 %583, %v49_v6   ;;  %v590_v13 = vld [vmem:[%s758_s2 + $0x18] sm:$0xff]   ;;  %v591_v14 = vld [vmem:[%s758_s2 + $0x20] sm:$0xff]   ;;  %v53_v15 = vld [vmem:[%s759_s3 + $0x30] sm:$0xff]  ;;  %557 = vmatprep.mubr.msk.f32.mxu1 %vm628_vm1, %v627_v24 }
   0x6   :  { %v54_v16 = vld [vmem:[%s759_s3 + $0x38] sm:$0xff]  ;;  %v55_v17 = vld [vmem:[%s759_s3 + $0x40] sm:$0xff]  ;;  %v56_v18 = vld [vmem:[%s759_s3 + $0x48] sm:$0xff] }
   0x7   :  { %518 = vmatpush3.bf16.msra.mxu0 %v585_v2  ;;  %v592_v19 = vld [vmem:[%s758_s2 + $0x28] sm:$0xff]   ;;  %v57_v20 = vld [vmem:[%s759_s3 + $0x50] sm:$0xff]  ;;  %v58_v21 = vld [vmem:[%s759_s3 + $0x58] sm:$0xff] }
   0x8   :  { %519 = vmatprep.subr.bf16.mxu0 %v586_v4  ;;  %66 = vperm.xlu0 %582, %v48_v9   ;;  %v280_v22 = vld [vmem:[%s760_s5] sm:$0x3f] }
   0x9   :  { %76 = vperm.xlu1 %583, %v50_v10  }
   0xb   :  { %520 = vmatpush3.bf16.msra.mxu0 %v586_v4 }
   0xc   :  { %81 = vperm.xlu0 %582, %v51_v11  }
   0xd   :  { %86 = vperm.xlu1 %583, %v52_v12  }
   0xe   :  { %522 = vmatmul.mubr.msk.bf16.vlgmr.msra.gmra.mrb[0].mxu0 %vm167_vm0, %v588_v7 }
   0xf   :  { %525 = vmatprep.mubr.msk.bf16.mxu0 %vm167_vm0, %v589_v8 }
  0x10   :  { %91 = vperm.xlu0 %582, %v53_v15   ;;  %v279_v15 = vld [vmem:[%s762_s4] sm:$0x3f] }
  0x11   :  { %96 = vperm.xlu1 %583, %v54_v16  }
  0x14   :  { %101 = vperm.xlu0 %582, %v55_v17  }
  0x15   :  { %106 = vperm.xlu1 %583, %v56_v18  }
  0x16   :  { %526 = vmatmul.mubr.msk.bf16.gmra.mrb[4].mxu0 %vm167_vm0, %v590_v13 }
  0x17   :  { %529 = vmatprep.mubr.msk.bf16.mxu0 %vm167_vm0, %v591_v14 }
  0x18   :  { %111 = vperm.xlu0 %582, %v57_v20  }
  0x19   :  { %116 = vperm.xlu1 %583, %v58_v21  }
  0x1c   :  { %283 = vperm.xlu0 %582, %v280_v22  }
  0x1e   :  { %530 = vmatmul.mubr.msk.bf16.gmra.mrb[8].mxu0 %vm167_vm0, %v592_v19 }
  0x83   :  { %v62_v25 = vpop.permute.xlu0 %61 }
  0x84   :  { %v72_v26 = vpop.permute.xlu1 %71 }
  0x87   :  { %v67_v27 = vpop.permute.xlu0 %66 }
  0x88   :  { %v77_v28 = vpop.permute.xlu1 %76 }
  0x8b   :  { %v82_v29 = vpop.permute.xlu0 %81 }
  0x8c   :  { %v87_v30 = vpop.permute.xlu1 %86 }
  0x8f   :  { %v92_v38 = vpop.permute.xlu0 %91 }
  0x90   :  { %v97_v42 = vpop.permute.xlu1 %96 }
  0x93   :  { %v102_v50 = vpop.permute.xlu0 %101 }
  0x94   :  { %v107_v55 = vpop.permute.xlu1 %106 }
  0x97   :  { %v112_v62 = vpop.permute.xlu0 %111 }
  0x98   :  { %v117_v3 = vpop.permute.xlu1 %116 }
  0x9b   :  { %v284_v16 = vpop.permute.xlu0 %283 }
  0xe1   :  { %v523_v31 = vpop.f32.mrb[0].mxu0 }
  0xe2   :  { %v229_v32 = vadd.f32 %v523_v31, %v72_v26  ;;  %v220_v33 = vpop.f32.mrb[1].mxu0 }
  0xe3   :  { %v221_v34 = vadd.f32 %v220_v33, %v62_v25  ;;  %v524_v35 = vpop.f32.mrb[2].mxu0 }
  0xe4   :  { %v232_v36 = vadd.f32 %v524_v35, %v77_v28  ;;  %v223_v37 = vpop.f32.mrb[3].mxu0  ;;  %v269_v40 = vmax.f32 %v229_v32, 0.0 }
  0xe5   :  { %v224_v39 = vadd.f32 %v223_v37, %v67_v27  ;;  %v267_v43 = vmax.f32 %v221_v34, 0.0 }
  0xe6   :  { %v270_v41 = vmax.f32 %v232_v36, 0.0 }
  0xe7   :  { %v268_v44 = vmax.f32 %v224_v39, 0.0 }
  0xe8   :  { %v564_v45 = vpack.c.bf16 %v270_v41, %v269_v40 }
  0xe9   :  { %v527_v46 = vpop.f32.mrb[4].mxu0  ;;  %v561_v47 = vpack.c.bf16 %v268_v44, %v267_v43 }
  0xea   :  { %v245_v48 = vadd.f32 %v527_v46, %v92_v38  ;;  %v236_v49 = vpop.f32.mrb[5].mxu0 }
  0xeb   :  { %v237_v51 = vadd.f32 %v236_v49, %v82_v29  ;;  %v528_v52 = vpop.f32.mrb[6].mxu0  ;;  %562 = vmatpush3.bf16.msra.mxu1 %v561_v47 }
  0xec   :  { %v248_v53 = vadd.f32 %v528_v52, %v97_v42  ;;  %v239_v54 = vpop.f32.mrb[7].mxu0  ;;  %563 = vmatprep.subr.bf16.mxu1 %v626_v23  ;;  %v273_v57 = vmax.f32 %v245_v48, 0.0 }
  0xed   :  { %v240_v56 = vadd.f32 %v239_v54, %v87_v30  ;;  %v271_v59 = vmax.f32 %v237_v51, 0.0 }
  0xee   :  { %v274_v58 = vmax.f32 %v248_v53, 0.0 }
  0xef   :  { %v272_v60 = vmax.f32 %v240_v56, 0.0  ;;  %565 = vmatpush3.bf16.msra.mxu1 %v564_v45 }
  0xf0   :  { %v570_v61 = vpack.c.bf16 %v274_v58, %v273_v57  ;;  %566 = vmatprep.subr.bf16.mxu1 %v626_v23 }
  0xf1   :  { %v567_v63 = vpack.c.bf16 %v272_v60, %v271_v59  ;;  %v531_v0 = vpop.f32.mrb[8].mxu0 }
  0xf2   :  { %v261_v1 = vadd.f32 %v531_v0, %v112_v62  ;;  %v252_v2 = vpop.f32.mrb[9].mxu0 }
  0xf3   :  { %v253_v4 = vadd.f32 %v252_v2, %v102_v50  ;;  %v532_v5 = vpop.f32.mrb[10].mxu0  ;;  %568 = vmatpush3.bf16.msra.mxu1 %v567_v63 }
  0xf4   :  { %v264_v6 = vadd.f32 %v532_v5, %v117_v3  ;;  %v255_v7 = vpop.f32.mrb[11].mxu0  ;;  %569 = vmatprep.subr.bf16.mxu1 %v626_v23  ;;  %v277_v9 = vmax.f32 %v261_v1, 0.0 }
  0xf5   :  { %v256_v8 = vadd.f32 %v255_v7, %v107_v55  ;;  %v275_v11 = vmax.f32 %v253_v4, 0.0 }
  0xf6   :  { %v278_v10 = vmax.f32 %v264_v6, 0.0 }
  0xf7   :  { %v276_v12 = vmax.f32 %v256_v8, 0.0  ;;  %571 = vmatpush3.bf16.msra.mxu1 %v570_v61 }
  0xf8   :  { %v576_v13 = vpack.c.bf16 %v278_v10, %v277_v9  ;;  %572 = vmatprep.subr.bf16.mxu1 %v626_v23 }
  0xf9   :  { %v573_v14 = vpack.c.bf16 %v276_v12, %v275_v11 }
  0xfb   :  { %574 = vmatpush3.bf16.msra.mxu1 %v573_v14 }
  0xfc   :  { %575 = vmatprep.subr.bf16.mxu1 %v626_v23  ;;  %v368_v23 = vld [vmem:[%s763_s1] sm:$0x7] }
  0xff   :  { %577 = vmatpush3.bf16.msra.mxu1 %v576_v13 }
 0x102   :  { %558 = vmatmul.mubr.msk.f32.vlgmr.msra.gmra.mrb[0].mxu1 %vm286_vm2, %v279_v15 }
 0x1d5   :  { %v356_v17 = vpop.f32.mrb[0].mxu1 }
 0x1d6   :  { %v357_v18 = vadd.f32 %v356_v17, %v284_v16  ;;  %v559_v19 = vpop.f32.mrb[1].mxu1 }
 0x1d8   :  { %v483_v20 = vclamps-f32 %v357_v18, 10.0  ;;  %v400_v24 = vrot.slane %v357_v18, 1  ;;  %v429_v25 = vrot.slane %v357_v18, 2  ;;  %v374_v26 = vsub.f32 %v368_v23, %v357_v18 }
 0x1da   :  { %v371_v21 = vsub.f32 0.0, %v483_v20  ;;  %v402_v27 = vsub.f32 %v368_v23, %v400_v24  ;;  %v431_v28 = vsub.f32 %v368_v23, %v429_v25  ;;  %v375_v30 = vadd.f32 0.5, %v374_v26 }
 0x1db   :  { %v485_v31 = vadd.f32 -0.5, %v374_v26 }
 0x1dc   :  { %v372_v22 = vmul.f32 1.442695, %v371_v21  ;;  %v403_v32 = vadd.f32 0.5, %v402_v27  ;;  %v488_v35 = vadd.f32 -0.5, %v402_v27  ;;  %v432_v37 = vadd.f32 0.5, %v431_v28 }
 0x1dd   :  { %v491_v38 = vadd.f32 -0.5, %v431_v28 }
 0x1de   :  { %593 = vpow2.f32 %v372_v22  ;;  %v458_v22 = vld [vmem:[%s761_s6] sm:$0x1] }
 0x1e8   :  { %v594_v29 = vpop.eup %593 }
 0x1e9   :  { %v377_v33 = vrot.slane %v594_v29, 1  ;;  %v404_v34 = vrot.slane %v594_v29, 2  ;;  %v433_v36 = vrot.slane %v594_v29, 3 }
 0x1eb   :  { %v379_v39 = vmul.f32 %v377_v33, %v375_v30  ;;  %v387_v40 = vmul.f32 %v485_v31, %v377_v33  ;;  %v406_v41 = vmul.f32 %v404_v34, %v403_v32  ;;  %v414_v42 = vmul.f32 %v488_v35, %v404_v34 }
 0x1ec   :  { %v435_v43 = vmul.f32 %v433_v36, %v432_v37  ;;  %v443_v44 = vmul.f32 %v491_v38, %v433_v36 }
 0x1ed   :  { %v484_v45 = vmul.f32 -1.442695, %v379_v39  ;;  %v486_v46 = vmul.f32 -1.442695, %v387_v40  ;;  %v487_v47 = vmul.f32 -1.442695, %v406_v41 }
 0x1ee   :  { %v489_v48 = vmul.f32 -1.442695, %v414_v42  ;;  %v490_v49 = vmul.f32 -1.442695, %v435_v43  ;;  %v492_v50 = vmul.f32 -1.442695, %v443_v44 }
 0x1ef   :  { %595 = vpow2.f32 %v484_v45 }
 0x1f0   :  { %597 = vpow2.f32 %v486_v46 }
 0x1f1   :  { %599 = vpow2.f32 %v487_v47 }
 0x1f2   :  { %601 = vpow2.f32 %v489_v48 }
 0x1f3   :  { %603 = vpow2.f32 %v490_v49 }
 0x1f4   :  { %605 = vpow2.f32 %v492_v50 }
 0x1f9   :  { %v596_v51 = vpop.eup %595 }
 0x1fa   :  { %v598_v52 = vpop.eup %597  ;;  %v383_v53 = vadd.f32 1.0, %v596_v51 }
 0x1fb   :  { %v600_v54 = vpop.eup %599  ;;  %v391_v55 = vadd.f32 1.0, %v598_v52 }
 0x1fc   :  { %v602_v56 = vpop.eup %601  ;;  %607 = vrcp.f32 %v383_v53  ;;  %v410_v57 = vadd.f32 1.0, %v600_v54 }
 0x1fd   :  { %v604_v58 = vpop.eup %603  ;;  %609 = vrcp.f32 %v391_v55  ;;  %v418_v59 = vadd.f32 1.0, %v602_v56 }
 0x1fe   :  { %v606_v60 = vpop.eup %605  ;;  %611 = vrcp.f32 %v410_v57  ;;  %v439_v61 = vadd.f32 1.0, %v604_v58 }
 0x1ff   :  { %613 = vrcp.f32 %v418_v59  ;;  %v447_v62 = vadd.f32 1.0, %v606_v60 }
 0x200   :  { %615 = vrcp.f32 %v439_v61 }
 0x201   :  { %617 = vrcp.f32 %v447_v62 }
 0x206   :  { %v608_v63 = vpop.eup %607 }
 0x207   :  { %v610_v0 = vpop.eup %609 }
 0x208   :  { %v612_v1 = vpop.eup %611  ;;  %v394_v2 = vsub.f32 %v608_v63, %v610_v0 }
 0x209   :  { %v614_v3 = vpop.eup %613 }
 0x20a   :  { %v616_v4 = vpop.eup %615  ;;  %v395_v5 = vmax.f32 %v394_v2, 1e-09  ;;  %v421_v6 = vsub.f32 %v612_v1, %v614_v3 }
 0x20b   :  { %v618_v7 = vpop.eup %617 }
 0x20c   :  { %619 = vlog2.f32 %v395_v5  ;;  %v422_v8 = vmax.f32 %v421_v6, 1e-09  ;;  %v450_v9 = vsub.f32 %v616_v4, %v618_v7 }
 0x20e   :  { %621 = vlog2.f32 %v422_v8  ;;  %v451_v10 = vmax.f32 %v450_v9, 1e-09 }
 0x210   :  { %623 = vlog2.f32 %v451_v10 }
 0x216   :  { %v620_v11 = vpop.eup %619 }
 0x217   :  { %v397_v12 = vmul.f32 0.6931472, %v620_v11 }
 0x218   :  { %v622_v13 = vpop.eup %621 }
 0x219   :  { %v398_v14 = vsub.f32 0.0, %v397_v12  ;;  %v424_v15 = vmul.f32 0.6931472, %v622_v13 }
 0x21a   :  { %v624_v16 = vpop.eup %623 }
 0x21b   :  { %v426_v17 = vrot.slane %v424_v15, 1  ;;  %v453_v18 = vmul.f32 0.6931472, %v624_v16 }
 0x21d   :  { %v428_v19 = vsub.f32 %v398_v14, %v426_v17  ;;  %v455_v20 = vrot.slane %v453_v18, 2 }
 0x21f   :  { %v457_v21 = vsub.f32 %v428_v19, %v455_v20 }
 0x221   :  { %v460_v24 = vmul.f32 1.442695, %v457_v21 }
 0x223   :  { %v461_v23 = vadd.f32 %v460_v24, %v458_v22 }
 0x225   :  { %462 = vst [vmem:[%s761_s6] sm:$0x1] %v461_v23 }

</bundles_post_ra>
